<compile_context>
chip_gen: v5e
topology: v5e:2x2
jax: 0.10.0
libtpu: 0.0.40
codegen_flags: <defaults>
</compile_context>

<pallas_src>
import jax
import jax.numpy as jnp
import numpy as np
from jax import lax
from jax.experimental import pallas as pl
from jax.experimental.pallas import tpu as pltpu


# ----------------------------------------------------------------------------
# Fused whole-sequence kernel: one invocation, in-kernel time loop.
# ----------------------------------------------------------------------------
def gru_seq_kernel(xr_ref, xz_ref, xn_ref, mask_ref,
                   wicr_ref, wicz_ref, wicn_ref,
                   whr_ref, whz_ref, whn_ref,
                   br_ref, bz_ref, bn_ref,
                   mkt_ref, mv_ref,
                   hseq_ref):
    """Memory-augmented GRU over a full sequence.

    Step 0 is the module's last_hidden=None branch:
        h_0 = emb_0 @ W_i[:E, 2H:]          (== xn_ref[0]; no bias, context = 0)
    Steps t >= 1 run the memory read + GRU update; h is the fori_loop carry and
    the whole (T,B,H) output stays resident in VMEM (one HBM writeback at end).
    """
    T = xr_ref.shape[0]
    mxu_dtype = mkt_ref.dtype            # bf16 MXU operands, f32 accumulation

    # Resident weights: loaded once, reused across the whole time loop.
    wicr, wicz, wicn = wicr_ref[...], wicz_ref[...], wicn_ref[...]
    whr, whz, whn = whr_ref[...], whz_ref[...], whn_ref[...]
    br, bz, bn = br_ref[...], bz_ref[...], bn_ref[...]
    mkt, mv = mkt_ref[...], mv_ref[...]

    # ---- t == 0: last_hidden=None branch ------------------------------------
    h0 = xn_ref[0]                        # (B, H) f32
    hseq_ref[0] = h0                      # module applies no mask on this step

    # ---- t = 1 .. T-1 --------------------------------------------------------
    def step(t, h_prev):
        mask = mask_ref[t]                # (B, 1) f32
        h_lp = h_prev.astype(mxu_dtype)

        # memory read: alpha = exp(h @ M_k^T) / sum, context = alpha @ M_v
        logits = jnp.dot(h_lp, mkt, preferred_element_type=jnp.float32)   # (B, K)
        alpha_tilde = jnp.exp(logits)     # faithful to the module: no max-subtraction
        alpha = alpha_tilde / jnp.sum(alpha_tilde, axis=1, keepdims=True)
        context = jnp.dot(alpha.astype(mxu_dtype), mv,
                          preferred_element_type=jnp.float32)             # (B, C)
        ctx_lp = context.astype(mxu_dtype)

        # Gate pre-activations.  The embedded-input halves (x*_ref) were
        # hoisted out of the kernel as one big XLA matmul over all T*B rows;
        # only the recurrence-dependent matmuls run here, one whole tile per
        # gate (no lane-offset slicing).
        xc_r = xr_ref[t] + jnp.dot(ctx_lp, wicr, preferred_element_type=jnp.float32) + br
        xc_z = xz_ref[t] + jnp.dot(ctx_lp, wicz, preferred_element_type=jnp.float32) + bz
        xc_n = xn_ref[t] + jnp.dot(ctx_lp, wicn, preferred_element_type=jnp.float32) + bn
        hw_r = jnp.dot(h_lp, whr, preferred_element_type=jnp.float32)
        hw_z = jnp.dot(h_lp, whz, preferred_element_type=jnp.float32)
        hw_n = jnp.dot(h_lp, whn, preferred_element_type=jnp.float32)

        r = jax.nn.sigmoid(xc_r + hw_r)
        z = jax.nn.sigmoid(xc_z + hw_z)
        n = jnp.tanh(xc_n + r * hw_n)

        h_new = (1.0 - z) * n + z * h_prev
        h_next = mask * h_new + (1.0 - mask) * h_prev
        hseq_ref[t] = h_next
        return h_next

    # Short fixed trip-count: fully unroll for LLO scheduler visibility.
    lax.fori_loop(1, T, step, h0, unroll=True)


_VMEM = pl.BlockSpec(memory_space=pltpu.MemorySpace.VMEM)


# ----------------------------------------------------------------------------
# Wrapper (parameter container + pallas_call glue)
# ----------------------------------------------------------------------------
class GRUCellPallas:
    def __init__(self, embed_size, hidden_size, context_size, num_slots, key,
                 mxu_dtype=jnp.bfloat16):
        self.embed_size = embed_size
        self.hidden_size = hidden_size
        self.context_size = context_size
        self.num_slots = num_slots
        self.input_size = embed_size + context_size

        ks = jax.random.split(key, 6)

        def init_w(k, dims):
            return (0.08 * jax.random.normal(k, dims)).astype(jnp.float32)

        # PyTorch-layout master parameters (f32; used by the reference check
        # and by the plain-XLA single-step path).
        self.W_i = init_w(ks[0], (self.input_size, 3 * hidden_size))
        self.W_h = init_w(ks[1], (hidden_size, 3 * hidden_size))
        self.b_i = init_w(ks[2], (1, 3 * hidden_size))
        self.b_h = init_w(ks[3], (1, 3 * hidden_size))
        self.M_k = init_w(ks[4], (num_slots, hidden_size))
        self.M_v = init_w(ks[5], (num_slots, context_size))

        # ---- hoisted, gate-aligned weight derivations (done ONCE) -----------
        E, H = embed_size, hidden_size
        W_ie = self.W_i[:E, :]                    # (E, 3H) embedded-input half
        W_ic = self.W_i[E:, :]                    # (C, 3H) context half
        b = self.b_i + self.b_h                   # (1, 3H) combined bias
        # Column order in the module: [r | z | n].
        self.W_ie_all = W_ie                      # f32: hoisted XLA projection
        self.W_ie_n = W_ie[:, 2 * H:]             # f32: last_hidden=None branch
        self.W_ic_r = W_ic[:, :H].astype(mxu_dtype)
        self.W_ic_z = W_ic[:, H:2 * H].astype(mxu_dtype)
        self.W_ic_n = W_ic[:, 2 * H:].astype(mxu_dtype)
        self.W_h_r = self.W_h[:, :H].astype(mxu_dtype)
        self.W_h_z = self.W_h[:, H:2 * H].astype(mxu_dtype)
        self.W_h_n = self.W_h[:, 2 * H:].astype(mxu_dtype)
        self.b_r = b[:, :H]
        self.b_z = b[:, H:2 * H]
        self.b_n = b[:, 2 * H:]
        self.M_k_T = jnp.transpose(self.M_k).astype(mxu_dtype)   # (H, K)
        self.M_v_lp = self.M_v.astype(mxu_dtype)                 # (K, C)

    # ---- single step, same signature as the PyTorch forward -----------------
    # Cold path (per perf review): at B=8/H=32 a Pallas launch + weight DMA
    # dwarfs the compute, so this stays in plain XLA.  Multi-step use should go
    # through forward_sequence (the fused Pallas kernel).
    def __call__(self, embedded, mask, last_hidden=None):
        H = self.hidden_size
        B = embedded.shape[0]
        emb = embedded.astype(jnp.float32)
        if last_hidden is None:
            # cat(emb, 0) @ W_i[:, 2H:] == emb @ W_i[:E, 2H:]
            return emb @ self.W_ie_n
        split = 2 * H
        alpha_tilde = jnp.exp(last_hidden @ self.M_k.T)
        alpha = alpha_tilde / jnp.sum(alpha_tilde, axis=1, keepdims=True)
        context = alpha @ self.M_v
        inp = jnp.concatenate([emb, context], axis=1)
        bias = self.b_i + self.b_h
        gates = jax.nn.sigmoid(inp @ self.W_i[:, :split]
                               + last_hidden @ self.W_h[:, :split]
                               + bias[:, :split])
        r = gates[:, :H]
        z = gates[:, H:]
        n = jnp.tanh(inp @ self.W_i[:, split:] + bias[:, split:]
                     + r * (last_hidden @ self.W_h[:, split:]))
        h = (1.0 - z) * n + z * last_hidden
        m = jnp.broadcast_to(mask.reshape(B, 1).astype(jnp.float32), (B, H))
        return m * h + (1.0 - m) * last_hidden

    # ---- fused whole-sequence forward (the hot path) -------------------------
    def forward_sequence(self, embedded_seq, mask_seq):
        """embedded_seq: (T, B, E), mask_seq: (T, B) -> (T, B, H).

        Single pallas_call: everything (per-gate x-projections, mask, output,
        all recurrence weights) is a whole-array VMEM block and time is an
        in-kernel unrolled fori_loop.  For long T (esp. v7x's 64 MiB VMEM),
        chunk time instead: grid=(T//Tc,) marked "arbitrary", (Tc,B,*) blocks,
        hidden state carried in VMEM scratch.
        """
        T, B, _ = embedded_seq.shape
        H = self.hidden_size

        # Recurrence-independent input projection, hoisted to one MXU-friendly
        # (T*B, E) @ (E, 3H) XLA matmul; split per gate wrapper-side so the
        # kernel never slices at lane offsets.
        x_all = jnp.einsum('tbe,ef->tbf',
                           embedded_seq.astype(jnp.float32), self.W_ie_all)
        x_r = x_all[..., :H]
        x_z = x_all[..., H:2 * H]
        x_n = x_all[..., 2 * H:]
        mask3 = mask_seq.reshape(T, B, 1).astype(jnp.float32)

        return pl.pallas_call(
            gru_seq_kernel,
            out_shape=jax.ShapeDtypeStruct((T, B, H), jnp.float32),
            in_specs=[_VMEM] * 15,
            out_specs=_VMEM,
        )(x_r, x_z, x_n, mask3,
          self.W_ic_r, self.W_ic_z, self.W_ic_n,
          self.W_h_r, self.W_h_z, self.W_h_n,
          self.b_r, self.b_z, self.b_n,
          self.M_k_T, self.M_v_lp)


# ----------------------------------------------------------------------------
# Pure-JAX reference (mirrors the PyTorch forward exactly, f32)
# ----------------------------------------------------------------------------
def reference_forward(cell, embedded, mask, last_hidden=None):
    H = cell.hidden_size
    B = embedded.shape[0]
    split = 2 * H
    if last_hidden is None:
        context = jnp.zeros((B, cell.context_size), jnp.float32)
        inp = jnp.concatenate([embedded, context], axis=1)
        return inp @ cell.W_i[:, split:]
    alpha_tilde = jnp.exp(last_hidden @ cell.M_k.T)
    alpha = alpha_tilde / jnp.sum(alpha_tilde, axis=1, keepdims=True)
    context = alpha @ cell.M_v
    inp = jnp.concatenate([embedded, context], axis=1)
    b_i = jnp.tile(cell.b_i, (B, 1))
    b_h = jnp.tile(cell.b_h, (B, 1))
    gates = jax.nn.sigmoid(inp @ cell.W_i[:, :split] + last_hidden @ cell.W_h[:, :split]
                           + b_i[:, :split] + b_h[:, :split])
    r = gates[:, :H]
    z = gates[:, H:]
    n = jnp.tanh(inp @ cell.W_i[:, split:] + b_i[:, split:]
                 + r * (last_hidden @ cell.W_h[:, split:]) + b_h[:, split:])
    h = (1.0 - z) * n + z * last_hidden
    m = jnp.broadcast_to(mask.reshape(B, 1), (B, H))
    return m * h + (1.0 - m) * last_hidden


def reference_sequence(cell, embedded_seq, mask_seq):
    T = embedded_seq.shape[0]
    h = reference_forward(cell, embedded_seq[0], mask_seq[0], None)
    hs = [h]
    for t in range(1, T):
        h = reference_forward(cell, embedded_seq[t], mask_seq[t], h)
        hs.append(h)
    return jnp.stack(hs, axis=0)


# ----------------------------------------------------------------------------
if __name__ == "__main__":
    batch = 8
    embed_size = 16
    hidden_size = 32
    context_size = 16
    num_slots = 8
    seq_len = 12

    key = jax.random.PRNGKey(0)
    k_params, k_emb, k_h, k_mask, k_eseq, k_mseq = jax.random.split(key, 6)

    cell = GRUCellPallas(embed_size, hidden_size, context_size, num_slots, k_params)

    # --- single-step API (plain XLA path; same signature as the PyTorch forward)
    embedded = jax.random.normal(k_emb, (batch, embed_size), dtype=jnp.float32)
    last_hidden = jax.random.normal(k_h, (batch, hidden_size), dtype=jnp.float32)
    mask = (jax.random.uniform(k_mask, (batch,)) > 0.3).astype(jnp.float32)

    out0 = jax.block_until_ready(cell(embedded, mask, None))
    h_new = jax.block_until_ready(cell(embedded, mask, last_hidden))
    np.testing.assert_allclose(np.asarray(out0),
                               np.asarray(reference_forward(cell, embedded, mask, None)),
                               rtol=1e-4, atol=1e-5)
    np.testing.assert_allclose(np.asarray(h_new),
                               np.asarray(reference_forward(cell, embedded, mask, last_hidden)),
                               rtol=1e-4, atol=1e-5)

    # --- fused whole-sequence Pallas kernel (the hot path) --------------------
    embedded_seq = jax.random.normal(k_eseq, (seq_len, batch, embed_size),
                                     dtype=jnp.float32)
    mask_seq = (jax.random.uniform(k_mseq, (seq_len, batch)) > 0.3).astype(jnp.float32)

    run_seq = jax.jit(cell.forward_sequence)
    h_seq = jax.block_until_ready(run_seq(embedded_seq, mask_seq))

    ref_seq = reference_sequence(cell, embedded_seq, mask_seq)
    # tolerance covers the bf16 MXU operands inside the kernel (all gate /
    # softmax / mask math stays f32; pass mxu_dtype=jnp.float32 for a tighter check)
    np.testing.assert_allclose(np.asarray(h_seq), np.asarray(ref_seq),
                               rtol=2e-2, atol=2e-2)

    print("KERNEL_OK")
</pallas_src>

<mosaic_0001>
module attributes {stable_mosaic.version = 11 : i64} {
  func.func @gru_seq_kernel(%arg0: memref<12x8x32xf32, #tpu.memory_space<vmem>>, %arg1: memref<12x8x32xf32, #tpu.memory_space<vmem>>, %arg2: memref<12x8x32xf32, #tpu.memory_space<vmem>>, %arg3: memref<12x8x1xf32, #tpu.memory_space<vmem>>, %arg4: memref<16x32xbf16, #tpu.memory_space<vmem>>, %arg5: memref<16x32xbf16, #tpu.memory_space<vmem>>, %arg6: memref<16x32xbf16, #tpu.memory_space<vmem>>, %arg7: memref<32x32xbf16, #tpu.memory_space<vmem>>, %arg8: memref<32x32xbf16, #tpu.memory_space<vmem>>, %arg9: memref<32x32xbf16, #tpu.memory_space<vmem>>, %arg10: memref<1x32xf32, #tpu.memory_space<vmem>>, %arg11: memref<1x32xf32, #tpu.memory_space<vmem>>, %arg12: memref<1x32xf32, #tpu.memory_space<vmem>>, %arg13: memref<32x8xbf16, #tpu.memory_space<vmem>>, %arg14: memref<8x16xbf16, #tpu.memory_space<vmem>>, %arg15: memref<12x8x32xf32, #tpu.memory_space<vmem>>) attributes {dimension_semantics = [], scalar_prefetch = 0 : i64, scratch_operands = 0 : i64, tpu.core_type = #tpu.core_type<tc>} {
    %c0 = arith.constant 0 : index
    %c0_0 = arith.constant 0 : index
    %0 = vector.load %arg4[%c0, %c0_0] : memref<16x32xbf16, #tpu.memory_space<vmem>>, vector<16x32xbf16>
    %c0_1 = arith.constant 0 : index
    %c0_2 = arith.constant 0 : index
    %1 = vector.load %arg5[%c0_1, %c0_2] : memref<16x32xbf16, #tpu.memory_space<vmem>>, vector<16x32xbf16>
    %c0_3 = arith.constant 0 : index
    %c0_4 = arith.constant 0 : index
    %2 = vector.load %arg6[%c0_3, %c0_4] : memref<16x32xbf16, #tpu.memory_space<vmem>>, vector<16x32xbf16>
    %c0_5 = arith.constant 0 : index
    %c0_6 = arith.constant 0 : index
    %3 = vector.load %arg7[%c0_5, %c0_6] : memref<32x32xbf16, #tpu.memory_space<vmem>>, vector<32x32xbf16>
    %c0_7 = arith.constant 0 : index
    %c0_8 = arith.constant 0 : index
    %4 = vector.load %arg8[%c0_7, %c0_8] : memref<32x32xbf16, #tpu.memory_space<vmem>>, vector<32x32xbf16>
    %c0_9 = arith.constant 0 : index
    %c0_10 = arith.constant 0 : index
    %5 = vector.load %arg9[%c0_9, %c0_10] : memref<32x32xbf16, #tpu.memory_space<vmem>>, vector<32x32xbf16>
    %c0_11 = arith.constant 0 : index
    %c0_12 = arith.constant 0 : index
    %6 = vector.load %arg10[%c0_11, %c0_12] : memref<1x32xf32, #tpu.memory_space<vmem>>, vector<1x32xf32>
    %c0_13 = arith.constant 0 : index
    %c0_14 = arith.constant 0 : index
    %7 = vector.load %arg11[%c0_13, %c0_14] : memref<1x32xf32, #tpu.memory_space<vmem>>, vector<1x32xf32>
    %c0_15 = arith.constant 0 : index
    %c0_16 = arith.constant 0 : index
    %8 = vector.load %arg12[%c0_15, %c0_16] : memref<1x32xf32, #tpu.memory_space<vmem>>, vector<1x32xf32>
    %c0_17 = arith.constant 0 : index
    %c0_18 = arith.constant 0 : index
    %9 = vector.load %arg13[%c0_17, %c0_18] : memref<32x8xbf16, #tpu.memory_space<vmem>>, vector<32x8xbf16>
    %c0_19 = arith.constant 0 : index
    %c0_20 = arith.constant 0 : index
    %10 = vector.load %arg14[%c0_19, %c0_20] : memref<8x16xbf16, #tpu.memory_space<vmem>>, vector<8x16xbf16>
    %c0_21 = arith.constant 0 : index
    %c0_22 = arith.constant 0 : index
    %c0_23 = arith.constant 0 : index
    %11 = vector.load %arg2[%c0_21, %c0_22, %c0_23] : memref<12x8x32xf32, #tpu.memory_space<vmem>>, vector<1x8x32xf32>
    %12 = vector.shape_cast %11 : vector<1x8x32xf32> to vector<8x32xf32>
    %c0_24 = arith.constant 0 : index
    %c0_25 = arith.constant 0 : index
    %c0_26 = arith.constant 0 : index
    %13 = vector.load %arg15[%c0_24, %c0_25, %c0_26] : memref<12x8x32xf32, #tpu.memory_space<vmem>>, vector<1x8x32xf32>
    %14 = vector.shape_cast %13 : vector<1x8x32xf32> to vector<8x32xf32>
    %15 = vector.shape_cast %12 : vector<8x32xf32> to vector<1x8x32xf32>
    tpu.vector_store %arg15[%c0_24, %c0_25, %c0_26], %15 {strides = array<i32>} : memref<12x8x32xf32, #tpu.memory_space<vmem>>, vector<1x8x32xf32>,
    %c1_i32 = arith.constant 1 : i32
    %16 = arith.index_cast %c1_i32 : i32 to index
    %c0_27 = arith.constant 0 : index
    %c0_28 = arith.constant 0 : index
    %17 = vector.load %arg3[%16, %c0_27, %c0_28] : memref<12x8x1xf32, #tpu.memory_space<vmem>>, vector<1x8x1xf32>
    %18 = vector.shape_cast %17 : vector<1x8x1xf32> to vector<8x1xf32>
    %19 = arith.truncf %12 : vector<8x32xf32> to vector<8x32xbf16>
    %cst = arith.constant dense<0.000000e+00> : vector<8x8xf32>
    %20 = tpu.matmul %19, %9, %cst {dimension_numbers = #tpu.dot_dimension_numbers<[1], [0], [0], [1], [0, 0, 1, 1], [], []>} : vector<8x32xbf16>, vector<32x8xbf16>, vector<8x8xf32> -> vector<8x8xf32>
    %21 = math.exp %20 : vector<8x8xf32>
    %cst_29 = arith.constant dense<0.000000e+00> : vector<8xf32>
    %22 = vector.multi_reduction <add>, %21, %cst_29 [1] : vector<8x8xf32> to vector<8xf32>
    %23 = vector.shape_cast %22 : vector<8xf32> to vector<8x1xf32>
    %24 = vector.broadcast %23 : vector<8x1xf32> to vector<8x8xf32>
    %25 = arith.divf %21, %24 : vector<8x8xf32>
    %26 = arith.truncf %25 : vector<8x8xf32> to vector<8x8xbf16>
    %cst_30 = arith.constant dense<0.000000e+00> : vector<8x16xf32>
    %27 = tpu.matmul %26, %10, %cst_30 {dimension_numbers = #tpu.dot_dimension_numbers<[1], [0], [0], [1], [0, 0, 1, 1], [], []>} : vector<8x8xbf16>, vector<8x16xbf16>, vector<8x16xf32> -> vector<8x16xf32>
    %28 = arith.truncf %27 : vector<8x16xf32> to vector<8x16xbf16>
    %29 = arith.index_cast %c1_i32 : i32 to index
    %c0_31 = arith.constant 0 : index
    %c0_32 = arith.constant 0 : index
    %30 = vector.load %arg0[%29, %c0_31, %c0_32] : memref<12x8x32xf32, #tpu.memory_space<vmem>>, vector<1x8x32xf32>
    %31 = vector.shape_cast %30 : vector<1x8x32xf32> to vector<8x32xf32>
    %cst_33 = arith.constant dense<0.000000e+00> : vector<8x32xf32>
    %32 = tpu.matmul %28, %0, %cst_33 {dimension_numbers = #tpu.dot_dimension_numbers<[1], [0], [0], [1], [0, 0, 1, 1], [], []>} : vector<8x16xbf16>, vector<16x32xbf16>, vector<8x32xf32> -> vector<8x32xf32>
    %33 = arith.addf %31, %32 : vector<8x32xf32>
    %34 = vector.broadcast %6 : vector<1x32xf32> to vector<8x32xf32>
    %35 = arith.addf %33, %34 : vector<8x32xf32>
    %36 = arith.index_cast %c1_i32 : i32 to index
    %c0_34 = arith.constant 0 : index
    %c0_35 = arith.constant 0 : index
    %37 = vector.load %arg1[%36, %c0_34, %c0_35] : memref<12x8x32xf32, #tpu.memory_space<vmem>>, vector<1x8x32xf32>
    %38 = vector.shape_cast %37 : vector<1x8x32xf32> to vector<8x32xf32>
    %cst_36 = arith.constant dense<0.000000e+00> : vector<8x32xf32>
    %39 = tpu.matmul %28, %1, %cst_36 {dimension_numbers = #tpu.dot_dimension_numbers<[1], [0], [0], [1], [0, 0, 1, 1], [], []>} : vector<8x16xbf16>, vector<16x32xbf16>, vector<8x32xf32> -> vector<8x32xf32>
    %40 = arith.addf %38, %39 : vector<8x32xf32>
    %41 = vector.broadcast %7 : vector<1x32xf32> to vector<8x32xf32>
    %42 = arith.addf %40, %41 : vector<8x32xf32>
    %43 = arith.index_cast %c1_i32 : i32 to index
    %c0_37 = arith.constant 0 : index
    %c0_38 = arith.constant 0 : index
    %44 = vector.load %arg2[%43, %c0_37, %c0_38] : memref<12x8x32xf32, #tpu.memory_space<vmem>>, vector<1x8x32xf32>
    %45 = vector.shape_cast %44 : vector<1x8x32xf32> to vector<8x32xf32>
    %cst_39 = arith.constant dense<0.000000e+00> : vector<8x32xf32>
    %46 = tpu.matmul %28, %2, %cst_39 {dimension_numbers = #tpu.dot_dimension_numbers<[1], [0], [0], [1], [0, 0, 1, 1], [], []>} : vector<8x16xbf16>, vector<16x32xbf16>, vector<8x32xf32> -> vector<8x32xf32>
    %47 = arith.addf %45, %46 : vector<8x32xf32>
    %48 = vector.broadcast %8 : vector<1x32xf32> to vector<8x32xf32>
    %49 = arith.addf %47, %48 : vector<8x32xf32>
    %cst_40 = arith.constant dense<0.000000e+00> : vector<8x32xf32>
    %50 = tpu.matmul %19, %3, %cst_40 {dimension_numbers = #tpu.dot_dimension_numbers<[1], [0], [0], [1], [0, 0, 1, 1], [], []>} : vector<8x32xbf16>, vector<32x32xbf16>, vector<8x32xf32> -> vector<8x32xf32>
    %cst_41 = arith.constant dense<0.000000e+00> : vector<8x32xf32>
    %51 = tpu.matmul %19, %4, %cst_41 {dimension_numbers = #tpu.dot_dimension_numbers<[1], [0], [0], [1], [0, 0, 1, 1], [], []>} : vector<8x32xbf16>, vector<32x32xbf16>, vector<8x32xf32> -> vector<8x32xf32>
    %cst_42 = arith.constant dense<0.000000e+00> : vector<8x32xf32>
    %52 = tpu.matmul %19, %5, %cst_42 {dimension_numbers = #tpu.dot_dimension_numbers<[1], [0], [0], [1], [0, 0, 1, 1], [], []>} : vector<8x32xbf16>, vector<32x32xbf16>, vector<8x32xf32> -> vector<8x32xf32>
    %53 = arith.addf %35, %50 : vector<8x32xf32>
    %54 = arith.negf %53 : vector<8x32xf32>
    %55 = math.exp %54 : vector<8x32xf32>
    %cst_43 = arith.constant 1.000000e+00 : f32
    %56 = vector.broadcast %cst_43 : f32 to vector<8x32xf32>
    %57 = arith.addf %56, %55 : vector<8x32xf32>
    %58 = arith.divf %56, %57 : vector<8x32xf32>
    %59 = arith.addf %42, %51 : vector<8x32xf32>
    %60 = arith.negf %59 : vector<8x32xf32>
    %61 = math.exp %60 : vector<8x32xf32>
    %cst_44 = arith.constant 1.000000e+00 : f32
    %62 = vector.broadcast %cst_44 : f32 to vector<8x32xf32>
    %63 = arith.addf %62, %61 : vector<8x32xf32>
    %64 = arith.divf %62, %63 : vector<8x32xf32>
    %65 = arith.mulf %58, %52 : vector<8x32xf32>
    %66 = arith.addf %49, %65 : vector<8x32xf32>
    %67 = math.tanh %66 : vector<8x32xf32>
    %cst_45 = arith.constant 1.000000e+00 : f32
    %68 = vector.broadcast %cst_45 : f32 to vector<8x32xf32>
    %69 = arith.subf %68, %64 : vector<8x32xf32>
    %70 = arith.mulf %69, %67 : vector<8x32xf32>
    %71 = arith.mulf %64, %12 : vector<8x32xf32>
    %72 = arith.addf %70, %71 : vector<8x32xf32>
    %73 = vector.broadcast %18 : vector<8x1xf32> to vector<8x32xf32>
    %74 = arith.mulf %73, %72 : vector<8x32xf32>
    %cst_46 = arith.constant 1.000000e+00 : f32
    %75 = vector.broadcast %cst_46 : f32 to vector<8x1xf32>
    %76 = arith.subf %75, %18 : vector<8x1xf32>
    %77 = vector.broadcast %76 : vector<8x1xf32> to vector<8x32xf32>
    %78 = arith.mulf %77, %12 : vector<8x32xf32>
    %79 = arith.addf %74, %78 : vector<8x32xf32>
    %80 = arith.index_cast %c1_i32 : i32 to index
    %c0_47 = arith.constant 0 : index
    %c0_48 = arith.constant 0 : index
    %81 = vector.load %arg15[%80, %c0_47, %c0_48] : memref<12x8x32xf32, #tpu.memory_space<vmem>>, vector<1x8x32xf32>
    %82 = vector.shape_cast %81 : vector<1x8x32xf32> to vector<8x32xf32>
    %83 = vector.shape_cast %79 : vector<8x32xf32> to vector<1x8x32xf32>
    tpu.vector_store %arg15[%80, %c0_47, %c0_48], %83 {strides = array<i32>} : memref<12x8x32xf32, #tpu.memory_space<vmem>>, vector<1x8x32xf32>,
    %c2_i32 = arith.constant 2 : i32
    %84 = arith.index_cast %c2_i32 : i32 to index
    %c0_49 = arith.constant 0 : index
    %c0_50 = arith.constant 0 : index
    %85 = vector.load %arg3[%84, %c0_49, %c0_50] : memref<12x8x1xf32, #tpu.memory_space<vmem>>, vector<1x8x1xf32>
    %86 = vector.shape_cast %85 : vector<1x8x1xf32> to vector<8x1xf32>
    %87 = arith.truncf %79 : vector<8x32xf32> to vector<8x32xbf16>
    %cst_51 = arith.constant dense<0.000000e+00> : vector<8x8xf32>
    %88 = tpu.matmul %87, %9, %cst_51 {dimension_numbers = #tpu.dot_dimension_numbers<[1], [0], [0], [1], [0, 0, 1, 1], [], []>} : vector<8x32xbf16>, vector<32x8xbf16>, vector<8x8xf32> -> vector<8x8xf32>
    %89 = math.exp %88 : vector<8x8xf32>
    %cst_52 = arith.constant dense<0.000000e+00> : vector<8xf32>
    %90 = vector.multi_reduction <add>, %89, %cst_52 [1] : vector<8x8xf32> to vector<8xf32>
    %91 = vector.shape_cast %90 : vector<8xf32> to vector<8x1xf32>
    %92 = vector.broadcast %91 : vector<8x1xf32> to vector<8x8xf32>
    %93 = arith.divf %89, %92 : vector<8x8xf32>
    %94 = arith.truncf %93 : vector<8x8xf32> to vector<8x8xbf16>
    %cst_53 = arith.constant dense<0.000000e+00> : vector<8x16xf32>
    %95 = tpu.matmul %94, %10, %cst_53 {dimension_numbers = #tpu.dot_dimension_numbers<[1], [0], [0], [1], [0, 0, 1, 1], [], []>} : vector<8x8xbf16>, vector<8x16xbf16>, vector<8x16xf32> -> vector<8x16xf32>
    %96 = arith.truncf %95 : vector<8x16xf32> to vector<8x16xbf16>
    %97 = arith.index_cast %c2_i32 : i32 to index
    %c0_54 = arith.constant 0 : index
    %c0_55 = arith.constant 0 : index
    %98 = vector.load %arg0[%97, %c0_54, %c0_55] : memref<12x8x32xf32, #tpu.memory_space<vmem>>, vector<1x8x32xf32>
    %99 = vector.shape_cast %98 : vector<1x8x32xf32> to vector<8x32xf32>
    %cst_56 = arith.constant dense<0.000000e+00> : vector<8x32xf32>
    %100 = tpu.matmul %96, %0, %cst_56 {dimension_numbers = #tpu.dot_dimension_numbers<[1], [0], [0], [1], [0, 0, 1, 1], [], []>} : vector<8x16xbf16>, vector<16x32xbf16>, vector<8x32xf32> -> vector<8x32xf32>
    %101 = arith.addf %99, %100 : vector<8x32xf32>
    %102 = vector.broadcast %6 : vector<1x32xf32> to vector<8x32xf32>
    %103 = arith.addf %101, %102 : vector<8x32xf32>
    %104 = arith.index_cast %c2_i32 : i32 to index
    %c0_57 = arith.constant 0 : index
    %c0_58 = arith.constant 0 : index
    %105 = vector.load %arg1[%104, %c0_57, %c0_58] : memref<12x8x32xf32, #tpu.memory_space<vmem>>, vector<1x8x32xf32>
    %106 = vector.shape_cast %105 : vector<1x8x32xf32> to vector<8x32xf32>
    %cst_59 = arith.constant dense<0.000000e+00> : vector<8x32xf32>
    %107 = tpu.matmul %96, %1, %cst_59 {dimension_numbers = #tpu.dot_dimension_numbers<[1], [0], [0], [1], [0, 0, 1, 1], [], []>} : vector<8x16xbf16>, vector<16x32xbf16>, vector<8x32xf32> -> vector<8x32xf32>
    %108 = arith.addf %106, %107 : vector<8x32xf32>
    %109 = vector.broadcast %7 : vector<1x32xf32> to vector<8x32xf32>
    %110 = arith.addf %108, %109 : vector<8x32xf32>
    %111 = arith.index_cast %c2_i32 : i32 to index
    %c0_60 = arith.constant 0 : index
    %c0_61 = arith.constant 0 : index
    %112 = vector.load %arg2[%111, %c0_60, %c0_61] : memref<12x8x32xf32, #tpu.memory_space<vmem>>, vector<1x8x32xf32>
    %113 = vector.shape_cast %112 : vector<1x8x32xf32> to vector<8x32xf32>
    %cst_62 = arith.constant dense<0.000000e+00> : vector<8x32xf32>
    %114 = tpu.matmul %96, %2, %cst_62 {dimension_numbers = #tpu.dot_dimension_numbers<[1], [0], [0], [1], [0, 0, 1, 1], [], []>} : vector<8x16xbf16>, vector<16x32xbf16>, vector<8x32xf32> -> vector<8x32xf32>
    %115 = arith.addf %113, %114 : vector<8x32xf32>
    %116 = vector.broadcast %8 : vector<1x32xf32> to vector<8x32xf32>
    %117 = arith.addf %115, %116 : vector<8x32xf32>
    %cst_63 = arith.constant dense<0.000000e+00> : vector<8x32xf32>
    %118 = tpu.matmul %87, %3, %cst_63 {dimension_numbers = #tpu.dot_dimension_numbers<[1], [0], [0], [1], [0, 0, 1, 1], [], []>} : vector<8x32xbf16>, vector<32x32xbf16>, vector<8x32xf32> -> vector<8x32xf32>
    %cst_64 = arith.constant dense<0.000000e+00> : vector<8x32xf32>
    %119 = tpu.matmul %87, %4, %cst_64 {dimension_numbers = #tpu.dot_dimension_numbers<[1], [0], [0], [1], [0, 0, 1, 1], [], []>} : vector<8x32xbf16>, vector<32x32xbf16>, vector<8x32xf32> -> vector<8x32xf32>
    %cst_65 = arith.constant dense<0.000000e+00> : vector<8x32xf32>
    %120 = tpu.matmul %87, %5, %cst_65 {dimension_numbers = #tpu.dot_dimension_numbers<[1], [0], [0], [1], [0, 0, 1, 1], [], []>} : vector<8x32xbf16>, vector<32x32xbf16>, vector<8x32xf32> -> vector<8x32xf32>
    %121 = arith.addf %103, %118 : vector<8x32xf32>
    %122 = arith.negf %121 : vector<8x32xf32>
    %123 = math.exp %122 : vector<8x32xf32>
    %cst_66 = arith.constant 1.000000e+00 : f32
    %124 = vector.broadcast %cst_66 : f32 to vector<8x32xf32>
    %125 = arith.addf %124, %123 : vector<8x32xf32>
    %126 = arith.divf %124, %125 : vector<8x32xf32>
    %127 = arith.addf %110, %119 : vector<8x32xf32>
    %128 = arith.negf %127 : vector<8x32xf32>
    %129 = math.exp %128 : vector<8x32xf32>
    %cst_67 = arith.constant 1.000000e+00 : f32
    %130 = vector.broadcast %cst_67 : f32 to vector<8x32xf32>
    %131 = arith.addf %130, %129 : vector<8x32xf32>
    %132 = arith.divf %130, %131 : vector<8x32xf32>
    %133 = arith.mulf %126, %120 : vector<8x32xf32>
    %134 = arith.addf %117, %133 : vector<8x32xf32>
    %135 = math.tanh %134 : vector<8x32xf32>
    %cst_68 = arith.constant 1.000000e+00 : f32
    %136 = vector.broadcast %cst_68 : f32 to vector<8x32xf32>
    %137 = arith.subf %136, %132 : vector<8x32xf32>
    %138 = arith.mulf %137, %135 : vector<8x32xf32>
    %139 = arith.mulf %132, %79 : vector<8x32xf32>
    %140 = arith.addf %138, %139 : vector<8x32xf32>
    %141 = vector.broadcast %86 : vector<8x1xf32> to vector<8x32xf32>
    %142 = arith.mulf %141, %140 : vector<8x32xf32>
    %cst_69 = arith.constant 1.000000e+00 : f32
    %143 = vector.broadcast %cst_69 : f32 to vector<8x1xf32>
    %144 = arith.subf %143, %86 : vector<8x1xf32>
    %145 = vector.broadcast %144 : vector<8x1xf32> to vector<8x32xf32>
    %146 = arith.mulf %145, %79 : vector<8x32xf32>
    %147 = arith.addf %142, %146 : vector<8x32xf32>
    %148 = arith.index_cast %c2_i32 : i32 to index
    %c0_70 = arith.constant 0 : index
    %c0_71 = arith.constant 0 : index
    %149 = vector.load %arg15[%148, %c0_70, %c0_71] : memref<12x8x32xf32, #tpu.memory_space<vmem>>, vector<1x8x32xf32>
    %150 = vector.shape_cast %149 : vector<1x8x32xf32> to vector<8x32xf32>
    %151 = vector.shape_cast %147 : vector<8x32xf32> to vector<1x8x32xf32>
    tpu.vector_store %arg15[%148, %c0_70, %c0_71], %151 {strides = array<i32>} : memref<12x8x32xf32, #tpu.memory_space<vmem>>, vector<1x8x32xf32>,
    %c3_i32 = arith.constant 3 : i32
    %152 = arith.index_cast %c3_i32 : i32 to index
    %c0_72 = arith.constant 0 : index
    %c0_73 = arith.constant 0 : index
    %153 = vector.load %arg3[%152, %c0_72, %c0_73] : memref<12x8x1xf32, #tpu.memory_space<vmem>>, vector<1x8x1xf32>
    %154 = vector.shape_cast %153 : vector<1x8x1xf32> to vector<8x1xf32>
    %155 = arith.truncf %147 : vector<8x32xf32> to vector<8x32xbf16>
    %cst_74 = arith.constant dense<0.000000e+00> : vector<8x8xf32>
    %156 = tpu.matmul %155, %9, %cst_74 {dimension_numbers = #tpu.dot_dimension_numbers<[1], [0], [0], [1], [0, 0, 1, 1], [], []>} : vector<8x32xbf16>, vector<32x8xbf16>, vector<8x8xf32> -> vector<8x8xf32>
    %157 = math.exp %156 : vector<8x8xf32>
    %cst_75 = arith.constant dense<0.000000e+00> : vector<8xf32>
    %158 = vector.multi_reduction <add>, %157, %cst_75 [1] : vector<8x8xf32> to vector<8xf32>
    %159 = vector.shape_cast %158 : vector<8xf32> to vector<8x1xf32>
    %160 = vector.broadcast %159 : vector<8x1xf32> to vector<8x8xf32>
    %161 = arith.divf %157, %160 : vector<8x8xf32>
    %162 = arith.truncf %161 : vector<8x8xf32> to vector<8x8xbf16>
    %cst_76 = arith.constant dense<0.000000e+00> : vector<8x16xf32>
    %163 = tpu.matmul %162, %10, %cst_76 {dimension_numbers = #tpu.dot_dimension_numbers<[1], [0], [0], [1], [0, 0, 1, 1], [], []>} : vector<8x8xbf16>, vector<8x16xbf16>, vector<8x16xf32> -> vector<8x16xf32>
    %164 = arith.truncf %163 : vector<8x16xf32> to vector<8x16xbf16>
    %165 = arith.index_cast %c3_i32 : i32 to index
    %c0_77 = arith.constant 0 : index
    %c0_78 = arith.constant 0 : index
    %166 = vector.load %arg0[%165, %c0_77, %c0_78] : memref<12x8x32xf32, #tpu.memory_space<vmem>>, vector<1x8x32xf32>
    %167 = vector.shape_cast %166 : vector<1x8x32xf32> to vector<8x32xf32>
    %cst_79 = arith.constant dense<0.000000e+00> : vector<8x32xf32>
    %168 = tpu.matmul %164, %0, %cst_79 {dimension_numbers = #tpu.dot_dimension_numbers<[1], [0], [0], [1], [0, 0, 1, 1], [], []>} : vector<8x16xbf16>, vector<16x32xbf16>, vector<8x32xf32> -> vector<8x32xf32>
    %169 = arith.addf %167, %168 : vector<8x32xf32>
    %170 = vector.broadcast %6 : vector<1x32xf32> to vector<8x32xf32>
    %171 = arith.addf %169, %170 : vector<8x32xf32>
    %172 = arith.index_cast %c3_i32 : i32 to index
    %c0_80 = arith.constant 0 : index
    %c0_81 = arith.constant 0 : index
    %173 = vector.load %arg1[%172, %c0_80, %c0_81] : memref<12x8x32xf32, #tpu.memory_space<vmem>>, vector<1x8x32xf32>
    %174 = vector.shape_cast %173 : vector<1x8x32xf32> to vector<8x32xf32>
    %cst_82 = arith.constant dense<0.000000e+00> : vector<8x32xf32>
    %175 = tpu.matmul %164, %1, %cst_82 {dimension_numbers = #tpu.dot_dimension_numbers<[1], [0], [0], [1], [0, 0, 1, 1], [], []>} : vector<8x16xbf16>, vector<16x32xbf16>, vector<8x32xf32> -> vector<8x32xf32>
    %176 = arith.addf %174, %175 : vector<8x32xf32>
    %177 = vector.broadcast %7 : vector<1x32xf32> to vector<8x32xf32>
    %178 = arith.addf %176, %177 : vector<8x32xf32>
    %179 = arith.index_cast %c3_i32 : i32 to index
    %c0_83 = arith.constant 0 : index
    %c0_84 = arith.constant 0 : index
    %180 = vector.load %arg2[%179, %c0_83, %c0_84] : memref<12x8x32xf32, #tpu.memory_space<vmem>>, vector<1x8x32xf32>
    %181 = vector.shape_cast %180 : vector<1x8x32xf32> to vector<8x32xf32>
    %cst_85 = arith.constant dense<0.000000e+00> : vector<8x32xf32>
    %182 = tpu.matmul %164, %2, %cst_85 {dimension_numbers = #tpu.dot_dimension_numbers<[1], [0], [0], [1], [0, 0, 1, 1], [], []>} : vector<8x16xbf16>, vector<16x32xbf16>, vector<8x32xf32> -> vector<8x32xf32>
    %183 = arith.addf %181, %182 : vector<8x32xf32>
    %184 = vector.broadcast %8 : vector<1x32xf32> to vector<8x32xf32>
    %185 = arith.addf %183, %184 : vector<8x32xf32>
    %cst_86 = arith.constant dense<0.000000e+00> : vector<8x32xf32>
    %186 = tpu.matmul %155, %3, %cst_86 {dimension_numbers = #tpu.dot_dimension_numbers<[1], [0], [0], [1], [0, 0, 1, 1], [], []>} : vector<8x32xbf16>, vector<32x32xbf16>, vector<8x32xf32> -> vector<8x32xf32>
    %cst_87 = arith.constant dense<0.000000e+00> : vector<8x32xf32>
    %187 = tpu.matmul %155, %4, %cst_87 {dimension_numbers = #tpu.dot_dimension_numbers<[1], [0], [0], [1], [0, 0, 1, 1], [], []>} : vector<8x32xbf16>, vector<32x32xbf16>, vector<8x32xf32> -> vector<8x32xf32>
    %cst_88 = arith.constant dense<0.000000e+00> : vector<8x32xf32>
    %188 = tpu.matmul %155, %5, %cst_88 {dimension_numbers = #tpu.dot_dimension_numbers<[1], [0], [0], [1], [0, 0, 1, 1], [], []>} : vector<8x32xbf16>, vector<32x32xbf16>, vector<8x32xf32> -> vector<8x32xf32>
    %189 = arith.addf %171, %186 : vector<8x32xf32>
    %190 = arith.negf %189 : vector<8x32xf32>
    %191 = math.exp %190 : vector<8x32xf32>
    %cst_89 = arith.constant 1.000000e+00 : f32
    %192 = vector.broadcast %cst_89 : f32 to vector<8x32xf32>
    %193 = arith.addf %192, %191 : vector<8x32xf32>
    %194 = arith.divf %192, %193 : vector<8x32xf32>
    %195 = arith.addf %178, %187 : vector<8x32xf32>
    %196 = arith.negf %195 : vector<8x32xf32>
    %197 = math.exp %196 : vector<8x32xf32>
    %cst_90 = arith.constant 1.000000e+00 : f32
    %198 = vector.broadcast %cst_90 : f32 to vector<8x32xf32>
    %199 = arith.addf %198, %197 : vector<8x32xf32>
    %200 = arith.divf %198, %199 : vector<8x32xf32>
    %201 = arith.mulf %194, %188 : vector<8x32xf32>
    %202 = arith.addf %185, %201 : vector<8x32xf32>
    %203 = math.tanh %202 : vector<8x32xf32>
    %cst_91 = arith.constant 1.000000e+00 : f32
    %204 = vector.broadcast %cst_91 : f32 to vector<8x32xf32>
    %205 = arith.subf %204, %200 : vector<8x32xf32>
    %206 = arith.mulf %205, %203 : vector<8x32xf32>
    %207 = arith.mulf %200, %147 : vector<8x32xf32>
    %208 = arith.addf %206, %207 : vector<8x32xf32>
    %209 = vector.broadcast %154 : vector<8x1xf32> to vector<8x32xf32>
    %210 = arith.mulf %209, %208 : vector<8x32xf32>
    %cst_92 = arith.constant 1.000000e+00 : f32
    %211 = vector.broadcast %cst_92 : f32 to vector<8x1xf32>
    %212 = arith.subf %211, %154 : vector<8x1xf32>
    %213 = vector.broadcast %212 : vector<8x1xf32> to vector<8x32xf32>
    %214 = arith.mulf %213, %147 : vector<8x32xf32>
    %215 = arith.addf %210, %214 : vector<8x32xf32>
    %216 = arith.index_cast %c3_i32 : i32 to index
    %c0_93 = arith.constant 0 : index
    %c0_94 = arith.constant 0 : index
    %217 = vector.load %arg15[%216, %c0_93, %c0_94] : memref<12x8x32xf32, #tpu.memory_space<vmem>>, vector<1x8x32xf32>
    %218 = vector.shape_cast %217 : vector<1x8x32xf32> to vector<8x32xf32>
    %219 = vector.shape_cast %215 : vector<8x32xf32> to vector<1x8x32xf32>
    tpu.vector_store %arg15[%216, %c0_93, %c0_94], %219 {strides = array<i32>} : memref<12x8x32xf32, #tpu.memory_space<vmem>>, vector<1x8x32xf32>,
    %c4_i32 = arith.constant 4 : i32
    %220 = arith.index_cast %c4_i32 : i32 to index
    %c0_95 = arith.constant 0 : index
    %c0_96 = arith.constant 0 : index
    %221 = vector.load %arg3[%220, %c0_95, %c0_96] : memref<12x8x1xf32, #tpu.memory_space<vmem>>, vector<1x8x1xf32>
    %222 = vector.shape_cast %221 : vector<1x8x1xf32> to vector<8x1xf32>
    %223 = arith.truncf %215 : vector<8x32xf32> to vector<8x32xbf16>
    %cst_97 = arith.constant dense<0.000000e+00> : vector<8x8xf32>
    %224 = tpu.matmul %223, %9, %cst_97 {dimension_numbers = #tpu.dot_dimension_numbers<[1], [0], [0], [1], [0, 0, 1, 1], [], []>} : vector<8x32xbf16>, vector<32x8xbf16>, vector<8x8xf32> -> vector<8x8xf32>
    %225 = math.exp %224 : vector<8x8xf32>
    %cst_98 = arith.constant dense<0.000000e+00> : vector<8xf32>
    %226 = vector.multi_reduction <add>, %225, %cst_98 [1] : vector<8x8xf32> to vector<8xf32>
    %227 = vector.shape_cast %226 : vector<8xf32> to vector<8x1xf32>
    %228 = vector.broadcast %227 : vector<8x1xf32> to vector<8x8xf32>
    %229 = arith.divf %225, %228 : vector<8x8xf32>
    %230 = arith.truncf %229 : vector<8x8xf32> to vector<8x8xbf16>
    %cst_99 = arith.constant dense<0.000000e+00> : vector<8x16xf32>
    %231 = tpu.matmul %230, %10, %cst_99 {dimension_numbers = #tpu.dot_dimension_numbers<[1], [0], [0], [1], [0, 0, 1, 1], [], []>} : vector<8x8xbf16>, vector<8x16xbf16>, vector<8x16xf32> -> vector<8x16xf32>
    %232 = arith.truncf %231 : vector<8x16xf32> to vector<8x16xbf16>
    %233 = arith.index_cast %c4_i32 : i32 to index
    %c0_100 = arith.constant 0 : index
    %c0_101 = arith.constant 0 : index
    %234 = vector.load %arg0[%233, %c0_100, %c0_101] : memref<12x8x32xf32, #tpu.memory_space<vmem>>, vector<1x8x32xf32>
    %235 = vector.shape_cast %234 : vector<1x8x32xf32> to vector<8x32xf32>
    %cst_102 = arith.constant dense<0.000000e+00> : vector<8x32xf32>
    %236 = tpu.matmul %232, %0, %cst_102 {dimension_numbers = #tpu.dot_dimension_numbers<[1], [0], [0], [1], [0, 0, 1, 1], [], []>} : vector<8x16xbf16>, vector<16x32xbf16>, vector<8x32xf32> -> vector<8x32xf32>
    %237 = arith.addf %235, %236 : vector<8x32xf32>
    %238 = vector.broadcast %6 : vector<1x32xf32> to vector<8x32xf32>
    %239 = arith.addf %237, %238 : vector<8x32xf32>
    %240 = arith.index_cast %c4_i32 : i32 to index
    %c0_103 = arith.constant 0 : index
    %c0_104 = arith.constant 0 : index
    %241 = vector.load %arg1[%240, %c0_103, %c0_104] : memref<12x8x32xf32, #tpu.memory_space<vmem>>, vector<1x8x32xf32>
    %242 = vector.shape_cast %241 : vector<1x8x32xf32> to vector<8x32xf32>
    %cst_105 = arith.constant dense<0.000000e+00> : vector<8x32xf32>
    %243 = tpu.matmul %232, %1, %cst_105 {dimension_numbers = #tpu.dot_dimension_numbers<[1], [0], [0], [1], [0, 0, 1, 1], [], []>} : vector<8x16xbf16>, vector<16x32xbf16>, vector<8x32xf32> -> vector<8x32xf32>
    %244 = arith.addf %242, %243 : vector<8x32xf32>
    %245 = vector.broadcast %7 : vector<1x32xf32> to vector<8x32xf32>
    %246 = arith.addf %244, %245 : vector<8x32xf32>
    %247 = arith.index_cast %c4_i32 : i32 to index
    %c0_106 = arith.constant 0 : index
    %c0_107 = arith.constant 0 : index
    %248 = vector.load %arg2[%247, %c0_106, %c0_107] : memref<12x8x32xf32, #tpu.memory_space<vmem>>, vector<1x8x32xf32>
    %249 = vector.shape_cast %248 : vector<1x8x32xf32> to vector<8x32xf32>
    %cst_108 = arith.constant dense<0.000000e+00> : vector<8x32xf32>
    %250 = tpu.matmul %232, %2, %cst_108 {dimension_numbers = #tpu.dot_dimension_numbers<[1], [0], [0], [1], [0, 0, 1, 1], [], []>} : vector<8x16xbf16>, vector<16x32xbf16>, vector<8x32xf32> -> vector<8x32xf32>
    %251 = arith.addf %249, %250 : vector<8x32xf32>
    %252 = vector.broadcast %8 : vector<1x32xf32> to vector<8x32xf32>
    %253 = arith.addf %251, %252 : vector<8x32xf32>
    %cst_109 = arith.constant dense<0.000000e+00> : vector<8x32xf32>
    %254 = tpu.matmul %223, %3, %cst_109 {dimension_numbers = #tpu.dot_dimension_numbers<[1], [0], [0], [1], [0, 0, 1, 1], [], []>} : vector<8x32xbf16>, vector<32x32xbf16>, vector<8x32xf32> -> vector<8x32xf32>
    %cst_110 = arith.constant dense<0.000000e+00> : vector<8x32xf32>
    %255 = tpu.matmul %223, %4, %cst_110 {dimension_numbers = #tpu.dot_dimension_numbers<[1], [0], [0], [1], [0, 0, 1, 1], [], []>} : vector<8x32xbf16>, vector<32x32xbf16>, vector<8x32xf32> -> vector<8x32xf32>
    %cst_111 = arith.constant dense<0.000000e+00> : vector<8x32xf32>
    %256 = tpu.matmul %223, %5, %cst_111 {dimension_numbers = #tpu.dot_dimension_numbers<[1], [0], [0], [1], [0, 0, 1, 1], [], []>} : vector<8x32xbf16>, vector<32x32xbf16>, vector<8x32xf32> -> vector<8x32xf32>
    %257 = arith.addf %239, %254 : vector<8x32xf32>
    %258 = arith.negf %257 : vector<8x32xf32>
    %259 = math.exp %258 : vector<8x32xf32>
    %cst_112 = arith.constant 1.000000e+00 : f32
    %260 = vector.broadcast %cst_112 : f32 to vector<8x32xf32>
    %261 = arith.addf %260, %259 : vector<8x32xf32>
    %262 = arith.divf %260, %261 : vector<8x32xf32>
    %263 = arith.addf %246, %255 : vector<8x32xf32>
    %264 = arith.negf %263 : vector<8x32xf32>
    %265 = math.exp %264 : vector<8x32xf32>
    %cst_113 = arith.constant 1.000000e+00 : f32
    %266 = vector.broadcast %cst_113 : f32 to vector<8x32xf32>
    %267 = arith.addf %266, %265 : vector<8x32xf32>
    %268 = arith.divf %266, %267 : vector<8x32xf32>
    %269 = arith.mulf %262, %256 : vector<8x32xf32>
    %270 = arith.addf %253, %269 : vector<8x32xf32>
    %271 = math.tanh %270 : vector<8x32xf32>
    %cst_114 = arith.constant 1.000000e+00 : f32
    %272 = vector.broadcast %cst_114 : f32 to vector<8x32xf32>
    %273 = arith.subf %272, %268 : vector<8x32xf32>
    %274 = arith.mulf %273, %271 : vector<8x32xf32>
    %275 = arith.mulf %268, %215 : vector<8x32xf32>
    %276 = arith.addf %274, %275 : vector<8x32xf32>
    %277 = vector.broadcast %222 : vector<8x1xf32> to vector<8x32xf32>
    %278 = arith.mulf %277, %276 : vector<8x32xf32>
    %cst_115 = arith.constant 1.000000e+00 : f32
    %279 = vector.broadcast %cst_115 : f32 to vector<8x1xf32>
    %280 = arith.subf %279, %222 : vector<8x1xf32>
    %281 = vector.broadcast %280 : vector<8x1xf32> to vector<8x32xf32>
    %282 = arith.mulf %281, %215 : vector<8x32xf32>
    %283 = arith.addf %278, %282 : vector<8x32xf32>
    %284 = arith.index_cast %c4_i32 : i32 to index
    %c0_116 = arith.constant 0 : index
    %c0_117 = arith.constant 0 : index
    %285 = vector.load %arg15[%284, %c0_116, %c0_117] : memref<12x8x32xf32, #tpu.memory_space<vmem>>, vector<1x8x32xf32>
    %286 = vector.shape_cast %285 : vector<1x8x32xf32> to vector<8x32xf32>
    %287 = vector.shape_cast %283 : vector<8x32xf32> to vector<1x8x32xf32>
    tpu.vector_store %arg15[%284, %c0_116, %c0_117], %287 {strides = array<i32>} : memref<12x8x32xf32, #tpu.memory_space<vmem>>, vector<1x8x32xf32>,
    %c5_i32 = arith.constant 5 : i32
    %288 = arith.index_cast %c5_i32 : i32 to index
    %c0_118 = arith.constant 0 : index
    %c0_119 = arith.constant 0 : index
    %289 = vector.load %arg3[%288, %c0_118, %c0_119] : memref<12x8x1xf32, #tpu.memory_space<vmem>>, vector<1x8x1xf32>
    %290 = vector.shape_cast %289 : vector<1x8x1xf32> to vector<8x1xf32>
    %291 = arith.truncf %283 : vector<8x32xf32> to vector<8x32xbf16>
    %cst_120 = arith.constant dense<0.000000e+00> : vector<8x8xf32>
    %292 = tpu.matmul %291, %9, %cst_120 {dimension_numbers = #tpu.dot_dimension_numbers<[1], [0], [0], [1], [0, 0, 1, 1], [], []>} : vector<8x32xbf16>, vector<32x8xbf16>, vector<8x8xf32> -> vector<8x8xf32>
    %293 = math.exp %292 : vector<8x8xf32>
    %cst_121 = arith.constant dense<0.000000e+00> : vector<8xf32>
    %294 = vector.multi_reduction <add>, %293, %cst_121 [1] : vector<8x8xf32> to vector<8xf32>
    %295 = vector.shape_cast %294 : vector<8xf32> to vector<8x1xf32>
    %296 = vector.broadcast %295 : vector<8x1xf32> to vector<8x8xf32>
    %297 = arith.divf %293, %296 : vector<8x8xf32>
    %298 = arith.truncf %297 : vector<8x8xf32> to vector<8x8xbf16>
    %cst_122 = arith.constant dense<0.000000e+00> : vector<8x16xf32>
    %299 = tpu.matmul %298, %10, %cst_122 {dimension_numbers = #tpu.dot_dimension_numbers<[1], [0], [0], [1], [0, 0, 1, 1], [], []>} : vector<8x8xbf16>, vector<8x16xbf16>, vector<8x16xf32> -> vector<8x16xf32>
    %300 = arith.truncf %299 : vector<8x16xf32> to vector<8x16xbf16>
    %301 = arith.index_cast %c5_i32 : i32 to index
    %c0_123 = arith.constant 0 : index
    %c0_124 = arith.constant 0 : index
    %302 = vector.load %arg0[%301, %c0_123, %c0_124] : memref<12x8x32xf32, #tpu.memory_space<vmem>>, vector<1x8x32xf32>
    %303 = vector.shape_cast %302 : vector<1x8x32xf32> to vector<8x32xf32>
    %cst_125 = arith.constant dense<0.000000e+00> : vector<8x32xf32>
    %304 = tpu.matmul %300, %0, %cst_125 {dimension_numbers = #tpu.dot_dimension_numbers<[1], [0], [0], [1], [0, 0, 1, 1], [], []>} : vector<8x16xbf16>, vector<16x32xbf16>, vector<8x32xf32> -> vector<8x32xf32>
    %305 = arith.addf %303, %304 : vector<8x32xf32>
    %306 = vector.broadcast %6 : vector<1x32xf32> to vector<8x32xf32>
    %307 = arith.addf %305, %306 : vector<8x32xf32>
    %308 = arith.index_cast %c5_i32 : i32 to index
    %c0_126 = arith.constant 0 : index
    %c0_127 = arith.constant 0 : index
    %309 = vector.load %arg1[%308, %c0_126, %c0_127] : memref<12x8x32xf32, #tpu.memory_space<vmem>>, vector<1x8x32xf32>
    %310 = vector.shape_cast %309 : vector<1x8x32xf32> to vector<8x32xf32>
    %cst_128 = arith.constant dense<0.000000e+00> : vector<8x32xf32>
    %311 = tpu.matmul %300, %1, %cst_128 {dimension_numbers = #tpu.dot_dimension_numbers<[1], [0], [0], [1], [0, 0, 1, 1], [], []>} : vector<8x16xbf16>, vector<16x32xbf16>, vector<8x32xf32> -> vector<8x32xf32>
    %312 = arith.addf %310, %311 : vector<8x32xf32>
    %313 = vector.broadcast %7 : vector<1x32xf32> to vector<8x32xf32>
    %314 = arith.addf %312, %313 : vector<8x32xf32>
    %315 = arith.index_cast %c5_i32 : i32 to index
    %c0_129 = arith.constant 0 : index
    %c0_130 = arith.constant 0 : index
    %316 = vector.load %arg2[%315, %c0_129, %c0_130] : memref<12x8x32xf32, #tpu.memory_space<vmem>>, vector<1x8x32xf32>
    %317 = vector.shape_cast %316 : vector<1x8x32xf32> to vector<8x32xf32>
    %cst_131 = arith.constant dense<0.000000e+00> : vector<8x32xf32>
    %318 = tpu.matmul %300, %2, %cst_131 {dimension_numbers = #tpu.dot_dimension_numbers<[1], [0], [0], [1], [0, 0, 1, 1], [], []>} : vector<8x16xbf16>, vector<16x32xbf16>, vector<8x32xf32> -> vector<8x32xf32>
    %319 = arith.addf %317, %318 : vector<8x32xf32>
    %320 = vector.broadcast %8 : vector<1x32xf32> to vector<8x32xf32>
    %321 = arith.addf %319, %320 : vector<8x32xf32>
    %cst_132 = arith.constant dense<0.000000e+00> : vector<8x32xf32>
    %322 = tpu.matmul %291, %3, %cst_132 {dimension_numbers = #tpu.dot_dimension_numbers<[1], [0], [0], [1], [0, 0, 1, 1], [], []>} : vector<8x32xbf16>, vector<32x32xbf16>, vector<8x32xf32> -> vector<8x32xf32>
    %cst_133 = arith.constant dense<0.000000e+00> : vector<8x32xf32>
    %323 = tpu.matmul %291, %4, %cst_133 {dimension_numbers = #tpu.dot_dimension_numbers<[1], [0], [0], [1], [0, 0, 1, 1], [], []>} : vector<8x32xbf16>, vector<32x32xbf16>, vector<8x32xf32> -> vector<8x32xf32>
    %cst_134 = arith.constant dense<0.000000e+00> : vector<8x32xf32>
    %324 = tpu.matmul %291, %5, %cst_134 {dimension_numbers = #tpu.dot_dimension_numbers<[1], [0], [0], [1], [0, 0, 1, 1], [], []>} : vector<8x32xbf16>, vector<32x32xbf16>, vector<8x32xf32> -> vector<8x32xf32>
    %325 = arith.addf %307, %322 : vector<8x32xf32>
    %326 = arith.negf %325 : vector<8x32xf32>
    %327 = math.exp %326 : vector<8x32xf32>
    %cst_135 = arith.constant 1.000000e+00 : f32
    %328 = vector.broadcast %cst_135 : f32 to vector<8x32xf32>
    %329 = arith.addf %328, %327 : vector<8x32xf32>
    %330 = arith.divf %328, %329 : vector<8x32xf32>
    %331 = arith.addf %314, %323 : vector<8x32xf32>
    %332 = arith.negf %331 : vector<8x32xf32>
    %333 = math.exp %332 : vector<8x32xf32>
    %cst_136 = arith.constant 1.000000e+00 : f32
    %334 = vector.broadcast %cst_136 : f32 to vector<8x32xf32>
    %335 = arith.addf %334, %333 : vector<8x32xf32>
    %336 = arith.divf %334, %335 : vector<8x32xf32>
    %337 = arith.mulf %330, %324 : vector<8x32xf32>
    %338 = arith.addf %321, %337 : vector<8x32xf32>
    %339 = math.tanh %338 : vector<8x32xf32>
    %cst_137 = arith.constant 1.000000e+00 : f32
    %340 = vector.broadcast %cst_137 : f32 to vector<8x32xf32>
    %341 = arith.subf %340, %336 : vector<8x32xf32>
    %342 = arith.mulf %341, %339 : vector<8x32xf32>
    %343 = arith.mulf %336, %283 : vector<8x32xf32>
    %344 = arith.addf %342, %343 : vector<8x32xf32>
    %345 = vector.broadcast %290 : vector<8x1xf32> to vector<8x32xf32>
    %346 = arith.mulf %345, %344 : vector<8x32xf32>
    %cst_138 = arith.constant 1.000000e+00 : f32
    %347 = vector.broadcast %cst_138 : f32 to vector<8x1xf32>
    %348 = arith.subf %347, %290 : vector<8x1xf32>
    %349 = vector.broadcast %348 : vector<8x1xf32> to vector<8x32xf32>
    %350 = arith.mulf %349, %283 : vector<8x32xf32>
    %351 = arith.addf %346, %350 : vector<8x32xf32>
    %352 = arith.index_cast %c5_i32 : i32 to index
    %c0_139 = arith.constant 0 : index
    %c0_140 = arith.constant 0 : index
    %353 = vector.load %arg15[%352, %c0_139, %c0_140] : memref<12x8x32xf32, #tpu.memory_space<vmem>>, vector<1x8x32xf32>
    %354 = vector.shape_cast %353 : vector<1x8x32xf32> to vector<8x32xf32>
    %355 = vector.shape_cast %351 : vector<8x32xf32> to vector<1x8x32xf32>
    tpu.vector_store %arg15[%352, %c0_139, %c0_140], %355 {strides = array<i32>} : memref<12x8x32xf32, #tpu.memory_space<vmem>>, vector<1x8x32xf32>,
    %c6_i32 = arith.constant 6 : i32
    %356 = arith.index_cast %c6_i32 : i32 to index
    %c0_141 = arith.constant 0 : index
    %c0_142 = arith.constant 0 : index
    %357 = vector.load %arg3[%356, %c0_141, %c0_142] : memref<12x8x1xf32, #tpu.memory_space<vmem>>, vector<1x8x1xf32>
    %358 = vector.shape_cast %357 : vector<1x8x1xf32> to vector<8x1xf32>
    %359 = arith.truncf %351 : vector<8x32xf32> to vector<8x32xbf16>
    %cst_143 = arith.constant dense<0.000000e+00> : vector<8x8xf32>
    %360 = tpu.matmul %359, %9, %cst_143 {dimension_numbers = #tpu.dot_dimension_numbers<[1], [0], [0], [1], [0, 0, 1, 1], [], []>} : vector<8x32xbf16>, vector<32x8xbf16>, vector<8x8xf32> -> vector<8x8xf32>
    %361 = math.exp %360 : vector<8x8xf32>
    %cst_144 = arith.constant dense<0.000000e+00> : vector<8xf32>
    %362 = vector.multi_reduction <add>, %361, %cst_144 [1] : vector<8x8xf32> to vector<8xf32>
    %363 = vector.shape_cast %362 : vector<8xf32> to vector<8x1xf32>
    %364 = vector.broadcast %363 : vector<8x1xf32> to vector<8x8xf32>
    %365 = arith.divf %361, %364 : vector<8x8xf32>
    %366 = arith.truncf %365 : vector<8x8xf32> to vector<8x8xbf16>
    %cst_145 = arith.constant dense<0.000000e+00> : vector<8x16xf32>
    %367 = tpu.matmul %366, %10, %cst_145 {dimension_numbers = #tpu.dot_dimension_numbers<[1], [0], [0], [1], [0, 0, 1, 1], [], []>} : vector<8x8xbf16>, vector<8x16xbf16>, vector<8x16xf32> -> vector<8x16xf32>
    %368 = arith.truncf %367 : vector<8x16xf32> to vector<8x16xbf16>
    %369 = arith.index_cast %c6_i32 : i32 to index
    %c0_146 = arith.constant 0 : index
    %c0_147 = arith.constant 0 : index
    %370 = vector.load %arg0[%369, %c0_146, %c0_147] : memref<12x8x32xf32, #tpu.memory_space<vmem>>, vector<1x8x32xf32>
    %371 = vector.shape_cast %370 : vector<1x8x32xf32> to vector<8x32xf32>
    %cst_148 = arith.constant dense<0.000000e+00> : vector<8x32xf32>
    %372 = tpu.matmul %368, %0, %cst_148 {dimension_numbers = #tpu.dot_dimension_numbers<[1], [0], [0], [1], [0, 0, 1, 1], [], []>} : vector<8x16xbf16>, vector<16x32xbf16>, vector<8x32xf32> -> vector<8x32xf32>
    %373 = arith.addf %371, %372 : vector<8x32xf32>
    %374 = vector.broadcast %6 : vector<1x32xf32> to vector<8x32xf32>
    %375 = arith.addf %373, %374 : vector<8x32xf32>
    %376 = arith.index_cast %c6_i32 : i32 to index
    %c0_149 = arith.constant 0 : index
    %c0_150 = arith.constant 0 : index
    %377 = vector.load %arg1[%376, %c0_149, %c0_150] : memref<12x8x32xf32, #tpu.memory_space<vmem>>, vector<1x8x32xf32>
    %378 = vector.shape_cast %377 : vector<1x8x32xf32> to vector<8x32xf32>
    %cst_151 = arith.constant dense<0.000000e+00> : vector<8x32xf32>
    %379 = tpu.matmul %368, %1, %cst_151 {dimension_numbers = #tpu.dot_dimension_numbers<[1], [0], [0], [1], [0, 0, 1, 1], [], []>} : vector<8x16xbf16>, vector<16x32xbf16>, vector<8x32xf32> -> vector<8x32xf32>
    %380 = arith.addf %378, %379 : vector<8x32xf32>
    %381 = vector.broadcast %7 : vector<1x32xf32> to vector<8x32xf32>
    %382 = arith.addf %380, %381 : vector<8x32xf32>
    %383 = arith.index_cast %c6_i32 : i32 to index
    %c0_152 = arith.constant 0 : index
    %c0_153 = arith.constant 0 : index
    %384 = vector.load %arg2[%383, %c0_152, %c0_153] : memref<12x8x32xf32, #tpu.memory_space<vmem>>, vector<1x8x32xf32>
    %385 = vector.shape_cast %384 : vector<1x8x32xf32> to vector<8x32xf32>
    %cst_154 = arith.constant dense<0.000000e+00> : vector<8x32xf32>
    %386 = tpu.matmul %368, %2, %cst_154 {dimension_numbers = #tpu.dot_dimension_numbers<[1], [0], [0], [1], [0, 0, 1, 1], [], []>} : vector<8x16xbf16>, vector<16x32xbf16>, vector<8x32xf32> -> vector<8x32xf32>
    %387 = arith.addf %385, %386 : vector<8x32xf32>
    %388 = vector.broadcast %8 : vector<1x32xf32> to vector<8x32xf32>
    %389 = arith.addf %387, %388 : vector<8x32xf32>
    %cst_155 = arith.constant dense<0.000000e+00> : vector<8x32xf32>
    %390 = tpu.matmul %359, %3, %cst_155 {dimension_numbers = #tpu.dot_dimension_numbers<[1], [0], [0], [1], [0, 0, 1, 1], [], []>} : vector<8x32xbf16>, vector<32x32xbf16>, vector<8x32xf32> -> vector<8x32xf32>
    %cst_156 = arith.constant dense<0.000000e+00> : vector<8x32xf32>
    %391 = tpu.matmul %359, %4, %cst_156 {dimension_numbers = #tpu.dot_dimension_numbers<[1], [0], [0], [1], [0, 0, 1, 1], [], []>} : vector<8x32xbf16>, vector<32x32xbf16>, vector<8x32xf32> -> vector<8x32xf32>
    %cst_157 = arith.constant dense<0.000000e+00> : vector<8x32xf32>
    %392 = tpu.matmul %359, %5, %cst_157 {dimension_numbers = #tpu.dot_dimension_numbers<[1], [0], [0], [1], [0, 0, 1, 1], [], []>} : vector<8x32xbf16>, vector<32x32xbf16>, vector<8x32xf32> -> vector<8x32xf32>
    %393 = arith.addf %375, %390 : vector<8x32xf32>
    %394 = arith.negf %393 : vector<8x32xf32>
    %395 = math.exp %394 : vector<8x32xf32>
    %cst_158 = arith.constant 1.000000e+00 : f32
    %396 = vector.broadcast %cst_158 : f32 to vector<8x32xf32>
    %397 = arith.addf %396, %395 : vector<8x32xf32>
    %398 = arith.divf %396, %397 : vector<8x32xf32>
    %399 = arith.addf %382, %391 : vector<8x32xf32>
    %400 = arith.negf %399 : vector<8x32xf32>
    %401 = math.exp %400 : vector<8x32xf32>
    %cst_159 = arith.constant 1.000000e+00 : f32
    %402 = vector.broadcast %cst_159 : f32 to vector<8x32xf32>
    %403 = arith.addf %402, %401 : vector<8x32xf32>
    %404 = arith.divf %402, %403 : vector<8x32xf32>
    %405 = arith.mulf %398, %392 : vector<8x32xf32>
    %406 = arith.addf %389, %405 : vector<8x32xf32>
    %407 = math.tanh %406 : vector<8x32xf32>
    %cst_160 = arith.constant 1.000000e+00 : f32
    %408 = vector.broadcast %cst_160 : f32 to vector<8x32xf32>
    %409 = arith.subf %408, %404 : vector<8x32xf32>
    %410 = arith.mulf %409, %407 : vector<8x32xf32>
    %411 = arith.mulf %404, %351 : vector<8x32xf32>
    %412 = arith.addf %410, %411 : vector<8x32xf32>
    %413 = vector.broadcast %358 : vector<8x1xf32> to vector<8x32xf32>
    %414 = arith.mulf %413, %412 : vector<8x32xf32>
    %cst_161 = arith.constant 1.000000e+00 : f32
    %415 = vector.broadcast %cst_161 : f32 to vector<8x1xf32>
    %416 = arith.subf %415, %358 : vector<8x1xf32>
    %417 = vector.broadcast %416 : vector<8x1xf32> to vector<8x32xf32>
    %418 = arith.mulf %417, %351 : vector<8x32xf32>
    %419 = arith.addf %414, %418 : vector<8x32xf32>
    %420 = arith.index_cast %c6_i32 : i32 to index
    %c0_162 = arith.constant 0 : index
    %c0_163 = arith.constant 0 : index
    %421 = vector.load %arg15[%420, %c0_162, %c0_163] : memref<12x8x32xf32, #tpu.memory_space<vmem>>, vector<1x8x32xf32>
    %422 = vector.shape_cast %421 : vector<1x8x32xf32> to vector<8x32xf32>
    %423 = vector.shape_cast %419 : vector<8x32xf32> to vector<1x8x32xf32>
    tpu.vector_store %arg15[%420, %c0_162, %c0_163], %423 {strides = array<i32>} : memref<12x8x32xf32, #tpu.memory_space<vmem>>, vector<1x8x32xf32>,
    %c7_i32 = arith.constant 7 : i32
    %424 = arith.index_cast %c7_i32 : i32 to index
    %c0_164 = arith.constant 0 : index
    %c0_165 = arith.constant 0 : index
    %425 = vector.load %arg3[%424, %c0_164, %c0_165] : memref<12x8x1xf32, #tpu.memory_space<vmem>>, vector<1x8x1xf32>
    %426 = vector.shape_cast %425 : vector<1x8x1xf32> to vector<8x1xf32>
    %427 = arith.truncf %419 : vector<8x32xf32> to vector<8x32xbf16>
    %cst_166 = arith.constant dense<0.000000e+00> : vector<8x8xf32>
    %428 = tpu.matmul %427, %9, %cst_166 {dimension_numbers = #tpu.dot_dimension_numbers<[1], [0], [0], [1], [0, 0, 1, 1], [], []>} : vector<8x32xbf16>, vector<32x8xbf16>, vector<8x8xf32> -> vector<8x8xf32>
    %429 = math.exp %428 : vector<8x8xf32>
    %cst_167 = arith.constant dense<0.000000e+00> : vector<8xf32>
    %430 = vector.multi_reduction <add>, %429, %cst_167 [1] : vector<8x8xf32> to vector<8xf32>
    %431 = vector.shape_cast %430 : vector<8xf32> to vector<8x1xf32>
    %432 = vector.broadcast %431 : vector<8x1xf32> to vector<8x8xf32>
    %433 = arith.divf %429, %432 : vector<8x8xf32>
    %434 = arith.truncf %433 : vector<8x8xf32> to vector<8x8xbf16>
    %cst_168 = arith.constant dense<0.000000e+00> : vector<8x16xf32>
    %435 = tpu.matmul %434, %10, %cst_168 {dimension_numbers = #tpu.dot_dimension_numbers<[1], [0], [0], [1], [0, 0, 1, 1], [], []>} : vector<8x8xbf16>, vector<8x16xbf16>, vector<8x16xf32> -> vector<8x16xf32>
    %436 = arith.truncf %435 : vector<8x16xf32> to vector<8x16xbf16>
    %437 = arith.index_cast %c7_i32 : i32 to index
    %c0_169 = arith.constant 0 : index
    %c0_170 = arith.constant 0 : index
    %438 = vector.load %arg0[%437, %c0_169, %c0_170] : memref<12x8x32xf32, #tpu.memory_space<vmem>>, vector<1x8x32xf32>
    %439 = vector.shape_cast %438 : vector<1x8x32xf32> to vector<8x32xf32>
    %cst_171 = arith.constant dense<0.000000e+00> : vector<8x32xf32>
    %440 = tpu.matmul %436, %0, %cst_171 {dimension_numbers = #tpu.dot_dimension_numbers<[1], [0], [0], [1], [0, 0, 1, 1], [], []>} : vector<8x16xbf16>, vector<16x32xbf16>, vector<8x32xf32> -> vector<8x32xf32>
    %441 = arith.addf %439, %440 : vector<8x32xf32>
    %442 = vector.broadcast %6 : vector<1x32xf32> to vector<8x32xf32>
    %443 = arith.addf %441, %442 : vector<8x32xf32>
    %444 = arith.index_cast %c7_i32 : i32 to index
    %c0_172 = arith.constant 0 : index
    %c0_173 = arith.constant 0 : index
    %445 = vector.load %arg1[%444, %c0_172, %c0_173] : memref<12x8x32xf32, #tpu.memory_space<vmem>>, vector<1x8x32xf32>
    %446 = vector.shape_cast %445 : vector<1x8x32xf32> to vector<8x32xf32>
    %cst_174 = arith.constant dense<0.000000e+00> : vector<8x32xf32>
    %447 = tpu.matmul %436, %1, %cst_174 {dimension_numbers = #tpu.dot_dimension_numbers<[1], [0], [0], [1], [0, 0, 1, 1], [], []>} : vector<8x16xbf16>, vector<16x32xbf16>, vector<8x32xf32> -> vector<8x32xf32>
    %448 = arith.addf %446, %447 : vector<8x32xf32>
    %449 = vector.broadcast %7 : vector<1x32xf32> to vector<8x32xf32>
    %450 = arith.addf %448, %449 : vector<8x32xf32>
    %451 = arith.index_cast %c7_i32 : i32 to index
    %c0_175 = arith.constant 0 : index
    %c0_176 = arith.constant 0 : index
    %452 = vector.load %arg2[%451, %c0_175, %c0_176] : memref<12x8x32xf32, #tpu.memory_space<vmem>>, vector<1x8x32xf32>
    %453 = vector.shape_cast %452 : vector<1x8x32xf32> to vector<8x32xf32>
    %cst_177 = arith.constant dense<0.000000e+00> : vector<8x32xf32>
    %454 = tpu.matmul %436, %2, %cst_177 {dimension_numbers = #tpu.dot_dimension_numbers<[1], [0], [0], [1], [0, 0, 1, 1], [], []>} : vector<8x16xbf16>, vector<16x32xbf16>, vector<8x32xf32> -> vector<8x32xf32>
    %455 = arith.addf %453, %454 : vector<8x32xf32>
    %456 = vector.broadcast %8 : vector<1x32xf32> to vector<8x32xf32>
    %457 = arith.addf %455, %456 : vector<8x32xf32>
    %cst_178 = arith.constant dense<0.000000e+00> : vector<8x32xf32>
    %458 = tpu.matmul %427, %3, %cst_178 {dimension_numbers = #tpu.dot_dimension_numbers<[1], [0], [0], [1], [0, 0, 1, 1], [], []>} : vector<8x32xbf16>, vector<32x32xbf16>, vector<8x32xf32> -> vector<8x32xf32>
    %cst_179 = arith.constant dense<0.000000e+00> : vector<8x32xf32>
    %459 = tpu.matmul %427, %4, %cst_179 {dimension_numbers = #tpu.dot_dimension_numbers<[1], [0], [0], [1], [0, 0, 1, 1], [], []>} : vector<8x32xbf16>, vector<32x32xbf16>, vector<8x32xf32> -> vector<8x32xf32>
    %cst_180 = arith.constant dense<0.000000e+00> : vector<8x32xf32>
    %460 = tpu.matmul %427, %5, %cst_180 {dimension_numbers = #tpu.dot_dimension_numbers<[1], [0], [0], [1], [0, 0, 1, 1], [], []>} : vector<8x32xbf16>, vector<32x32xbf16>, vector<8x32xf32> -> vector<8x32xf32>
    %461 = arith.addf %443, %458 : vector<8x32xf32>
    %462 = arith.negf %461 : vector<8x32xf32>
    %463 = math.exp %462 : vector<8x32xf32>
    %cst_181 = arith.constant 1.000000e+00 : f32
    %464 = vector.broadcast %cst_181 : f32 to vector<8x32xf32>
    %465 = arith.addf %464, %463 : vector<8x32xf32>
    %466 = arith.divf %464, %465 : vector<8x32xf32>
    %467 = arith.addf %450, %459 : vector<8x32xf32>
    %468 = arith.negf %467 : vector<8x32xf32>
    %469 = math.exp %468 : vector<8x32xf32>
    %cst_182 = arith.constant 1.000000e+00 : f32
    %470 = vector.broadcast %cst_182 : f32 to vector<8x32xf32>
    %471 = arith.addf %470, %469 : vector<8x32xf32>
    %472 = arith.divf %470, %471 : vector<8x32xf32>
    %473 = arith.mulf %466, %460 : vector<8x32xf32>
    %474 = arith.addf %457, %473 : vector<8x32xf32>
    %475 = math.tanh %474 : vector<8x32xf32>
    %cst_183 = arith.constant 1.000000e+00 : f32
    %476 = vector.broadcast %cst_183 : f32 to vector<8x32xf32>
    %477 = arith.subf %476, %472 : vector<8x32xf32>
    %478 = arith.mulf %477, %475 : vector<8x32xf32>
    %479 = arith.mulf %472, %419 : vector<8x32xf32>
    %480 = arith.addf %478, %479 : vector<8x32xf32>
    %481 = vector.broadcast %426 : vector<8x1xf32> to vector<8x32xf32>
    %482 = arith.mulf %481, %480 : vector<8x32xf32>
    %cst_184 = arith.constant 1.000000e+00 : f32
    %483 = vector.broadcast %cst_184 : f32 to vector<8x1xf32>
    %484 = arith.subf %483, %426 : vector<8x1xf32>
    %485 = vector.broadcast %484 : vector<8x1xf32> to vector<8x32xf32>
    %486 = arith.mulf %485, %419 : vector<8x32xf32>
    %487 = arith.addf %482, %486 : vector<8x32xf32>
    %488 = arith.index_cast %c7_i32 : i32 to index
    %c0_185 = arith.constant 0 : index
    %c0_186 = arith.constant 0 : index
    %489 = vector.load %arg15[%488, %c0_185, %c0_186] : memref<12x8x32xf32, #tpu.memory_space<vmem>>, vector<1x8x32xf32>
    %490 = vector.shape_cast %489 : vector<1x8x32xf32> to vector<8x32xf32>
    %491 = vector.shape_cast %487 : vector<8x32xf32> to vector<1x8x32xf32>
    tpu.vector_store %arg15[%488, %c0_185, %c0_186], %491 {strides = array<i32>} : memref<12x8x32xf32, #tpu.memory_space<vmem>>, vector<1x8x32xf32>,
    %c8_i32 = arith.constant 8 : i32
    %492 = arith.index_cast %c8_i32 : i32 to index
    %c0_187 = arith.constant 0 : index
    %c0_188 = arith.constant 0 : index
    %493 = vector.load %arg3[%492, %c0_187, %c0_188] : memref<12x8x1xf32, #tpu.memory_space<vmem>>, vector<1x8x1xf32>
    %494 = vector.shape_cast %493 : vector<1x8x1xf32> to vector<8x1xf32>
    %495 = arith.truncf %487 : vector<8x32xf32> to vector<8x32xbf16>
    %cst_189 = arith.constant dense<0.000000e+00> : vector<8x8xf32>
    %496 = tpu.matmul %495, %9, %cst_189 {dimension_numbers = #tpu.dot_dimension_numbers<[1], [0], [0], [1], [0, 0, 1, 1], [], []>} : vector<8x32xbf16>, vector<32x8xbf16>, vector<8x8xf32> -> vector<8x8xf32>
    %497 = math.exp %496 : vector<8x8xf32>
    %cst_190 = arith.constant dense<0.000000e+00> : vector<8xf32>
    %498 = vector.multi_reduction <add>, %497, %cst_190 [1] : vector<8x8xf32> to vector<8xf32>
    %499 = vector.shape_cast %498 : vector<8xf32> to vector<8x1xf32>
    %500 = vector.broadcast %499 : vector<8x1xf32> to vector<8x8xf32>
    %501 = arith.divf %497, %500 : vector<8x8xf32>
    %502 = arith.truncf %501 : vector<8x8xf32> to vector<8x8xbf16>
    %cst_191 = arith.constant dense<0.000000e+00> : vector<8x16xf32>
    %503 = tpu.matmul %502, %10, %cst_191 {dimension_numbers = #tpu.dot_dimension_numbers<[1], [0], [0], [1], [0, 0, 1, 1], [], []>} : vector<8x8xbf16>, vector<8x16xbf16>, vector<8x16xf32> -> vector<8x16xf32>
    %504 = arith.truncf %503 : vector<8x16xf32> to vector<8x16xbf16>
    %505 = arith.index_cast %c8_i32 : i32 to index
    %c0_192 = arith.constant 0 : index
    %c0_193 = arith.constant 0 : index
    %506 = vector.load %arg0[%505, %c0_192, %c0_193] : memref<12x8x32xf32, #tpu.memory_space<vmem>>, vector<1x8x32xf32>
    %507 = vector.shape_cast %506 : vector<1x8x32xf32> to vector<8x32xf32>
    %cst_194 = arith.constant dense<0.000000e+00> : vector<8x32xf32>
    %508 = tpu.matmul %504, %0, %cst_194 {dimension_numbers = #tpu.dot_dimension_numbers<[1], [0], [0], [1], [0, 0, 1, 1], [], []>} : vector<8x16xbf16>, vector<16x32xbf16>, vector<8x32xf32> -> vector<8x32xf32>
    %509 = arith.addf %507, %508 : vector<8x32xf32>
    %510 = vector.broadcast %6 : vector<1x32xf32> to vector<8x32xf32>
    %511 = arith.addf %509, %510 : vector<8x32xf32>
    %512 = arith.index_cast %c8_i32 : i32 to index
    %c0_195 = arith.constant 0 : index
    %c0_196 = arith.constant 0 : index
    %513 = vector.load %arg1[%512, %c0_195, %c0_196] : memref<12x8x32xf32, #tpu.memory_space<vmem>>, vector<1x8x32xf32>
    %514 = vector.shape_cast %513 : vector<1x8x32xf32> to vector<8x32xf32>
    %cst_197 = arith.constant dense<0.000000e+00> : vector<8x32xf32>
    %515 = tpu.matmul %504, %1, %cst_197 {dimension_numbers = #tpu.dot_dimension_numbers<[1], [0], [0], [1], [0, 0, 1, 1], [], []>} : vector<8x16xbf16>, vector<16x32xbf16>, vector<8x32xf32> -> vector<8x32xf32>
    %516 = arith.addf %514, %515 : vector<8x32xf32>
    %517 = vector.broadcast %7 : vector<1x32xf32> to vector<8x32xf32>
    %518 = arith.addf %516, %517 : vector<8x32xf32>
    %519 = arith.index_cast %c8_i32 : i32 to index
    %c0_198 = arith.constant 0 : index
    %c0_199 = arith.constant 0 : index
    %520 = vector.load %arg2[%519, %c0_198, %c0_199] : memref<12x8x32xf32, #tpu.memory_space<vmem>>, vector<1x8x32xf32>
    %521 = vector.shape_cast %520 : vector<1x8x32xf32> to vector<8x32xf32>
    %cst_200 = arith.constant dense<0.000000e+00> : vector<8x32xf32>
    %522 = tpu.matmul %504, %2, %cst_200 {dimension_numbers = #tpu.dot_dimension_numbers<[1], [0], [0], [1], [0, 0, 1, 1], [], []>} : vector<8x16xbf16>, vector<16x32xbf16>, vector<8x32xf32> -> vector<8x32xf32>
    %523 = arith.addf %521, %522 : vector<8x32xf32>
    %524 = vector.broadcast %8 : vector<1x32xf32> to vector<8x32xf32>
    %525 = arith.addf %523, %524 : vector<8x32xf32>
    %cst_201 = arith.constant dense<0.000000e+00> : vector<8x32xf32>
    %526 = tpu.matmul %495, %3, %cst_201 {dimension_numbers = #tpu.dot_dimension_numbers<[1], [0], [0], [1], [0, 0, 1, 1], [], []>} : vector<8x32xbf16>, vector<32x32xbf16>, vector<8x32xf32> -> vector<8x32xf32>
    %cst_202 = arith.constant dense<0.000000e+00> : vector<8x32xf32>
    %527 = tpu.matmul %495, %4, %cst_202 {dimension_numbers = #tpu.dot_dimension_numbers<[1], [0], [0], [1], [0, 0, 1, 1], [], []>} : vector<8x32xbf16>, vector<32x32xbf16>, vector<8x32xf32> -> vector<8x32xf32>
    %cst_203 = arith.constant dense<0.000000e+00> : vector<8x32xf32>
    %528 = tpu.matmul %495, %5, %cst_203 {dimension_numbers = #tpu.dot_dimension_numbers<[1], [0], [0], [1], [0, 0, 1, 1], [], []>} : vector<8x32xbf16>, vector<32x32xbf16>, vector<8x32xf32> -> vector<8x32xf32>
    %529 = arith.addf %511, %526 : vector<8x32xf32>
    %530 = arith.negf %529 : vector<8x32xf32>
    %531 = math.exp %530 : vector<8x32xf32>
    %cst_204 = arith.constant 1.000000e+00 : f32
    %532 = vector.broadcast %cst_204 : f32 to vector<8x32xf32>
    %533 = arith.addf %532, %531 : vector<8x32xf32>
    %534 = arith.divf %532, %533 : vector<8x32xf32>
    %535 = arith.addf %518, %527 : vector<8x32xf32>
    %536 = arith.negf %535 : vector<8x32xf32>
    %537 = math.exp %536 : vector<8x32xf32>
    %cst_205 = arith.constant 1.000000e+00 : f32
    %538 = vector.broadcast %cst_205 : f32 to vector<8x32xf32>
    %539 = arith.addf %538, %537 : vector<8x32xf32>
    %540 = arith.divf %538, %539 : vector<8x32xf32>
    %541 = arith.mulf %534, %528 : vector<8x32xf32>
    %542 = arith.addf %525, %541 : vector<8x32xf32>
    %543 = math.tanh %542 : vector<8x32xf32>
    %cst_206 = arith.constant 1.000000e+00 : f32
    %544 = vector.broadcast %cst_206 : f32 to vector<8x32xf32>
    %545 = arith.subf %544, %540 : vector<8x32xf32>
    %546 = arith.mulf %545, %543 : vector<8x32xf32>
    %547 = arith.mulf %540, %487 : vector<8x32xf32>
    %548 = arith.addf %546, %547 : vector<8x32xf32>
    %549 = vector.broadcast %494 : vector<8x1xf32> to vector<8x32xf32>
    %550 = arith.mulf %549, %548 : vector<8x32xf32>
    %cst_207 = arith.constant 1.000000e+00 : f32
    %551 = vector.broadcast %cst_207 : f32 to vector<8x1xf32>
    %552 = arith.subf %551, %494 : vector<8x1xf32>
    %553 = vector.broadcast %552 : vector<8x1xf32> to vector<8x32xf32>
    %554 = arith.mulf %553, %487 : vector<8x32xf32>
    %555 = arith.addf %550, %554 : vector<8x32xf32>
    %556 = arith.index_cast %c8_i32 : i32 to index
    %c0_208 = arith.constant 0 : index
    %c0_209 = arith.constant 0 : index
    %557 = vector.load %arg15[%556, %c0_208, %c0_209] : memref<12x8x32xf32, #tpu.memory_space<vmem>>, vector<1x8x32xf32>
    %558 = vector.shape_cast %557 : vector<1x8x32xf32> to vector<8x32xf32>
    %559 = vector.shape_cast %555 : vector<8x32xf32> to vector<1x8x32xf32>
    tpu.vector_store %arg15[%556, %c0_208, %c0_209], %559 {strides = array<i32>} : memref<12x8x32xf32, #tpu.memory_space<vmem>>, vector<1x8x32xf32>,
    %c9_i32 = arith.constant 9 : i32
    %560 = arith.index_cast %c9_i32 : i32 to index
    %c0_210 = arith.constant 0 : index
    %c0_211 = arith.constant 0 : index
    %561 = vector.load %arg3[%560, %c0_210, %c0_211] : memref<12x8x1xf32, #tpu.memory_space<vmem>>, vector<1x8x1xf32>
    %562 = vector.shape_cast %561 : vector<1x8x1xf32> to vector<8x1xf32>
    %563 = arith.truncf %555 : vector<8x32xf32> to vector<8x32xbf16>
    %cst_212 = arith.constant dense<0.000000e+00> : vector<8x8xf32>
    %564 = tpu.matmul %563, %9, %cst_212 {dimension_numbers = #tpu.dot_dimension_numbers<[1], [0], [0], [1], [0, 0, 1, 1], [], []>} : vector<8x32xbf16>, vector<32x8xbf16>, vector<8x8xf32> -> vector<8x8xf32>
    %565 = math.exp %564 : vector<8x8xf32>
    %cst_213 = arith.constant dense<0.000000e+00> : vector<8xf32>
    %566 = vector.multi_reduction <add>, %565, %cst_213 [1] : vector<8x8xf32> to vector<8xf32>
    %567 = vector.shape_cast %566 : vector<8xf32> to vector<8x1xf32>
    %568 = vector.broadcast %567 : vector<8x1xf32> to vector<8x8xf32>
    %569 = arith.divf %565, %568 : vector<8x8xf32>
    %570 = arith.truncf %569 : vector<8x8xf32> to vector<8x8xbf16>
    %cst_214 = arith.constant dense<0.000000e+00> : vector<8x16xf32>
    %571 = tpu.matmul %570, %10, %cst_214 {dimension_numbers = #tpu.dot_dimension_numbers<[1], [0], [0], [1], [0, 0, 1, 1], [], []>} : vector<8x8xbf16>, vector<8x16xbf16>, vector<8x16xf32> -> vector<8x16xf32>
    %572 = arith.truncf %571 : vector<8x16xf32> to vector<8x16xbf16>
    %573 = arith.index_cast %c9_i32 : i32 to index
    %c0_215 = arith.constant 0 : index
    %c0_216 = arith.constant 0 : index
    %574 = vector.load %arg0[%573, %c0_215, %c0_216] : memref<12x8x32xf32, #tpu.memory_space<vmem>>, vector<1x8x32xf32>
    %575 = vector.shape_cast %574 : vector<1x8x32xf32> to vector<8x32xf32>
    %cst_217 = arith.constant dense<0.000000e+00> : vector<8x32xf32>
    %576 = tpu.matmul %572, %0, %cst_217 {dimension_numbers = #tpu.dot_dimension_numbers<[1], [0], [0], [1], [0, 0, 1, 1], [], []>} : vector<8x16xbf16>, vector<16x32xbf16>, vector<8x32xf32> -> vector<8x32xf32>
    %577 = arith.addf %575, %576 : vector<8x32xf32>
    %578 = vector.broadcast %6 : vector<1x32xf32> to vector<8x32xf32>
    %579 = arith.addf %577, %578 : vector<8x32xf32>
    %580 = arith.index_cast %c9_i32 : i32 to index
    %c0_218 = arith.constant 0 : index
    %c0_219 = arith.constant 0 : index
    %581 = vector.load %arg1[%580, %c0_218, %c0_219] : memref<12x8x32xf32, #tpu.memory_space<vmem>>, vector<1x8x32xf32>
    %582 = vector.shape_cast %581 : vector<1x8x32xf32> to vector<8x32xf32>
    %cst_220 = arith.constant dense<0.000000e+00> : vector<8x32xf32>
    %583 = tpu.matmul %572, %1, %cst_220 {dimension_numbers = #tpu.dot_dimension_numbers<[1], [0], [0], [1], [0, 0, 1, 1], [], []>} : vector<8x16xbf16>, vector<16x32xbf16>, vector<8x32xf32> -> vector<8x32xf32>
    %584 = arith.addf %582, %583 : vector<8x32xf32>
    %585 = vector.broadcast %7 : vector<1x32xf32> to vector<8x32xf32>
    %586 = arith.addf %584, %585 : vector<8x32xf32>
    %587 = arith.index_cast %c9_i32 : i32 to index
    %c0_221 = arith.constant 0 : index
    %c0_222 = arith.constant 0 : index
    %588 = vector.load %arg2[%587, %c0_221, %c0_222] : memref<12x8x32xf32, #tpu.memory_space<vmem>>, vector<1x8x32xf32>
    %589 = vector.shape_cast %588 : vector<1x8x32xf32> to vector<8x32xf32>
    %cst_223 = arith.constant dense<0.000000e+00> : vector<8x32xf32>
    %590 = tpu.matmul %572, %2, %cst_223 {dimension_numbers = #tpu.dot_dimension_numbers<[1], [0], [0], [1], [0, 0, 1, 1], [], []>} : vector<8x16xbf16>, vector<16x32xbf16>, vector<8x32xf32> -> vector<8x32xf32>
    %591 = arith.addf %589, %590 : vector<8x32xf32>
    %592 = vector.broadcast %8 : vector<1x32xf32> to vector<8x32xf32>
    %593 = arith.addf %591, %592 : vector<8x32xf32>
    %cst_224 = arith.constant dense<0.000000e+00> : vector<8x32xf32>
    %594 = tpu.matmul %563, %3, %cst_224 {dimension_numbers = #tpu.dot_dimension_numbers<[1], [0], [0], [1], [0, 0, 1, 1], [], []>} : vector<8x32xbf16>, vector<32x32xbf16>, vector<8x32xf32> -> vector<8x32xf32>
    %cst_225 = arith.constant dense<0.000000e+00> : vector<8x32xf32>
    %595 = tpu.matmul %563, %4, %cst_225 {dimension_numbers = #tpu.dot_dimension_numbers<[1], [0], [0], [1], [0, 0, 1, 1], [], []>} : vector<8x32xbf16>, vector<32x32xbf16>, vector<8x32xf32> -> vector<8x32xf32>
    %cst_226 = arith.constant dense<0.000000e+00> : vector<8x32xf32>
    %596 = tpu.matmul %563, %5, %cst_226 {dimension_numbers = #tpu.dot_dimension_numbers<[1], [0], [0], [1], [0, 0, 1, 1], [], []>} : vector<8x32xbf16>, vector<32x32xbf16>, vector<8x32xf32> -> vector<8x32xf32>
    %597 = arith.addf %579, %594 : vector<8x32xf32>
    %598 = arith.negf %597 : vector<8x32xf32>
    %599 = math.exp %598 : vector<8x32xf32>
    %cst_227 = arith.constant 1.000000e+00 : f32
    %600 = vector.broadcast %cst_227 : f32 to vector<8x32xf32>
    %601 = arith.addf %600, %599 : vector<8x32xf32>
    %602 = arith.divf %600, %601 : vector<8x32xf32>
    %603 = arith.addf %586, %595 : vector<8x32xf32>
    %604 = arith.negf %603 : vector<8x32xf32>
    %605 = math.exp %604 : vector<8x32xf32>
    %cst_228 = arith.constant 1.000000e+00 : f32
    %606 = vector.broadcast %cst_228 : f32 to vector<8x32xf32>
    %607 = arith.addf %606, %605 : vector<8x32xf32>
    %608 = arith.divf %606, %607 : vector<8x32xf32>
    %609 = arith.mulf %602, %596 : vector<8x32xf32>
    %610 = arith.addf %593, %609 : vector<8x32xf32>
    %611 = math.tanh %610 : vector<8x32xf32>
    %cst_229 = arith.constant 1.000000e+00 : f32
    %612 = vector.broadcast %cst_229 : f32 to vector<8x32xf32>
    %613 = arith.subf %612, %608 : vector<8x32xf32>
    %614 = arith.mulf %613, %611 : vector<8x32xf32>
    %615 = arith.mulf %608, %555 : vector<8x32xf32>
    %616 = arith.addf %614, %615 : vector<8x32xf32>
    %617 = vector.broadcast %562 : vector<8x1xf32> to vector<8x32xf32>
    %618 = arith.mulf %617, %616 : vector<8x32xf32>
    %cst_230 = arith.constant 1.000000e+00 : f32
    %619 = vector.broadcast %cst_230 : f32 to vector<8x1xf32>
    %620 = arith.subf %619, %562 : vector<8x1xf32>
    %621 = vector.broadcast %620 : vector<8x1xf32> to vector<8x32xf32>
    %622 = arith.mulf %621, %555 : vector<8x32xf32>
    %623 = arith.addf %618, %622 : vector<8x32xf32>
    %624 = arith.index_cast %c9_i32 : i32 to index
    %c0_231 = arith.constant 0 : index
    %c0_232 = arith.constant 0 : index
    %625 = vector.load %arg15[%624, %c0_231, %c0_232] : memref<12x8x32xf32, #tpu.memory_space<vmem>>, vector<1x8x32xf32>
    %626 = vector.shape_cast %625 : vector<1x8x32xf32> to vector<8x32xf32>
    %627 = vector.shape_cast %623 : vector<8x32xf32> to vector<1x8x32xf32>
    tpu.vector_store %arg15[%624, %c0_231, %c0_232], %627 {strides = array<i32>} : memref<12x8x32xf32, #tpu.memory_space<vmem>>, vector<1x8x32xf32>,
    %c10_i32 = arith.constant 10 : i32
    %628 = arith.index_cast %c10_i32 : i32 to index
    %c0_233 = arith.constant 0 : index
    %c0_234 = arith.constant 0 : index
    %629 = vector.load %arg3[%628, %c0_233, %c0_234] : memref<12x8x1xf32, #tpu.memory_space<vmem>>, vector<1x8x1xf32>
    %630 = vector.shape_cast %629 : vector<1x8x1xf32> to vector<8x1xf32>
    %631 = arith.truncf %623 : vector<8x32xf32> to vector<8x32xbf16>
    %cst_235 = arith.constant dense<0.000000e+00> : vector<8x8xf32>
    %632 = tpu.matmul %631, %9, %cst_235 {dimension_numbers = #tpu.dot_dimension_numbers<[1], [0], [0], [1], [0, 0, 1, 1], [], []>} : vector<8x32xbf16>, vector<32x8xbf16>, vector<8x8xf32> -> vector<8x8xf32>
    %633 = math.exp %632 : vector<8x8xf32>
    %cst_236 = arith.constant dense<0.000000e+00> : vector<8xf32>
    %634 = vector.multi_reduction <add>, %633, %cst_236 [1] : vector<8x8xf32> to vector<8xf32>
    %635 = vector.shape_cast %634 : vector<8xf32> to vector<8x1xf32>
    %636 = vector.broadcast %635 : vector<8x1xf32> to vector<8x8xf32>
    %637 = arith.divf %633, %636 : vector<8x8xf32>
    %638 = arith.truncf %637 : vector<8x8xf32> to vector<8x8xbf16>
    %cst_237 = arith.constant dense<0.000000e+00> : vector<8x16xf32>
    %639 = tpu.matmul %638, %10, %cst_237 {dimension_numbers = #tpu.dot_dimension_numbers<[1], [0], [0], [1], [0, 0, 1, 1], [], []>} : vector<8x8xbf16>, vector<8x16xbf16>, vector<8x16xf32> -> vector<8x16xf32>
    %640 = arith.truncf %639 : vector<8x16xf32> to vector<8x16xbf16>
    %641 = arith.index_cast %c10_i32 : i32 to index
    %c0_238 = arith.constant 0 : index
    %c0_239 = arith.constant 0 : index
    %642 = vector.load %arg0[%641, %c0_238, %c0_239] : memref<12x8x32xf32, #tpu.memory_space<vmem>>, vector<1x8x32xf32>
    %643 = vector.shape_cast %642 : vector<1x8x32xf32> to vector<8x32xf32>
    %cst_240 = arith.constant dense<0.000000e+00> : vector<8x32xf32>
    %644 = tpu.matmul %640, %0, %cst_240 {dimension_numbers = #tpu.dot_dimension_numbers<[1], [0], [0], [1], [0, 0, 1, 1], [], []>} : vector<8x16xbf16>, vector<16x32xbf16>, vector<8x32xf32> -> vector<8x32xf32>
    %645 = arith.addf %643, %644 : vector<8x32xf32>
    %646 = vector.broadcast %6 : vector<1x32xf32> to vector<8x32xf32>
    %647 = arith.addf %645, %646 : vector<8x32xf32>
    %648 = arith.index_cast %c10_i32 : i32 to index
    %c0_241 = arith.constant 0 : index
    %c0_242 = arith.constant 0 : index
    %649 = vector.load %arg1[%648, %c0_241, %c0_242] : memref<12x8x32xf32, #tpu.memory_space<vmem>>, vector<1x8x32xf32>
    %650 = vector.shape_cast %649 : vector<1x8x32xf32> to vector<8x32xf32>
    %cst_243 = arith.constant dense<0.000000e+00> : vector<8x32xf32>
    %651 = tpu.matmul %640, %1, %cst_243 {dimension_numbers = #tpu.dot_dimension_numbers<[1], [0], [0], [1], [0, 0, 1, 1], [], []>} : vector<8x16xbf16>, vector<16x32xbf16>, vector<8x32xf32> -> vector<8x32xf32>
    %652 = arith.addf %650, %651 : vector<8x32xf32>
    %653 = vector.broadcast %7 : vector<1x32xf32> to vector<8x32xf32>
    %654 = arith.addf %652, %653 : vector<8x32xf32>
    %655 = arith.index_cast %c10_i32 : i32 to index
    %c0_244 = arith.constant 0 : index
    %c0_245 = arith.constant 0 : index
    %656 = vector.load %arg2[%655, %c0_244, %c0_245] : memref<12x8x32xf32, #tpu.memory_space<vmem>>, vector<1x8x32xf32>
    %657 = vector.shape_cast %656 : vector<1x8x32xf32> to vector<8x32xf32>
    %cst_246 = arith.constant dense<0.000000e+00> : vector<8x32xf32>
    %658 = tpu.matmul %640, %2, %cst_246 {dimension_numbers = #tpu.dot_dimension_numbers<[1], [0], [0], [1], [0, 0, 1, 1], [], []>} : vector<8x16xbf16>, vector<16x32xbf16>, vector<8x32xf32> -> vector<8x32xf32>
    %659 = arith.addf %657, %658 : vector<8x32xf32>
    %660 = vector.broadcast %8 : vector<1x32xf32> to vector<8x32xf32>
    %661 = arith.addf %659, %660 : vector<8x32xf32>
    %cst_247 = arith.constant dense<0.000000e+00> : vector<8x32xf32>
    %662 = tpu.matmul %631, %3, %cst_247 {dimension_numbers = #tpu.dot_dimension_numbers<[1], [0], [0], [1], [0, 0, 1, 1], [], []>} : vector<8x32xbf16>, vector<32x32xbf16>, vector<8x32xf32> -> vector<8x32xf32>
    %cst_248 = arith.constant dense<0.000000e+00> : vector<8x32xf32>
    %663 = tpu.matmul %631, %4, %cst_248 {dimension_numbers = #tpu.dot_dimension_numbers<[1], [0], [0], [1], [0, 0, 1, 1], [], []>} : vector<8x32xbf16>, vector<32x32xbf16>, vector<8x32xf32> -> vector<8x32xf32>
    %cst_249 = arith.constant dense<0.000000e+00> : vector<8x32xf32>
    %664 = tpu.matmul %631, %5, %cst_249 {dimension_numbers = #tpu.dot_dimension_numbers<[1], [0], [0], [1], [0, 0, 1, 1], [], []>} : vector<8x32xbf16>, vector<32x32xbf16>, vector<8x32xf32> -> vector<8x32xf32>
    %665 = arith.addf %647, %662 : vector<8x32xf32>
    %666 = arith.negf %665 : vector<8x32xf32>
    %667 = math.exp %666 : vector<8x32xf32>
    %cst_250 = arith.constant 1.000000e+00 : f32
    %668 = vector.broadcast %cst_250 : f32 to vector<8x32xf32>
    %669 = arith.addf %668, %667 : vector<8x32xf32>
    %670 = arith.divf %668, %669 : vector<8x32xf32>
    %671 = arith.addf %654, %663 : vector<8x32xf32>
    %672 = arith.negf %671 : vector<8x32xf32>
    %673 = math.exp %672 : vector<8x32xf32>
    %cst_251 = arith.constant 1.000000e+00 : f32
    %674 = vector.broadcast %cst_251 : f32 to vector<8x32xf32>
    %675 = arith.addf %674, %673 : vector<8x32xf32>
    %676 = arith.divf %674, %675 : vector<8x32xf32>
    %677 = arith.mulf %670, %664 : vector<8x32xf32>
    %678 = arith.addf %661, %677 : vector<8x32xf32>
    %679 = math.tanh %678 : vector<8x32xf32>
    %cst_252 = arith.constant 1.000000e+00 : f32
    %680 = vector.broadcast %cst_252 : f32 to vector<8x32xf32>
    %681 = arith.subf %680, %676 : vector<8x32xf32>
    %682 = arith.mulf %681, %679 : vector<8x32xf32>
    %683 = arith.mulf %676, %623 : vector<8x32xf32>
    %684 = arith.addf %682, %683 : vector<8x32xf32>
    %685 = vector.broadcast %630 : vector<8x1xf32> to vector<8x32xf32>
    %686 = arith.mulf %685, %684 : vector<8x32xf32>
    %cst_253 = arith.constant 1.000000e+00 : f32
    %687 = vector.broadcast %cst_253 : f32 to vector<8x1xf32>
    %688 = arith.subf %687, %630 : vector<8x1xf32>
    %689 = vector.broadcast %688 : vector<8x1xf32> to vector<8x32xf32>
    %690 = arith.mulf %689, %623 : vector<8x32xf32>
    %691 = arith.addf %686, %690 : vector<8x32xf32>
    %692 = arith.index_cast %c10_i32 : i32 to index
    %c0_254 = arith.constant 0 : index
    %c0_255 = arith.constant 0 : index
    %693 = vector.load %arg15[%692, %c0_254, %c0_255] : memref<12x8x32xf32, #tpu.memory_space<vmem>>, vector<1x8x32xf32>
    %694 = vector.shape_cast %693 : vector<1x8x32xf32> to vector<8x32xf32>
    %695 = vector.shape_cast %691 : vector<8x32xf32> to vector<1x8x32xf32>
    tpu.vector_store %arg15[%692, %c0_254, %c0_255], %695 {strides = array<i32>} : memref<12x8x32xf32, #tpu.memory_space<vmem>>, vector<1x8x32xf32>,
    %c11_i32 = arith.constant 11 : i32
    %696 = arith.index_cast %c11_i32 : i32 to index
    %c0_256 = arith.constant 0 : index
    %c0_257 = arith.constant 0 : index
    %697 = vector.load %arg3[%696, %c0_256, %c0_257] : memref<12x8x1xf32, #tpu.memory_space<vmem>>, vector<1x8x1xf32>
    %698 = vector.shape_cast %697 : vector<1x8x1xf32> to vector<8x1xf32>
    %699 = arith.truncf %691 : vector<8x32xf32> to vector<8x32xbf16>
    %cst_258 = arith.constant dense<0.000000e+00> : vector<8x8xf32>
    %700 = tpu.matmul %699, %9, %cst_258 {dimension_numbers = #tpu.dot_dimension_numbers<[1], [0], [0], [1], [0, 0, 1, 1], [], []>} : vector<8x32xbf16>, vector<32x8xbf16>, vector<8x8xf32> -> vector<8x8xf32>
    %701 = math.exp %700 : vector<8x8xf32>
    %cst_259 = arith.constant dense<0.000000e+00> : vector<8xf32>
    %702 = vector.multi_reduction <add>, %701, %cst_259 [1] : vector<8x8xf32> to vector<8xf32>
    %703 = vector.shape_cast %702 : vector<8xf32> to vector<8x1xf32>
    %704 = vector.broadcast %703 : vector<8x1xf32> to vector<8x8xf32>
    %705 = arith.divf %701, %704 : vector<8x8xf32>
    %706 = arith.truncf %705 : vector<8x8xf32> to vector<8x8xbf16>
    %cst_260 = arith.constant dense<0.000000e+00> : vector<8x16xf32>
    %707 = tpu.matmul %706, %10, %cst_260 {dimension_numbers = #tpu.dot_dimension_numbers<[1], [0], [0], [1], [0, 0, 1, 1], [], []>} : vector<8x8xbf16>, vector<8x16xbf16>, vector<8x16xf32> -> vector<8x16xf32>
    %708 = arith.truncf %707 : vector<8x16xf32> to vector<8x16xbf16>
    %709 = arith.index_cast %c11_i32 : i32 to index
    %c0_261 = arith.constant 0 : index
    %c0_262 = arith.constant 0 : index
    %710 = vector.load %arg0[%709, %c0_261, %c0_262] : memref<12x8x32xf32, #tpu.memory_space<vmem>>, vector<1x8x32xf32>
    %711 = vector.shape_cast %710 : vector<1x8x32xf32> to vector<8x32xf32>
    %cst_263 = arith.constant dense<0.000000e+00> : vector<8x32xf32>
    %712 = tpu.matmul %708, %0, %cst_263 {dimension_numbers = #tpu.dot_dimension_numbers<[1], [0], [0], [1], [0, 0, 1, 1], [], []>} : vector<8x16xbf16>, vector<16x32xbf16>, vector<8x32xf32> -> vector<8x32xf32>
    %713 = arith.addf %711, %712 : vector<8x32xf32>
    %714 = vector.broadcast %6 : vector<1x32xf32> to vector<8x32xf32>
    %715 = arith.addf %713, %714 : vector<8x32xf32>
    %716 = arith.index_cast %c11_i32 : i32 to index
    %c0_264 = arith.constant 0 : index
    %c0_265 = arith.constant 0 : index
    %717 = vector.load %arg1[%716, %c0_264, %c0_265] : memref<12x8x32xf32, #tpu.memory_space<vmem>>, vector<1x8x32xf32>
    %718 = vector.shape_cast %717 : vector<1x8x32xf32> to vector<8x32xf32>
    %cst_266 = arith.constant dense<0.000000e+00> : vector<8x32xf32>
    %719 = tpu.matmul %708, %1, %cst_266 {dimension_numbers = #tpu.dot_dimension_numbers<[1], [0], [0], [1], [0, 0, 1, 1], [], []>} : vector<8x16xbf16>, vector<16x32xbf16>, vector<8x32xf32> -> vector<8x32xf32>
    %720 = arith.addf %718, %719 : vector<8x32xf32>
    %721 = vector.broadcast %7 : vector<1x32xf32> to vector<8x32xf32>
    %722 = arith.addf %720, %721 : vector<8x32xf32>
    %723 = arith.index_cast %c11_i32 : i32 to index
    %c0_267 = arith.constant 0 : index
    %c0_268 = arith.constant 0 : index
    %724 = vector.load %arg2[%723, %c0_267, %c0_268] : memref<12x8x32xf32, #tpu.memory_space<vmem>>, vector<1x8x32xf32>
    %725 = vector.shape_cast %724 : vector<1x8x32xf32> to vector<8x32xf32>
    %cst_269 = arith.constant dense<0.000000e+00> : vector<8x32xf32>
    %726 = tpu.matmul %708, %2, %cst_269 {dimension_numbers = #tpu.dot_dimension_numbers<[1], [0], [0], [1], [0, 0, 1, 1], [], []>} : vector<8x16xbf16>, vector<16x32xbf16>, vector<8x32xf32> -> vector<8x32xf32>
    %727 = arith.addf %725, %726 : vector<8x32xf32>
    %728 = vector.broadcast %8 : vector<1x32xf32> to vector<8x32xf32>
    %729 = arith.addf %727, %728 : vector<8x32xf32>
    %cst_270 = arith.constant dense<0.000000e+00> : vector<8x32xf32>
    %730 = tpu.matmul %699, %3, %cst_270 {dimension_numbers = #tpu.dot_dimension_numbers<[1], [0], [0], [1], [0, 0, 1, 1], [], []>} : vector<8x32xbf16>, vector<32x32xbf16>, vector<8x32xf32> -> vector<8x32xf32>
    %cst_271 = arith.constant dense<0.000000e+00> : vector<8x32xf32>
    %731 = tpu.matmul %699, %4, %cst_271 {dimension_numbers = #tpu.dot_dimension_numbers<[1], [0], [0], [1], [0, 0, 1, 1], [], []>} : vector<8x32xbf16>, vector<32x32xbf16>, vector<8x32xf32> -> vector<8x32xf32>
    %cst_272 = arith.constant dense<0.000000e+00> : vector<8x32xf32>
    %732 = tpu.matmul %699, %5, %cst_272 {dimension_numbers = #tpu.dot_dimension_numbers<[1], [0], [0], [1], [0, 0, 1, 1], [], []>} : vector<8x32xbf16>, vector<32x32xbf16>, vector<8x32xf32> -> vector<8x32xf32>
    %733 = arith.addf %715, %730 : vector<8x32xf32>
    %734 = arith.negf %733 : vector<8x32xf32>
    %735 = math.exp %734 : vector<8x32xf32>
    %cst_273 = arith.constant 1.000000e+00 : f32
    %736 = vector.broadcast %cst_273 : f32 to vector<8x32xf32>
    %737 = arith.addf %736, %735 : vector<8x32xf32>
    %738 = arith.divf %736, %737 : vector<8x32xf32>
    %739 = arith.addf %722, %731 : vector<8x32xf32>
    %740 = arith.negf %739 : vector<8x32xf32>
    %741 = math.exp %740 : vector<8x32xf32>
    %cst_274 = arith.constant 1.000000e+00 : f32
    %742 = vector.broadcast %cst_274 : f32 to vector<8x32xf32>
    %743 = arith.addf %742, %741 : vector<8x32xf32>
    %744 = arith.divf %742, %743 : vector<8x32xf32>
    %745 = arith.mulf %738, %732 : vector<8x32xf32>
    %746 = arith.addf %729, %745 : vector<8x32xf32>
    %747 = math.tanh %746 : vector<8x32xf32>
    %cst_275 = arith.constant 1.000000e+00 : f32
    %748 = vector.broadcast %cst_275 : f32 to vector<8x32xf32>
    %749 = arith.subf %748, %744 : vector<8x32xf32>
    %750 = arith.mulf %749, %747 : vector<8x32xf32>
    %751 = arith.mulf %744, %691 : vector<8x32xf32>
    %752 = arith.addf %750, %751 : vector<8x32xf32>
    %753 = vector.broadcast %698 : vector<8x1xf32> to vector<8x32xf32>
    %754 = arith.mulf %753, %752 : vector<8x32xf32>
    %cst_276 = arith.constant 1.000000e+00 : f32
    %755 = vector.broadcast %cst_276 : f32 to vector<8x1xf32>
    %756 = arith.subf %755, %698 : vector<8x1xf32>
    %757 = vector.broadcast %756 : vector<8x1xf32> to vector<8x32xf32>
    %758 = arith.mulf %757, %691 : vector<8x32xf32>
    %759 = arith.addf %754, %758 : vector<8x32xf32>
    %760 = arith.index_cast %c11_i32 : i32 to index
    %c0_277 = arith.constant 0 : index
    %c0_278 = arith.constant 0 : index
    %761 = vector.load %arg15[%760, %c0_277, %c0_278] : memref<12x8x32xf32, #tpu.memory_space<vmem>>, vector<1x8x32xf32>
    %762 = vector.shape_cast %761 : vector<1x8x32xf32> to vector<8x32xf32>
    %763 = vector.shape_cast %759 : vector<8x32xf32> to vector<1x8x32xf32>
    tpu.vector_store %arg15[%760, %c0_277, %c0_278], %763 {strides = array<i32>} : memref<12x8x32xf32, #tpu.memory_space<vmem>>, vector<1x8x32xf32>,
    %c11_i32_279 = arith.constant 11 : i32
    return
  }
}

</mosaic_0001>

<bundles_post_ra>
// kernel: forward_sequence.1
= control target key start
LH: loop header
LB: loop body
LE: loop exit
PB: predicated region body
PF: predicated region fallthrough
CT: control target
= control target key end

     0   :  { %vm79_vm0 = vcmask 261120   ;;  %s3778_s0 = inlined_call_operand.vmem [shape: f32[12,8,32], index: 0, kind: input, shape index: {}]   ;;  %s3779_s1 = inlined_call_operand.vmem [shape: f32[12,8,32], index: 1, kind: input, shape index: {}]   ;;  %s3780_s2 = inlined_call_operand.vmem [shape: f32[12,8,32], index: 2, kind: input, shape index: {}]   ;;  %s3781_s3 = inlined_call_operand.vmem [shape: f32[12,8,1], index: 3, kind: input, shape index: {}]   ;;  %s3782_s4 = inlined_call_operand.vmem [shape: bf16[16,32], index: 4, kind: input, shape index: {}]   ;;  %s3783_s5 = inlined_call_operand.vmem [shape: bf16[16,32], index: 5, kind: input, shape index: {}]   ;;  %s3784_s6 = inlined_call_operand.vmem [shape: bf16[16,32], index: 6, kind: input, shape index: {}]   ;;  %s3785_s7 = inlined_call_operand.vmem [shape: bf16[32,32], index: 7, kind: input, shape index: {}]   ;;  %s3786_s8 = inlined_call_operand.vmem [shape: bf16[32,32], index: 8, kind: input, shape index: {}]   ;;  %s3787_s9 = inlined_call_operand.vmem [shape: bf16[32,32], index: 9, kind: input, shape index: {}]   ;;  %s3788_s10 = inlined_call_operand.vmem [shape: f32[1,32], index: 10, kind: input, shape index: {}]   ;;  %s3789_s11 = inlined_call_operand.vmem [shape: f32[1,32], index: 11, kind: input, shape index: {}]   ;;  %s3790_s12 = inlined_call_operand.vmem [shape: f32[1,32], index: 12, kind: input, shape index: {}]   ;;  %s3791_s13 = inlined_call_operand.vmem [shape: bf16[32,8], index: 13, kind: input, shape index: {}]   ;;  %s3792_s14 = inlined_call_operand.vmem [shape: bf16[8,16], index: 14, kind: input, shape index: {}]   ;;  %s3793_s15 = inlined_call_operand.hbm [shape: f32[12,8,32], index: 15, kind: output, shape index: {}]  }
   0x1   :  { %v3037_v0 = vld [vmem:[%s3791_s13 + $0x8] sm:$0xff]  ;;  %v3042_v1 = vld [vmem:[%s3780_s2] sm:$0xff] }
   0x2   :  { %80 = vst.msk [vmem:[#allocation2] sm:$0xff] %vm79_vm0, %v3042_v1  ;;  %105 = vmatpush.bf16.msra.mxu0 %v3037_v0  ;;  %v3050_v2 = vld [vmem:[%s3791_s13] sm:$0xff] }
   0x3   :  { %20 = vsyncpa [#allocation3], 0  ;;  %v3054_v3 = vpack.c.bf16 %v3042_v1, %v3042_v1  ;;  %vm114_vm1 = vcmask 64512   ;;  %v77_v9 = vld [vmem:[%s3792_s14] sm:$0xf]  ;;  %vm137_vm2 = vcmask 1043456  }
   0x4   :  { %v3063_v10 = vsel %vm137_vm2, %v77_v9, 0  ;;  %v3070_v24 = vld [vmem:[%s3782_s4] sm:$0xff]  ;;  %v3089_v27 = vld [vmem:[%s3785_s7 + $0x8] sm:$0xff]  ;;  %v2950_v33 = vmov 0   ;;  %v2581_v35 = vld [vmem:[%s3781_s3 + $0x10] sm:$0xff]  ;;  %vm163_vm7 = vcmask 130048  }
   0x5   :  { %148 = vmatpush.bf16.msra.mxu1 %v3063_v10  ;;  %v3075_v25 = vld [vmem:[%s3783_s5] sm:$0xff]  ;;  %174 = vmatpush.bf16.msra.mxu2 %v3070_v24  ;;  %v3101_v29 = vld [vmem:[%s3786_s8 + $0x8] sm:$0xff]  ;;  %v3132_v37 = vld [vmem:[%s3781_s3 + $0x18] sm:$0xff]  ;;  %v578_v38 = vsub.f32 1.0, %v2581_v35  ;;  %s2511_s18 = sshll.u32 %s3793_s15, 4  ;;  %s2952_s19 = smov 128   ;;  %s2512_s18 = int_to_ptr.hbm [resolvable:$true] %s2511_s18 }
   0x6   :  { %106 = vmatpush.bf16.msra.mxu0 %v3050_v2  ;;  %v3080_v26 = vld [vmem:[%s3784_s6] sm:$0xff]  ;;  %200 = vmatpush.bf16.msra.mxu3 %v3075_v25  ;;  %v3114_v31 = vld [vmem:[%s3787_s9 + $0x8] sm:$0xff]  ;;  %s2953_s20 = smov 8  }
   0x7   :  { %v3096_v28 = vld [vmem:[%s3785_s7] sm:$0xff]  ;;  %v2523_v32 = vld [vmem:[%s3781_s3 + $0x8] sm:$0xff]  ;;  %2736 = vset.pattern.permute.xlu0 %v2950_v33  ;;  %2737 = vset.pattern.permute.xlu1 %v2950_v33 }
   0x8   :  { %v3108_v30 = vld [vmem:[%s3786_s8] sm:$0xff]  ;;  %v365_v34 = vsub.f32 1.0, %v2523_v32  ;;  %2738 = vset.pattern.permute.xlu2 %v2950_v33  ;;  %v2534_v47 = vld [vmem:[%s3778_s0 + $0x8] sm:$0xff] }
   0x9   :  { %2532 = vmatmul.msk.bf16.vlgmr.msra.gmra.mxu0 %vm79_vm0, %v3054_v3  ;;  %226 = vmatpush.bf16.msrb.mxu1 %v3080_v26  ;;  %v3126_v36 = vld [vmem:[%s3787_s9] sm:$0xff]  ;;  %v2540_v48 = vld [vmem:[%s3779_s1 + $0x8] sm:$0xff] }
   0xa   :  { %255 = vmatpush.bf16.msrb.mxu2 %v3089_v27  ;;  %280 = vmatpush.bf16.msrb.mxu3 %v3101_v29  ;;  %v3163_v53 = vld [vmem:[%s3788_s10] ss:$0 sm:$0xff] }
   0xb   :  { %305 = vmatpush.bf16.msrb.mxu0 %v3114_v31  ;;  %368 = vperm.xlu1 %2737, %v365_v34   ;;  %v3168_v54 = vld [vmem:[%s3789_s11] ss:$0 sm:$0xff] }
   0xc   :  { %574 = vperm.xlu2 %2738, %v2581_v35  }
   0xe   :  { %256 = vmatpush.bf16.msrb.mxu2 %v3096_v28  ;;  %281 = vmatpush.bf16.msrb.mxu3 %v3108_v30 }
   0xf   :  { %306 = vmatpush.bf16.msrb.mxu0 %v3126_v36 }
  0x13   :  { %461 = vmatpush.bf16.msra.mxu0 %v3075_v25 }
  0x14   :  { %581 = vperm.xlu2 %2738, %v578_v38  }
  0x19   :  { %2578 = vmatmul.msk.bf16.vlgmr.msrb.gmra.mxu0 %vm79_vm0, %v3054_v3 }
  0x1a   :  { %518 = vmatpush.bf16.msrb.mxu0 %v3114_v31 }
  0x1e   :  { %519 = vmatpush.bf16.msrb.mxu0 %v3126_v36 }
  0x86   :  { %v108_v4 = vpop.f32.mrf.mxu0 }
  0x87   :  { %v112_v5 = vmul.f32 1.442695, %v108_v4 }
  0x89   :  { %2742 = vpow2.f32 %v112_v5 }
  0x8e   :  { %v110_v6 = vpop.f32.mrf.mxu0 }
  0x8f   :  { %v2743_v7 = vpop.eup %2742 }
  0x90   :  { %v115_v8 = vsel %vm114_vm1, %v2743_v7, 0.0 }
  0x91   :  { %116 = vadd.xlane.f32.xlu0 %v115_v8 }
  0x96   :  { %v308_v46 = vpop.f32.mrf.mxu0 }
  0x9e   :  { %v310_v55 = vpop.f32.mrf.mxu0 }
  0xa5   :  { %361 = vperm.xlu0 %2736, %v2523_v32  }
  0xad   :  { %787 = vperm.xlu0 %2736, %v3132_v37  }
 0x104   :  { %v117_v11 = vpop.xlane.xlu0 %116 }
 0x105   :  { %2744 = vrcp.f32 %v117_v11  ;;  %v129_v15 = vand.u32 2147483648, %v117_v11  ;;  %v127_v17 = vand.u32 2147483647, %v117_v11  ;;  %vm123_vm4 = vweird.f32 %v117_v11 }
 0x107   :  { %v130_v19 = vor.u32 1.1754944e-38, %v129_v15  ;;  %vm128_vm6 = vcmp.eq.f32.partialorder %v127_v17, 8.507059e+37  ;;  %v2546_v15 = vld [vmem:[%s3780_s2 + $0x8] sm:$0xff] }
 0x10b   :  { %v2745_v12 = vpop.eup %2744 }
 0x10c   :  { %v119_v13 = vmul.f32 %v2745_v12, %v117_v11  ;;  %vm124_vm3 = vweird.f32 %v2745_v12 }
 0x10d   :  { %vm125_vm5 = vmor %vm123_vm4, %vm124_vm3 }
 0x10e   :  { %v120_v14 = vsub.f32 1.0, %v119_v13 }
 0x110   :  { %v121_v16 = vmul.f32 %v2745_v12, %v120_v14 }
 0x112   :  { %v122_v18 = vadd.f32 %v2745_v12, %v121_v16 }
 0x114   :  { %v126_v20 = vsel %vm125_vm5, %v2745_v12, %v122_v18 }
 0x115   :  { %v131_v21 = vsel %vm128_vm6, %v130_v19, %v126_v20 }
 0x116   :  { %v132_v22 = vmul.f32 %v2743_v7, %v131_v21 }
 0x118   :  { %v133_v23 = vpack.c.bf16 %v132_v22, %v132_v22  ;;  %v3178_v22 = vld [vmem:[%s3790_s12] ss:$0 sm:$0xff] }
 0x11a   :  { %2533 = vmatmul.msk.bf16.vlgmr.msra.gmra.mxu1 %vm114_vm1, %v133_v23 }
 0x11b   :  { %387 = vmatpush.bf16.msra.mxu1 %v3037_v0 }
 0x11f   :  { %388 = vmatpush.bf16.msra.mxu1 %v3050_v2 }
 0x197   :  { %v150_v39 = vpop.f32.mrf.mxu1 }
 0x198   :  { %v154_v40 = vpack.c.bf16 %v150_v39, %v150_v39 }
 0x19a   :  { %2539 = vmatmul.msk.bf16.vlgmr.msra.gmra.mxu2 %vm163_vm7, %v154_v40  ;;  %2545 = vmatmul.msk.bf16.vlgmr.msra.gmra.mxu3 %vm163_vm7, %v154_v40 }
 0x19b   :  { %2551 = vmatmul.msk.bf16.vlgmr.msrb.gmra.mxu1 %vm163_vm7, %v154_v40  ;;  %425 = vmatpush.bf16.msra.mxu2 %v3063_v10 }
 0x19c   :  { %444 = vmatpush.bf16.msra.mxu3 %v3070_v24  ;;  %478 = vmatpush.bf16.msrb.mxu1 %v3080_v26 }
 0x19f   :  { %v152_v41 = vpop.f32.mrf.mxu1 }
 0x1aa   :  { %2560 = vmatmul.msk.bf16.vlgmr.msrb.gmra.mxu2 %vm79_vm0, %v3054_v3  ;;  %2569 = vmatmul.msk.bf16.vlgmr.msrb.gmra.mxu3 %vm79_vm0, %v3054_v3 }
 0x1ab   :  { %492 = vmatpush.bf16.msrb.mxu2 %v3089_v27  ;;  %505 = vmatpush.bf16.msrb.mxu3 %v3101_v29 }
 0x1af   :  { %493 = vmatpush.bf16.msrb.mxu2 %v3096_v28  ;;  %506 = vmatpush.bf16.msrb.mxu3 %v3108_v30 }
 0x218   :  { %v228_v42 = vpop.f32.mrf.mxu1 }
 0x219   :  { %v232_v21 = vadd.f32 %v2546_v15, %v228_v42 }
 0x21b   :  { %v236_v38 = vadd.f32 %v3178_v22, %v232_v21 }
 0x21d   :  { %v176_v43 = vpop.f32.mrf.mxu2  ;;  %v202_v44 = vpop.f32.mrf.mxu3 }
 0x21e   :  { %v180_v51 = vadd.f32 %v2534_v47, %v176_v43  ;;  %v206_v52 = vadd.f32 %v2540_v48, %v202_v44 }
 0x220   :  { %v230_v45 = vpop.f32.mrf.mxu1  ;;  %v184_v56 = vadd.f32 %v3163_v53, %v180_v51  ;;  %v210_v57 = vadd.f32 %v3168_v54, %v206_v52 }
 0x225   :  { %v178_v49 = vpop.f32.mrf.mxu2  ;;  %v204_v50 = vpop.f32.mrf.mxu3 }
 0x226   :  { %v369_v49 = vpop.permute.xlu1 %368 }
 0x227   :  { %v371_v55 = vmul.f32 %v369_v49, %v3042_v1 }
 0x22d   :  { %v258_v58 = vpop.f32.mrf.mxu2  ;;  %v283_v59 = vpop.f32.mrf.mxu3 }
 0x22e   :  { %v312_v60 = vadd.f32 %v258_v58, %v184_v56  ;;  %v332_v61 = vadd.f32 %v283_v59, %v210_v57 }
 0x230   :  { %v2579_v62 = vmul.f32 -1.442695, %v312_v60  ;;  %v2580_v63 = vmul.f32 -1.442695, %v332_v61 }
 0x232   :  { %2746 = vpow2.f32 %v2579_v62 }
 0x233   :  { %2748 = vpow2.f32 %v2580_v63  ;;  %v791_v63 = vsub.f32 1.0, %v3132_v37  ;;  %v3206_v37 = vld [vmem:[%s3781_s3 + $0x30] sm:$0xff] }
 0x235   :  { %v260_v3 = vpop.f32.mrf.mxu2  ;;  %v285_v4 = vpop.f32.mrf.mxu3 }
 0x236   :  { %v3197_v3 = vld [vmem:[%s3781_s3 + $0x20] sm:$0xff] }
 0x237   :  { %v1004_v4 = vsub.f32 1.0, %v3197_v3 }
 0x238   :  { %v2747_v5 = vpop.eup %2746 }
 0x239   :  { %v2749_v6 = vpop.eup %2748  ;;  %v316_v7 = vadd.f32 1.0, %v2747_v5  ;;  %v2623_v5 = vld [vmem:[%s3781_s3 + $0x28] sm:$0xff] }
 0x23a   :  { %v336_v8 = vadd.f32 1.0, %v2749_v6  ;;  %v1217_v6 = vsub.f32 1.0, %v2623_v5 }
 0x23b   :  { %2750 = vrcp.f32 %v316_v7  ;;  %v328_v16 = vand.u32 2147483648, %v316_v7  ;;  %v326_v19 = vand.u32 2147483647, %v316_v7  ;;  %vm322_vm9 = vweird.f32 %v316_v7 }
 0x23c   :  { %2752 = vrcp.f32 %v336_v8  ;;  %v348_v40 = vand.u32 2147483648, %v336_v8  ;;  %vm342_vm13 = vweird.f32 %v336_v8  ;;  %v346_v41 = vand.u32 2147483647, %v336_v8 }
 0x23d   :  { %v329_v32 = vor.u32 1.1754944e-38, %v328_v16  ;;  %vm327_vm11 = vcmp.eq.f32.partialorder %v326_v19, 8.507059e+37 }
 0x23e   :  { %v349_v44 = vor.u32 1.1754944e-38, %v348_v40  ;;  %vm347_vm15 = vcmp.eq.f32.partialorder %v346_v41, 8.507059e+37 }
 0x241   :  { %v2751_v9 = vpop.eup %2750 }
 0x242   :  { %v2753_v11 = vpop.eup %2752  ;;  %v318_v12 = vmul.f32 %v2751_v9, %v316_v7  ;;  %vm323_vm8 = vweird.f32 %v2751_v9 }
 0x243   :  { %v338_v13 = vmul.f32 %v2753_v11, %v336_v8  ;;  %vm324_vm10 = vmor %vm322_vm9, %vm323_vm8  ;;  %vm343_vm12 = vweird.f32 %v2753_v11 }
 0x244   :  { %v319_v14 = vsub.f32 1.0, %v318_v12  ;;  %vm344_vm14 = vmor %vm342_vm13, %vm343_vm12 }
 0x245   :  { %v339_v17 = vsub.f32 1.0, %v338_v13 }
 0x246   :  { %v320_v18 = vmul.f32 %v2751_v9, %v319_v14 }
 0x247   :  { %v340_v20 = vmul.f32 %v2753_v11, %v339_v17 }
 0x248   :  { %v321_v23 = vadd.f32 %v2751_v9, %v320_v18 }
 0x249   :  { %v341_v35 = vadd.f32 %v2753_v11, %v340_v20 }
 0x24a   :  { %v325_v33 = vsel %vm324_vm10, %v2751_v9, %v321_v23 }
 0x24b   :  { %v330_v34 = vsel %vm327_vm11, %v329_v32, %v325_v33  ;;  %v345_v43 = vsel %vm344_vm14, %v2753_v11, %v341_v35 }
 0x24c   :  { %v352_v39 = vmul.f32 %v330_v34, %v308_v46  ;;  %v350_v45 = vsel %vm347_vm15, %v349_v44, %v345_v43  ;;  %v362_v46 = vpop.permute.xlu0 %361 }
 0x24d   :  { %v355_v47 = vsub.f32 1.0, %v350_v45  ;;  %v357_v51 = vmul.f32 %v350_v45, %v3042_v1 }
 0x24e   :  { %v353_v42 = vadd.f32 %v352_v39, %v236_v38  ;;  %v2584_v39 = vld [vmem:[%s3778_s0 + $0x10] sm:$0xff] }
 0x250   :  { %2754 = vtanh.f32 %v353_v42 }
 0x256   :  { %v2755_v48 = vpop.eup %2754 }
 0x257   :  { %v356_v50 = vmul.f32 %v2755_v48, %v355_v47  ;;  %v2586_v48 = vld [vmem:[%s3779_s1 + $0x10] sm:$0xff] }
 0x259   :  { %v358_v52 = vadd.f32 %v357_v51, %v356_v50 }
 0x25b   :  { %v364_v56 = vmul.f32 %v362_v46, %v358_v52 }
 0x25d   :  { %v3183_v57 = vadd.f32 %v371_v55, %v364_v56 }
 0x25f   :  { %374 = vst.msk [vmem:[#allocation2 + $0x8] sm:$0xff] %vm79_vm0, %v3183_v57  ;;  %v377_v58 = vpack.c.bf16 %v3183_v57, %v3183_v57 }
 0x261   :  { %2582 = vmatmul.msk.bf16.vlgmr.msra.gmra.mxu1 %vm79_vm0, %v377_v58 }
 0x262   :  { %600 = vmatpush.bf16.msra.mxu1 %v3037_v0 }
 0x266   :  { %601 = vmatpush.bf16.msra.mxu1 %v3050_v2 }
 0x2de   :  { %v390_v59 = vpop.f32.mrf.mxu1 }
 0x2df   :  { %v394_v60 = vmul.f32 1.442695, %v390_v59 }
 0x2e1   :  { %2756 = vpow2.f32 %v394_v60 }
 0x2e6   :  { %v392_v1 = vpop.f32.mrf.mxu1 }
 0x2e7   :  { %v2757_v61 = vpop.eup %2756 }
 0x2e8   :  { %v396_v62 = vsel %vm114_vm1, %v2757_v61, 0.0 }
 0x2e9   :  { %397 = vadd.xlane.f32.xlu1 %v396_v62 }
 0x302   :  { %794 = vperm.xlu1 %2737, %v791_v63  }
 0x30a   :  { %1007 = vperm.xlu1 %2737, %v1004_v4  }
 0x312   :  { %1213 = vperm.xlu1 %2737, %v2623_v5  }
 0x31a   :  { %1220 = vperm.xlu1 %2737, %v1217_v6  }
 0x322   :  { %1426 = vperm.xlu1 %2737, %v3206_v37  }
 0x35c   :  { %v398_v7 = vpop.xlane.xlu1 %397 }
 0x35d   :  { %2758 = vrcp.f32 %v398_v7  ;;  %v410_v12 = vand.u32 2147483648, %v398_v7  ;;  %v408_v14 = vand.u32 2147483647, %v398_v7  ;;  %vm404_vm3 = vweird.f32 %v398_v7 }
 0x35f   :  { %v411_v16 = vor.u32 1.1754944e-38, %v410_v12  ;;  %vm409_vm5 = vcmp.eq.f32.partialorder %v408_v14, 8.507059e+37 }
 0x363   :  { %v2759_v8 = vpop.eup %2758 }
 0x364   :  { %v400_v9 = vmul.f32 %v2759_v8, %v398_v7  ;;  %vm405_vm2 = vweird.f32 %v2759_v8  ;;  %v2588_v7 = vld [vmem:[%s3780_s2 + $0x10] sm:$0xff] }
 0x365   :  { %vm406_vm4 = vmor %vm404_vm3, %vm405_vm2 }
 0x366   :  { %v401_v11 = vsub.f32 1.0, %v400_v9 }
 0x368   :  { %v402_v13 = vmul.f32 %v2759_v8, %v401_v11 }
 0x36a   :  { %v403_v15 = vadd.f32 %v2759_v8, %v402_v13 }
 0x36c   :  { %v407_v17 = vsel %vm406_vm4, %v2759_v8, %v403_v15 }
 0x36d   :  { %v412_v18 = vsel %vm409_vm5, %v411_v16, %v407_v17 }
 0x36e   :  { %v413_v19 = vmul.f32 %v2757_v61, %v412_v18 }
 0x370   :  { %v414_v20 = vpack.c.bf16 %v413_v19, %v413_v19 }
 0x372   :  { %2583 = vmatmul.msk.bf16.vlgmr.msra.gmra.mxu2 %vm114_vm1, %v414_v20 }
 0x373   :  { %638 = vmatpush.bf16.msra.mxu2 %v3063_v10 }
 0x382   :  { %2590 = vmatmul.msk.bf16.vlgmr.msrb.gmra.mxu2 %vm79_vm0, %v377_v58 }
 0x383   :  { %705 = vmatpush.bf16.msrb.mxu2 %v3089_v27 }
 0x387   :  { %706 = vmatpush.bf16.msrb.mxu2 %v3096_v28 }
 0x3f5   :  { %v427_v21 = vpop.f32.mrf.mxu2 }
 0x3f6   :  { %v431_v23 = vpack.c.bf16 %v427_v21, %v427_v21 }
 0x3f8   :  { %2585 = vmatmul.msk.bf16.vlgmr.msra.gmra.mxu3 %vm163_vm7, %v431_v23  ;;  %2587 = vmatmul.msk.bf16.vlgmr.msra.gmra.mxu0 %vm163_vm7, %v431_v23 }
 0x3f9   :  { %2589 = vmatmul.msk.bf16.vlgmr.msrb.gmra.mxu1 %vm163_vm7, %v431_v23  ;;  %657 = vmatpush.bf16.msra.mxu3 %v3070_v24  ;;  %v575_v23 = vpop.permute.xlu2 %574 }
 0x3fa   :  { %674 = vmatpush.bf16.msra.mxu0 %v3075_v25  ;;  %691 = vmatpush.bf16.msrb.mxu1 %v3080_v26 }
 0x3fd   :  { %v429_v32 = vpop.f32.mrf.mxu2 }
 0x405   :  { %v495_v33 = vpop.f32.mrf.mxu2 }
 0x408   :  { %2591 = vmatmul.msk.bf16.vlgmr.msrb.gmra.mxu3 %vm79_vm0, %v377_v58  ;;  %2592 = vmatmul.msk.bf16.vlgmr.msrb.gmra.mxu0 %vm79_vm0, %v377_v58 }
 0x409   :  { %718 = vmatpush.bf16.msrb.mxu3 %v3101_v29  ;;  %731 = vmatpush.bf16.msrb.mxu0 %v3114_v31 }
 0x40d   :  { %v497_v34 = vpop.f32.mrf.mxu2  ;;  %719 = vmatpush.bf16.msrb.mxu3 %v3108_v30  ;;  %732 = vmatpush.bf16.msrb.mxu0 %v3126_v36 }
 0x475   :  { %v463_v35 = vpop.f32.mrf.mxu0 }
 0x476   :  { %v480_v38 = vpop.f32.mrf.mxu1  ;;  %v467_v51 = vadd.f32 %v2586_v48, %v463_v35 }
 0x477   :  { %v484_v12 = vadd.f32 %v2588_v7, %v480_v38 }
 0x478   :  { %v468_v55 = vadd.f32 %v3168_v54, %v467_v51 }
 0x479   :  { %v485_v18 = vadd.f32 %v3178_v22, %v484_v12 }
 0x47b   :  { %v446_v40 = vpop.f32.mrf.mxu3 }
 0x47c   :  { %v450_v41 = vadd.f32 %v2584_v39, %v446_v40 }
 0x47d   :  { %v465_v42 = vpop.f32.mrf.mxu0 }
 0x47e   :  { %v451_v43 = vadd.f32 %v3163_v53, %v450_v41  ;;  %v482_v44 = vpop.f32.mrf.mxu1 }
 0x480   :  { %v525_v45 = vadd.f32 %v495_v33, %v451_v43 }
 0x482   :  { %v2593_v47 = vmul.f32 -1.442695, %v525_v45  ;;  %v582_v45 = vpop.permute.xlu2 %581 }
 0x483   :  { %v448_v49 = vpop.f32.mrf.mxu3  ;;  %v584_v48 = vmul.f32 %v582_v45, %v3183_v57 }
 0x484   :  { %2760 = vpow2.f32 %v2593_v47 }
 0x485   :  { %v521_v50 = vpop.f32.mrf.mxu0 }
 0x48a   :  { %v2761_v52 = vpop.eup %2760 }
 0x48b   :  { %v529_v46 = vadd.f32 1.0, %v2761_v52  ;;  %v508_v56 = vpop.f32.mrf.mxu3 }
 0x48c   :  { %v545_v58 = vadd.f32 %v508_v56, %v468_v55 }
 0x48d   :  { %2762 = vrcp.f32 %v529_v46  ;;  %v523_v59 = vpop.f32.mrf.mxu0  ;;  %v541_v5 = vand.u32 2147483648, %v529_v46  ;;  %v539_v9 = vand.u32 2147483647, %v529_v46  ;;  %vm535_vm8 = vweird.f32 %v529_v46 }
 0x48e   :  { %v2594_v60 = vmul.f32 -1.442695, %v545_v58 }
 0x48f   :  { %v542_v13 = vor.u32 1.1754944e-38, %v541_v5  ;;  %vm540_vm10 = vcmp.eq.f32.partialorder %v539_v9, 8.507059e+37 }
 0x490   :  { %2764 = vpow2.f32 %v2594_v60 }
 0x493   :  { %v2763_v1 = vpop.eup %2762  ;;  %v510_v61 = vpop.f32.mrf.mxu3 }
 0x494   :  { %v531_v62 = vmul.f32 %v2763_v1, %v529_v46  ;;  %vm536_vm6 = vweird.f32 %v2763_v1 }
 0x495   :  { %vm537_vm9 = vmor %vm535_vm8, %vm536_vm6 }
 0x496   :  { %v2765_v63 = vpop.eup %2764  ;;  %v532_v4 = vsub.f32 1.0, %v531_v62 }
 0x497   :  { %v549_v6 = vadd.f32 1.0, %v2765_v63 }
 0x498   :  { %v533_v8 = vmul.f32 %v2763_v1, %v532_v4 }
 0x499   :  { %2766 = vrcp.f32 %v549_v6  ;;  %v561_v32 = vand.u32 2147483648, %v549_v6  ;;  %v559_v34 = vand.u32 2147483647, %v549_v6  ;;  %vm555_vm12 = vweird.f32 %v549_v6 }
 0x49a   :  { %v534_v11 = vadd.f32 %v2763_v1, %v533_v8 }
 0x49b   :  { %v562_v38 = vor.u32 1.1754944e-38, %v561_v32  ;;  %vm560_vm14 = vcmp.eq.f32.partialorder %v559_v34, 8.507059e+37  ;;  %v2600_v34 = vld [vmem:[%s3779_s1 + $0x18] sm:$0xff] }
 0x49c   :  { %v538_v14 = vsel %vm537_vm9, %v2763_v1, %v534_v11 }
 0x49d   :  { %v543_v15 = vsel %vm540_vm10, %v542_v13, %v538_v14 }
 0x49e   :  { %v565_v16 = vmul.f32 %v543_v15, %v521_v50 }
 0x49f   :  { %v2767_v17 = vpop.eup %2766 }
 0x4a0   :  { %v551_v19 = vmul.f32 %v2767_v17, %v549_v6  ;;  %v566_v20 = vadd.f32 %v565_v16, %v485_v18  ;;  %vm556_vm11 = vweird.f32 %v2767_v17 }
 0x4a1   :  { %vm557_vm13 = vmor %vm555_vm12, %vm556_vm11 }
 0x4a2   :  { %v552_v21 = vsub.f32 1.0, %v551_v19  ;;  %2768 = vtanh.f32 %v566_v20 }
 0x4a4   :  { %v553_v33 = vmul.f32 %v2767_v17, %v552_v21 }
 0x4a6   :  { %v554_v35 = vadd.f32 %v2767_v17, %v553_v33 }
 0x4a8   :  { %v558_v39 = vsel %vm557_vm13, %v2767_v17, %v554_v35  ;;  %v2769_v42 = vpop.eup %2768  ;;  %v2598_v17 = vld [vmem:[%s3778_s0 + $0x18] sm:$0xff] }
 0x4a9   :  { %v563_v40 = vsel %vm560_vm14, %v562_v38, %v558_v39 }
 0x4aa   :  { %v568_v41 = vsub.f32 1.0, %v563_v40  ;;  %v570_v44 = vmul.f32 %v563_v40, %v3183_v57 }
 0x4ac   :  { %v569_v43 = vmul.f32 %v2769_v42, %v568_v41 }
 0x4ae   :  { %v571_v47 = vadd.f32 %v570_v44, %v569_v43 }
 0x4b0   :  { %v577_v49 = vmul.f32 %v575_v23, %v571_v47 }
 0x4b2   :  { %v3240_v50 = vadd.f32 %v584_v48, %v577_v49 }
 0x4b4   :  { %587 = vst.msk [vmem:[#allocation2 + $0x10] sm:$0xff] %vm79_vm0, %v3240_v50  ;;  %v590_v51 = vpack.c.bf16 %v3240_v50, %v3240_v50 }
 0x4b6   :  { %2596 = vmatmul.msk.bf16.vlgmr.msra.gmra.mxu1 %vm79_vm0, %v590_v51 }
 0x4b7   :  { %813 = vmatpush.bf16.msra.mxu1 %v3037_v0 }
 0x4bb   :  { %814 = vmatpush.bf16.msra.mxu1 %v3050_v2 }
 0x533   :  { %v603_v52 = vpop.f32.mrf.mxu1 }
 0x534   :  { %v607_v55 = vmul.f32 1.442695, %v603_v52 }
 0x536   :  { %2770 = vpow2.f32 %v607_v55 }
 0x53b   :  { %v605_v46 = vpop.f32.mrf.mxu1 }
 0x53c   :  { %v2771_v57 = vpop.eup %2770 }
 0x53d   :  { %v609_v56 = vsel %vm114_vm1, %v2771_v57, 0.0 }
 0x53e   :  { %610 = vadd.xlane.f32.xlu2 %v609_v56  ;;  %v2602_v56 = vld [vmem:[%s3780_s2 + $0x18] sm:$0xff] }
 0x556   :  { %1000 = vperm.xlu2 %2738, %v3197_v3  }
 0x5b1   :  { %v611_v58 = vpop.xlane.xlu2 %610 }
 0x5b2   :  { %2772 = vrcp.f32 %v611_v58  ;;  %v623_v61 = vand.u32 2147483648, %v611_v58  ;;  %v621_v63 = vand.u32 2147483647, %v611_v58  ;;  %vm617_vm2 = vweird.f32 %v611_v58 }
 0x5b4   :  { %v624_v5 = vor.u32 1.1754944e-38, %v623_v61  ;;  %vm622_vm4 = vcmp.eq.f32.partialorder %v621_v63, 8.507059e+37 }
 0x5b8   :  { %v2773_v59 = vpop.eup %2772 }
 0x5b9   :  { %v613_v60 = vmul.f32 %v2773_v59, %v611_v58  ;;  %vm618_vm15 = vweird.f32 %v2773_v59 }
 0x5ba   :  { %vm619_vm3 = vmor %vm617_vm2, %vm618_vm15 }
 0x5bb   :  { %v614_v1 = vsub.f32 1.0, %v613_v60 }
 0x5bd   :  { %v615_v62 = vmul.f32 %v2773_v59, %v614_v1 }
 0x5bf   :  { %v616_v4 = vadd.f32 %v2773_v59, %v615_v62 }
 0x5c1   :  { %v620_v6 = vsel %vm619_vm3, %v2773_v59, %v616_v4 }
 0x5c2   :  { %v625_v7 = vsel %vm622_vm4, %v624_v5, %v620_v6 }
 0x5c3   :  { %v626_v8 = vmul.f32 %v2771_v57, %v625_v7 }
 0x5c5   :  { %v627_v9 = vpack.c.bf16 %v626_v8, %v626_v8 }
 0x5c7   :  { %2597 = vmatmul.msk.bf16.vlgmr.msra.gmra.mxu2 %vm114_vm1, %v627_v9 }
 0x5c8   :  { %851 = vmatpush.bf16.msra.mxu2 %v3063_v10 }
 0x5d7   :  { %2604 = vmatmul.msk.bf16.vlgmr.msrb.gmra.mxu2 %vm79_vm0, %v590_v51 }
 0x5d8   :  { %918 = vmatpush.bf16.msrb.mxu2 %v3089_v27 }
 0x5dc   :  { %919 = vmatpush.bf16.msrb.mxu2 %v3096_v28 }
 0x64a   :  { %v640_v3 = vpop.f32.mrf.mxu2 }
 0x64b   :  { %v644_v11 = vpack.c.bf16 %v640_v3, %v640_v3 }
 0x64d   :  { %2599 = vmatmul.msk.bf16.vlgmr.msra.gmra.mxu3 %vm163_vm7, %v644_v11  ;;  %2601 = vmatmul.msk.bf16.vlgmr.msra.gmra.mxu0 %vm163_vm7, %v644_v11 }
 0x64e   :  { %2603 = vmatmul.msk.bf16.vlgmr.msrb.gmra.mxu1 %vm163_vm7, %v644_v11  ;;  %870 = vmatpush.bf16.msra.mxu3 %v3070_v24 }
 0x64f   :  { %887 = vmatpush.bf16.msra.mxu0 %v3075_v25  ;;  %904 = vmatpush.bf16.msrb.mxu1 %v3080_v26 }
 0x652   :  { %v642_v12 = vpop.f32.mrf.mxu2 }
 0x65a   :  { %v708_v13 = vpop.f32.mrf.mxu2 }
 0x65d   :  { %2605 = vmatmul.msk.bf16.vlgmr.msrb.gmra.mxu3 %vm79_vm0, %v590_v51  ;;  %2606 = vmatmul.msk.bf16.vlgmr.msrb.gmra.mxu0 %vm79_vm0, %v590_v51 }
 0x65e   :  { %931 = vmatpush.bf16.msrb.mxu3 %v3101_v29  ;;  %944 = vmatpush.bf16.msrb.mxu0 %v3114_v31 }
 0x662   :  { %v710_v14 = vpop.f32.mrf.mxu2  ;;  %932 = vmatpush.bf16.msrb.mxu3 %v3108_v30  ;;  %945 = vmatpush.bf16.msrb.mxu0 %v3126_v36 }
 0x6ca   :  { %v676_v15 = vpop.f32.mrf.mxu0 }
 0x6cb   :  { %v693_v16 = vpop.f32.mrf.mxu1  ;;  %v680_v39 = vadd.f32 %v2600_v34, %v676_v15 }
 0x6cc   :  { %v697_v1 = vadd.f32 %v2602_v56, %v693_v16 }
 0x6cd   :  { %v681_v41 = vadd.f32 %v3168_v54, %v680_v39 }
 0x6ce   :  { %v698_v6 = vadd.f32 %v3178_v22, %v697_v1 }
 0x6d0   :  { %v659_v18 = vpop.f32.mrf.mxu3 }
 0x6d1   :  { %v663_v19 = vadd.f32 %v2598_v17, %v659_v18 }
 0x6d2   :  { %v678_v20 = vpop.f32.mrf.mxu0 }
 0x6d3   :  { %v664_v21 = vadd.f32 %v3163_v53, %v663_v19  ;;  %v695_v23 = vpop.f32.mrf.mxu1 }
 0x6d4   :  { %v788_v23 = vpop.permute.xlu0 %787 }
 0x6d5   :  { %v738_v32 = vadd.f32 %v708_v13, %v664_v21 }
 0x6d7   :  { %v2607_v33 = vmul.f32 -1.442695, %v738_v32  ;;  %v795_v32 = vpop.permute.xlu1 %794 }
 0x6d8   :  { %v661_v35 = vpop.f32.mrf.mxu3  ;;  %v797_v34 = vmul.f32 %v795_v32, %v3240_v50 }
 0x6d9   :  { %2774 = vpow2.f32 %v2607_v33 }
 0x6da   :  { %v734_v38 = vpop.f32.mrf.mxu0 }
 0x6df   :  { %v2775_v40 = vpop.eup %2774 }
 0x6e0   :  { %v742_v42 = vadd.f32 1.0, %v2775_v40  ;;  %v721_v43 = vpop.f32.mrf.mxu3 }
 0x6e1   :  { %v758_v44 = vadd.f32 %v721_v43, %v681_v41 }
 0x6e2   :  { %2776 = vrcp.f32 %v742_v42  ;;  %v736_v45 = vpop.f32.mrf.mxu0  ;;  %v754_v46 = vand.u32 2147483648, %v742_v42  ;;  %v752_v59 = vand.u32 2147483647, %v742_v42  ;;  %vm748_vm6 = vweird.f32 %v742_v42 }
 0x6e3   :  { %v2608_v47 = vmul.f32 -1.442695, %v758_v44 }
 0x6e4   :  { %v755_v61 = vor.u32 1.1754944e-38, %v754_v46  ;;  %vm753_vm9 = vcmp.eq.f32.partialorder %v752_v59, 8.507059e+37 }
 0x6e5   :  { %2778 = vpow2.f32 %v2608_v47 }
 0x6e8   :  { %v2777_v48 = vpop.eup %2776  ;;  %v723_v49 = vpop.f32.mrf.mxu3 }
 0x6e9   :  { %v744_v51 = vmul.f32 %v2777_v48, %v742_v42  ;;  %vm749_vm5 = vweird.f32 %v2777_v48 }
 0x6ea   :  { %vm750_vm8 = vmor %vm748_vm6, %vm749_vm5 }
 0x6eb   :  { %v2779_v52 = vpop.eup %2778  ;;  %v745_v55 = vsub.f32 1.0, %v744_v51 }
 0x6ec   :  { %v762_v57 = vadd.f32 1.0, %v2779_v52 }
 0x6ed   :  { %v746_v58 = vmul.f32 %v2777_v48, %v745_v55 }
 0x6ee   :  { %2780 = vrcp.f32 %v762_v57  ;;  %v774_v3 = vand.u32 2147483648, %v762_v57  ;;  %v772_v12 = vand.u32 2147483647, %v762_v57  ;;  %vm768_vm11 = vweird.f32 %v762_v57 }
 0x6ef   :  { %v747_v60 = vadd.f32 %v2777_v48, %v746_v58 }
 0x6f0   :  { %v775_v14 = vor.u32 1.1754944e-38, %v774_v3  ;;  %vm773_vm13 = vcmp.eq.f32.partialorder %v772_v12, 8.507059e+37 }
 0x6f1   :  { %v751_v62 = vsel %vm750_vm8, %v2777_v48, %v747_v60 }
 0x6f2   :  { %v756_v63 = vsel %vm753_vm9, %v755_v61, %v751_v62 }
 0x6f3   :  { %v778_v4 = vmul.f32 %v756_v63, %v734_v38 }
 0x6f4   :  { %v2781_v5 = vpop.eup %2780 }
 0x6f5   :  { %v764_v7 = vmul.f32 %v2781_v5, %v762_v57  ;;  %v779_v8 = vadd.f32 %v778_v4, %v698_v6  ;;  %vm769_vm10 = vweird.f32 %v2781_v5 }
 0x6f6   :  { %vm770_vm12 = vmor %vm768_vm11, %vm769_vm10 }
 0x6f7   :  { %v765_v9 = vsub.f32 1.0, %v764_v7  ;;  %2782 = vtanh.f32 %v779_v8 }
 0x6f9   :  { %v766_v11 = vmul.f32 %v2781_v5, %v765_v9 }
 0x6fb   :  { %v767_v13 = vadd.f32 %v2781_v5, %v766_v11 }
 0x6fd   :  { %v771_v15 = vsel %vm770_vm12, %v2781_v5, %v767_v13  ;;  %v2783_v18 = vpop.eup %2782 }
 0x6fe   :  { %v776_v16 = vsel %vm773_vm13, %v775_v14, %v771_v15 }
 0x6ff   :  { %v781_v17 = vsub.f32 1.0, %v776_v16  ;;  %v783_v20 = vmul.f32 %v776_v16, %v3240_v50 }
 0x701   :  { %v782_v19 = vmul.f32 %v2783_v18, %v781_v17 }
 0x703   :  { %v784_v21 = vadd.f32 %v783_v20, %v782_v19  ;;  %v2616_v19 = vld [vmem:[%s3780_s2 + $0x20] sm:$0xff] }
 0x705   :  { %v790_v33 = vmul.f32 %v788_v23, %v784_v21 }
 0x707   :  { %v3282_v35 = vadd.f32 %v797_v34, %v790_v33 }
 0x709   :  { %800 = vst.msk [vmem:[#allocation2 + $0x18] sm:$0xff] %vm79_vm0, %v3282_v35  ;;  %v803_v38 = vpack.c.bf16 %v3282_v35, %v3282_v35 }
 0x70b   :  { %2610 = vmatmul.msk.bf16.vlgmr.msra.gmra.mxu1 %vm79_vm0, %v803_v38 }
 0x70c   :  { %1026 = vmatpush.bf16.msra.mxu1 %v3037_v0 }
 0x710   :  { %1027 = vmatpush.bf16.msra.mxu1 %v3050_v2 }
 0x788   :  { %v816_v39 = vpop.f32.mrf.mxu1 }
 0x789   :  { %v820_v40 = vmul.f32 1.442695, %v816_v39 }
 0x78b   :  { %2784 = vpow2.f32 %v820_v40 }
 0x790   :  { %v818_v41 = vpop.f32.mrf.mxu1 }
 0x791   :  { %v2785_v42 = vpop.eup %2784 }
 0x792   :  { %v822_v50 = vsel %vm114_vm1, %v2785_v42, 0.0 }
 0x793   :  { %823 = vadd.xlane.f32.xlu0 %v822_v50 }
 0x806   :  { %v824_v43 = vpop.xlane.xlu0 %823 }
 0x807   :  { %2786 = vrcp.f32 %v824_v43  ;;  %v836_v48 = vand.u32 2147483648, %v824_v43  ;;  %v834_v51 = vand.u32 2147483647, %v824_v43  ;;  %vm830_vm15 = vweird.f32 %v824_v43 }
 0x809   :  { %v837_v2 = vor.u32 1.1754944e-38, %v836_v48  ;;  %vm835_vm3 = vcmp.eq.f32.partialorder %v834_v51, 8.507059e+37 }
 0x80d   :  { %v2787_v44 = vpop.eup %2786 }
 0x80e   :  { %v826_v45 = vmul.f32 %v2787_v44, %v824_v43  ;;  %vm831_vm14 = vweird.f32 %v2787_v44 }
 0x80f   :  { %vm832_vm2 = vmor %vm830_vm15, %vm831_vm14 }
 0x810   :  { %v827_v47 = vsub.f32 1.0, %v826_v45 }
 0x812   :  { %v828_v49 = vmul.f32 %v2787_v44, %v827_v47 }
 0x814   :  { %v829_v0 = vadd.f32 %v2787_v44, %v828_v49 }
 0x816   :  { %v833_v52 = vsel %vm832_vm2, %v2787_v44, %v829_v0 }
 0x817   :  { %v838_v55 = vsel %vm835_vm3, %v837_v2, %v833_v52 }
 0x818   :  { %v839_v46 = vmul.f32 %v2785_v42, %v838_v55 }
 0x81a   :  { %v840_v57 = vpack.c.bf16 %v839_v46, %v839_v46  ;;  %v1008_v46 = vpop.permute.xlu1 %1007 }
 0x81c   :  { %2611 = vmatmul.msk.bf16.vlgmr.msra.gmra.mxu2 %vm114_vm1, %v840_v57  ;;  %v1001_v57 = vpop.permute.xlu2 %1000 }
 0x81d   :  { %1064 = vmatpush.bf16.msra.mxu2 %v3063_v10 }
 0x82c   :  { %2618 = vmatmul.msk.bf16.vlgmr.msrb.gmra.mxu2 %vm79_vm0, %v803_v38 }
 0x82d   :  { %1131 = vmatpush.bf16.msrb.mxu2 %v3089_v27 }
 0x831   :  { %1132 = vmatpush.bf16.msrb.mxu2 %v3096_v28 }
 0x89f   :  { %v853_v56 = vpop.f32.mrf.mxu2 }
 0x8a0   :  { %v857_v58 = vpack.c.bf16 %v853_v56, %v853_v56 }
 0x8a2   :  { %2613 = vmatmul.msk.bf16.vlgmr.msra.gmra.mxu3 %vm163_vm7, %v857_v58  ;;  %2615 = vmatmul.msk.bf16.vlgmr.msra.gmra.mxu0 %vm163_vm7, %v857_v58 }
 0x8a3   :  { %2617 = vmatmul.msk.bf16.vlgmr.msrb.gmra.mxu1 %vm163_vm7, %v857_v58  ;;  %1083 = vmatpush.bf16.msra.mxu3 %v3070_v24  ;;  %v1010_v58 = vmul.f32 %v1008_v46, %v3282_v35 }
 0x8a4   :  { %1100 = vmatpush.bf16.msra.mxu0 %v3075_v25  ;;  %1117 = vmatpush.bf16.msrb.mxu1 %v3080_v26  ;;  %v2612_v25 = vld [vmem:[%s3778_s0 + $0x20] sm:$0xff] }
 0x8a7   :  { %v855_v59 = vpop.f32.mrf.mxu2 }
 0x8af   :  { %v921_v60 = vpop.f32.mrf.mxu2 }
 0x8b2   :  { %2619 = vmatmul.msk.bf16.vlgmr.msrb.gmra.mxu3 %vm79_vm0, %v803_v38  ;;  %2620 = vmatmul.msk.bf16.vlgmr.msrb.gmra.mxu0 %vm79_vm0, %v803_v38 }
 0x8b3   :  { %1144 = vmatpush.bf16.msrb.mxu3 %v3101_v29  ;;  %1157 = vmatpush.bf16.msrb.mxu0 %v3114_v31 }
 0x8b7   :  { %v923_v27 = vpop.f32.mrf.mxu2  ;;  %1145 = vmatpush.bf16.msrb.mxu3 %v3108_v30  ;;  %1158 = vmatpush.bf16.msrb.mxu0 %v3126_v36  ;;  %v2614_v30 = vld [vmem:[%s3779_s1 + $0x20] sm:$0xff] }
 0x8b8   :  { %v3333_v27 = vld [vmem:[%s3791_s13 + $0x8] sm:$0xff] }
 0x91f   :  { %v889_v24 = vpop.f32.mrf.mxu0 }
 0x920   :  { %v906_v28 = vpop.f32.mrf.mxu1  ;;  %v893_v5 = vadd.f32 %v2614_v30, %v889_v24 }
 0x921   :  { %v910_v23 = vadd.f32 %v2616_v19, %v906_v28 }
 0x922   :  { %v894_v7 = vadd.f32 %v3168_v54, %v893_v5 }
 0x923   :  { %v911_v40 = vadd.f32 %v3178_v22, %v910_v23  ;;  %v3408_v23 = vld [vmem:[%s3786_s8] sm:$0xff] }
 0x925   :  { %v872_v26 = vpop.f32.mrf.mxu3 }
 0x926   :  { %v876_v1 = vadd.f32 %v2612_v25, %v872_v26 }
 0x927   :  { %v891_v61 = vpop.f32.mrf.mxu0 }
 0x928   :  { %v877_v62 = vadd.f32 %v3163_v53, %v876_v1  ;;  %v908_v63 = vpop.f32.mrf.mxu1  ;;  %v3346_v61 = vld [vmem:[%s3781_s3 + $0x38] sm:$0xff] }
 0x92a   :  { %v951_v29 = vadd.f32 %v921_v60, %v877_v62  ;;  %v3352_v62 = vld [vmem:[%s3781_s3 + $0x40] sm:$0xff] }
 0x92c   :  { %v2621_v4 = vmul.f32 -1.442695, %v951_v29 }
 0x92d   :  { %v874_v31 = vpop.f32.mrf.mxu3 }
 0x92e   :  { %2788 = vpow2.f32 %v2621_v4 }
 0x92f   :  { %v947_v36 = vpop.f32.mrf.mxu0 }
 0x934   :  { %v2789_v6 = vpop.eup %2788 }
 0x935   :  { %v955_v8 = vadd.f32 1.0, %v2789_v6  ;;  %v934_v9 = vpop.f32.mrf.mxu3 }
 0x936   :  { %v971_v3 = vadd.f32 %v934_v9, %v894_v7 }
 0x937   :  { %2790 = vrcp.f32 %v955_v8  ;;  %v949_v11 = vpop.f32.mrf.mxu0  ;;  %v967_v17 = vand.u32 2147483648, %v955_v8  ;;  %v965_v54 = vand.u32 2147483647, %v955_v8  ;;  %vm961_vm5 = vweird.f32 %v955_v8 }
 0x938   :  { %v2622_v53 = vmul.f32 -1.442695, %v971_v3 }
 0x939   :  { %v968_v32 = vor.u32 1.1754944e-38, %v967_v17  ;;  %vm966_vm8 = vcmp.eq.f32.partialorder %v965_v54, 8.507059e+37  ;;  %v3388_v17 = vld [vmem:[%s3784_s6] sm:$0xff]  ;;  %v3402_v54 = vld [vmem:[%s3787_s9 + $0x8] sm:$0xff] }
 0x93a   :  { %2792 = vpow2.f32 %v2622_v53  ;;  %v3361_v53 = vld [vmem:[%s3785_s7 + $0x8] sm:$0xff] }
 0x93d   :  { %v2791_v12 = vpop.eup %2790  ;;  %v936_v13 = vpop.f32.mrf.mxu3 }
 0x93e   :  { %v957_v14 = vmul.f32 %v2791_v12, %v955_v8  ;;  %vm962_vm4 = vweird.f32 %v2791_v12 }
 0x93f   :  { %vm963_vm6 = vmor %vm961_vm5, %vm962_vm4 }
 0x940   :  { %v2793_v15 = vpop.eup %2792  ;;  %v958_v16 = vsub.f32 1.0, %v957_v14 }
 0x941   :  { %v975_v18 = vadd.f32 1.0, %v2793_v15  ;;  %v3376_v15 = vld [vmem:[%s3782_s4] sm:$0xff] }
 0x942   :  { %v959_v20 = vmul.f32 %v2791_v12, %v958_v16  ;;  %v3382_v16 = vld [vmem:[%s3783_s5] sm:$0xff] }
 0x943   :  { %2794 = vrcp.f32 %v975_v18  ;;  %v987_v43 = vand.u32 2147483648, %v975_v18  ;;  %v985_v45 = vand.u32 2147483647, %v975_v18  ;;  %vm981_vm10 = vweird.f32 %v975_v18 }
 0x944   :  { %v960_v21 = vadd.f32 %v2791_v12, %v959_v20  ;;  %v3396_v20 = vld [vmem:[%s3786_s8 + $0x8] sm:$0xff] }
 0x945   :  { %v988_v48 = vor.u32 1.1754944e-38, %v987_v43  ;;  %vm986_vm12 = vcmp.eq.f32.partialorder %v985_v45, 8.507059e+37 }
 0x946   :  { %v964_v33 = vsel %vm963_vm6, %v2791_v12, %v960_v21  ;;  %v3367_v12 = vld [vmem:[%s3785_s7] sm:$0xff] }
 0x947   :  { %v969_v34 = vsel %vm966_vm8, %v968_v32, %v964_v33  ;;  %v3414_v32 = vld [vmem:[%s3787_s9] sm:$0xff] }
 0x948   :  { %v991_v38 = vmul.f32 %v969_v34, %v947_v36 }
 0x949   :  { %v2795_v39 = vpop.eup %2794 }
 0x94a   :  { %v977_v41 = vmul.f32 %v2795_v39, %v975_v18  ;;  %v992_v42 = vadd.f32 %v991_v38, %v911_v40  ;;  %vm982_vm9 = vweird.f32 %v2795_v39  ;;  %v2626_v38 = vld [vmem:[%s3778_s0 + $0x28] sm:$0xff] }
 0x94b   :  { %vm983_vm11 = vmor %vm981_vm10, %vm982_vm9 }
 0x94c   :  { %v978_v50 = vsub.f32 1.0, %v977_v41  ;;  %2796 = vtanh.f32 %v992_v42  ;;  %v3423_v42 = vld [vmem:[%s3788_s10] ss:$0 sm:$0xff] }
 0x94e   :  { %v979_v44 = vmul.f32 %v2795_v39, %v978_v50 }
 0x950   :  { %v980_v47 = vadd.f32 %v2795_v39, %v979_v44 }
 0x952   :  { %v984_v49 = vsel %vm983_vm11, %v2795_v39, %v980_v47  ;;  %v2797_v2 = vpop.eup %2796  ;;  %v2628_v47 = vld [vmem:[%s3779_s1 + $0x28] sm:$0xff] }
 0x953   :  { %v989_v51 = vsel %vm986_vm12, %v988_v48, %v984_v49 }
 0x954   :  { %v994_v0 = vsub.f32 1.0, %v989_v51  ;;  %v996_v22 = vmul.f32 %v989_v51, %v3282_v35  ;;  %v3339_v35 = vld [vmem:[%s3791_s13] sm:$0xff] }
 0x956   :  { %v995_v52 = vmul.f32 %v2797_v2, %v994_v0  ;;  %v3432_v2 = vld [vmem:[%s3789_s11] ss:$0 sm:$0xff] }
 0x958   :  { %v997_v55 = vadd.f32 %v996_v22, %v995_v52 }
 0x95a   :  { %v1003_v56 = vmul.f32 %v1001_v57, %v997_v55 }
 0x95c   :  { %v3323_v59 = vadd.f32 %v1010_v58, %v1003_v56 }
 0x95e   :  { %1013 = vst.msk [vmem:[#allocation2 + $0x20] sm:$0xff] %vm79_vm0, %v3323_v59  ;;  %v1016_v60 = vpack.c.bf16 %v3323_v59, %v3323_v59 }
 0x960   :  { %2624 = vmatmul.msk.bf16.vlgmr.msra.gmra.mxu1 %vm79_vm0, %v1016_v60 }
 0x961   :  { %1239 = vmatpush.bf16.msra.mxu1 %v3333_v27 }
 0x965   :  { %1240 = vmatpush.bf16.msra.mxu1 %v3339_v35 }
 0x9dd   :  { %v1029_v24 = vpop.f32.mrf.mxu1 }
 0x9de   :  { %v1033_v28 = vmul.f32 1.442695, %v1029_v24 }
 0x9e0   :  { %2798 = vpow2.f32 %v1033_v28 }
 0x9e5   :  { %v1031_v25 = vpop.f32.mrf.mxu1 }
 0x9e6   :  { %v2799_v26 = vpop.eup %2798 }
 0x9e7   :  { %v1035_v1 = vsel %vm114_vm1, %v2799_v26, 0.0 }
 0x9e8   :  { %1036 = vadd.xlane.f32.xlu2 %v1035_v1 }
 0xa00   :  { %1639 = vperm.xlu2 %2738, %v3346_v61  }
 0xa08   :  { %1852 = vperm.xlu2 %2738, %v3352_v62  }
 0xa5b   :  { %v1037_v63 = vpop.xlane.xlu2 %1036 }
 0xa5c   :  { %2800 = vrcp.f32 %v1037_v63  ;;  %v1049_v31 = vand.u32 2147483648, %v1037_v63  ;;  %v1047_v5 = vand.u32 2147483647, %v1037_v63  ;;  %vm1043_vm14 = vweird.f32 %v1037_v63 }
 0xa5e   :  { %v1050_v7 = vor.u32 1.1754944e-38, %v1049_v31  ;;  %vm1048_vm2 = vcmp.eq.f32.partialorder %v1047_v5, 8.507059e+37 }
 0xa62   :  { %v2801_v29 = vpop.eup %2800 }
 0xa63   :  { %v1039_v4 = vmul.f32 %v2801_v29, %v1037_v63  ;;  %vm1044_vm13 = vweird.f32 %v2801_v29  ;;  %v2630_v63 = vld [vmem:[%s3780_s2 + $0x28] sm:$0xff] }
 0xa64   :  { %vm1045_vm15 = vmor %vm1043_vm14, %vm1044_vm13 }
 0xa65   :  { %v1040_v30 = vsub.f32 1.0, %v1039_v4 }
 0xa67   :  { %v1041_v36 = vmul.f32 %v2801_v29, %v1040_v30 }
 0xa69   :  { %v1042_v6 = vadd.f32 %v2801_v29, %v1041_v36 }
 0xa6b   :  { %v1046_v8 = vsel %vm1045_vm15, %v2801_v29, %v1042_v6 }
 0xa6c   :  { %v1051_v9 = vsel %vm1048_vm2, %v1050_v7, %v1046_v8 }
 0xa6d   :  { %v1052_v3 = vmul.f32 %v2799_v26, %v1051_v9  ;;  %v3441_v9 = vld [vmem:[%s3790_s12] ss:$0 sm:$0xff] }
 0xa6f   :  { %v1053_v11 = vpack.c.bf16 %v1052_v3, %v1052_v3 }
 0xa71   :  { %2625 = vmatmul.msk.bf16.vlgmr.msra.gmra.mxu2 %vm114_vm1, %v1053_v11 }
 0xa72   :  { %1277 = vmatpush.bf16.msra.mxu2 %v3063_v10 }
 0xa81   :  { %2632 = vmatmul.msk.bf16.vlgmr.msrb.gmra.mxu2 %vm79_vm0, %v1016_v60 }
 0xa82   :  { %1344 = vmatpush.bf16.msrb.mxu2 %v3361_v53 }
 0xa86   :  { %1345 = vmatpush.bf16.msrb.mxu2 %v3367_v12 }
 0xaf4   :  { %v1066_v13 = vpop.f32.mrf.mxu2 }
 0xaf5   :  { %v1070_v14 = vpack.c.bf16 %v1066_v13, %v1066_v13 }
 0xaf7   :  { %2627 = vmatmul.msk.bf16.vlgmr.msra.gmra.mxu3 %vm163_vm7, %v1070_v14  ;;  %2629 = vmatmul.msk.bf16.vlgmr.msra.gmra.mxu0 %vm163_vm7, %v1070_v14 }
 0xaf8   :  { %2631 = vmatmul.msk.bf16.vlgmr.msrb.gmra.mxu1 %vm163_vm7, %v1070_v14  ;;  %1296 = vmatpush.bf16.msra.mxu3 %v3376_v15 }
 0xaf9   :  { %1313 = vmatpush.bf16.msra.mxu0 %v3382_v16  ;;  %1330 = vmatpush.bf16.msrb.mxu1 %v3388_v17 }
 0xafc   :  { %v1068_v18 = vpop.f32.mrf.mxu2 }
 0xb04   :  { %v1134_v19 = vpop.f32.mrf.mxu2 }
 0xb07   :  { %2633 = vmatmul.msk.bf16.vlgmr.msrb.gmra.mxu3 %vm79_vm0, %v1016_v60  ;;  %2634 = vmatmul.msk.bf16.vlgmr.msrb.gmra.mxu0 %vm79_vm0, %v1016_v60 }
 0xb08   :  { %1357 = vmatpush.bf16.msrb.mxu3 %v3396_v20  ;;  %1370 = vmatpush.bf16.msrb.mxu0 %v3402_v54 }
 0xb0c   :  { %v1136_v21 = vpop.f32.mrf.mxu2  ;;  %1358 = vmatpush.bf16.msrb.mxu3 %v3408_v23  ;;  %1371 = vmatpush.bf16.msrb.mxu0 %v3414_v32 }
 0xb74   :  { %v1102_v33 = vpop.f32.mrf.mxu0 }
 0xb75   :  { %v1119_v34 = vpop.f32.mrf.mxu1  ;;  %v1106_v51 = vadd.f32 %v2628_v47, %v1102_v33  ;;  %v1214_v33 = vpop.permute.xlu1 %1213 }
 0xb76   :  { %v1123_v31 = vadd.f32 %v2630_v63, %v1119_v34 }
 0xb77   :  { %v1107_v52 = vadd.f32 %v3432_v2, %v1106_v51 }
 0xb78   :  { %v1124_v3 = vadd.f32 %v3441_v9, %v1123_v31 }
 0xb7a   :  { %v1085_v39 = vpop.f32.mrf.mxu3 }
 0xb7b   :  { %v1089_v40 = vadd.f32 %v2626_v38, %v1085_v39 }
 0xb7c   :  { %v1104_v41 = vpop.f32.mrf.mxu0 }
 0xb7d   :  { %v1090_v50 = vadd.f32 %v3423_v42, %v1089_v40  ;;  %v1121_v43 = vpop.f32.mrf.mxu1  ;;  %v1221_v47 = vpop.permute.xlu1 %1220 }
 0xb7f   :  { %v1164_v44 = vadd.f32 %v1134_v19, %v1090_v50 }
 0xb81   :  { %v2635_v45 = vmul.f32 -1.442695, %v1164_v44 }
 0xb82   :  { %v1087_v48 = vpop.f32.mrf.mxu3 }
 0xb83   :  { %2802 = vpow2.f32 %v2635_v45 }
 0xb84   :  { %v1160_v49 = vpop.f32.mrf.mxu0 }
 0xb89   :  { %v2803_v0 = vpop.eup %2802 }
 0xb8a   :  { %v1168_v22 = vadd.f32 1.0, %v2803_v0  ;;  %v1147_v55 = vpop.f32.mrf.mxu3 }
 0xb8b   :  { %v1184_v46 = vadd.f32 %v1147_v55, %v1107_v52 }
 0xb8c   :  { %2804 = vrcp.f32 %v1168_v22  ;;  %v1162_v57 = vpop.f32.mrf.mxu0  ;;  %v1180_v26 = vand.u32 2147483648, %v1168_v22  ;;  %v1178_v4 = vand.u32 2147483647, %v1168_v22  ;;  %vm1174_vm4 = vweird.f32 %v1168_v22 }
 0xb8d   :  { %v2636_v56 = vmul.f32 -1.442695, %v1184_v46  ;;  %v1430_v57 = vsub.f32 1.0, %v3206_v37 }
 0xb8e   :  { %v1181_v36 = vor.u32 1.1754944e-38, %v1180_v26  ;;  %vm1179_vm6 = vcmp.eq.f32.partialorder %v1178_v4, 8.507059e+37 }
 0xb8f   :  { %2806 = vpow2.f32 %v2636_v56  ;;  %v1643_v56 = vsub.f32 1.0, %v3346_v61 }
 0xb92   :  { %v2805_v58 = vpop.eup %2804  ;;  %v1149_v60 = vpop.f32.mrf.mxu3 }
 0xb93   :  { %v1170_v24 = vmul.f32 %v2805_v58, %v1168_v22  ;;  %vm1175_vm3 = vweird.f32 %v2805_v58 }
 0xb94   :  { %vm1176_vm5 = vmor %vm1174_vm4, %vm1175_vm3 }
 0xb95   :  { %v2807_v28 = vpop.eup %2806  ;;  %v1171_v25 = vsub.f32 1.0, %v1170_v24 }
 0xb96   :  { %v1188_v1 = vadd.f32 1.0, %v2807_v28 }
 0xb97   :  { %v1172_v29 = vmul.f32 %v2805_v58, %v1171_v25 }
 0xb98   :  { %2808 = vrcp.f32 %v1188_v1  ;;  %v1200_v18 = vand.u32 2147483648, %v1188_v1  ;;  %v1198_v21 = vand.u32 2147483647, %v1188_v1  ;;  %vm1194_vm9 = vweird.f32 %v1188_v1 }
 0xb99   :  { %v1173_v30 = vadd.f32 %v2805_v58, %v1172_v29 }
 0xb9a   :  { %v1201_v38 = vor.u32 1.1754944e-38, %v1200_v18  ;;  %vm1199_vm11 = vcmp.eq.f32.partialorder %v1198_v21, 8.507059e+37 }
 0xb9b   :  { %v1177_v5 = vsel %vm1176_vm5, %v2805_v58, %v1173_v30 }
 0xb9c   :  { %v1182_v6 = vsel %vm1179_vm6, %v1181_v36, %v1177_v5 }
 0xb9d   :  { %v1204_v7 = vmul.f32 %v1182_v6, %v1160_v49  ;;  %v1223_v49 = vmul.f32 %v1221_v47, %v3323_v59 }
 0xb9e   :  { %v2809_v8 = vpop.eup %2808 }
 0xb9f   :  { %v1190_v11 = vmul.f32 %v2809_v8, %v1188_v1  ;;  %v1205_v13 = vadd.f32 %v1204_v7, %v1124_v3  ;;  %vm1195_vm8 = vweird.f32 %v2809_v8 }
 0xba0   :  { %vm1196_vm10 = vmor %vm1194_vm9, %vm1195_vm8 }
 0xba1   :  { %v1191_v14 = vsub.f32 1.0, %v1190_v11  ;;  %2810 = vtanh.f32 %v1205_v13  ;;  %v2640_v11 = vld [vmem:[%s3778_s0 + $0x30] sm:$0xff] }
 0xba3   :  { %v1192_v19 = vmul.f32 %v2809_v8, %v1191_v14 }
 0xba5   :  { %v1193_v34 = vadd.f32 %v2809_v8, %v1192_v19 }
 0xba7   :  { %v1197_v39 = vsel %vm1196_vm10, %v2809_v8, %v1193_v34  ;;  %v2811_v50 = vpop.eup %2810 }
 0xba8   :  { %v1202_v40 = vsel %vm1199_vm11, %v1201_v38, %v1197_v39  ;;  %v2642_v38 = vld [vmem:[%s3779_s1 + $0x30] sm:$0xff] }
 0xba9   :  { %v1207_v41 = vsub.f32 1.0, %v1202_v40  ;;  %v1209_v44 = vmul.f32 %v1202_v40, %v3323_v59 }
 0xbab   :  { %v1208_v43 = vmul.f32 %v2811_v50, %v1207_v41 }
 0xbad   :  { %v1210_v45 = vadd.f32 %v1209_v44, %v1208_v43 }
 0xbaf   :  { %v1216_v48 = vmul.f32 %v1214_v33, %v1210_v45 }
 0xbb1   :  { %v3446_v51 = vadd.f32 %v1223_v49, %v1216_v48 }
 0xbb3   :  { %1226 = vst.msk [vmem:[#allocation2 + $0x28] sm:$0xff] %vm79_vm0, %v3446_v51  ;;  %v1229_v0 = vpack.c.bf16 %v3446_v51, %v3446_v51 }
 0xbb5   :  { %2638 = vmatmul.msk.bf16.vlgmr.msra.gmra.mxu1 %vm79_vm0, %v1229_v0 }
 0xbb6   :  { %1452 = vmatpush.bf16.msra.mxu1 %v3333_v27 }
 0xbba   :  { %1453 = vmatpush.bf16.msra.mxu1 %v3339_v35 }
 0xc32   :  { %v1242_v52 = vpop.f32.mrf.mxu1 }
 0xc33   :  { %v1246_v22 = vmul.f32 1.442695, %v1242_v52 }
 0xc35   :  { %2812 = vpow2.f32 %v1246_v22 }
 0xc3a   :  { %v1244_v55 = vpop.f32.mrf.mxu1 }
 0xc3b   :  { %v2813_v46 = vpop.eup %2812 }
 0xc3c   :  { %v1248_v59 = vsel %vm114_vm1, %v2813_v46, 0.0 }
 0xc3d   :  { %1249 = vadd.xlane.f32.xlu0 %v1248_v59 }
 0xc51   :  { %1433 = vperm.xlu0 %2736, %v1430_v57  }
 0xc59   :  { %1646 = vperm.xlu0 %2736, %v1643_v56   ;;  %v2644_v56 = vld [vmem:[%s3780_s2 + $0x30] sm:$0xff] }
 0xcb0   :  { %v1250_v58 = vpop.xlane.xlu0 %1249 }
 0xcb1   :  { %2814 = vrcp.f32 %v1250_v58  ;;  %v1262_v25 = vand.u32 2147483648, %v1250_v58  ;;  %v1260_v1 = vand.u32 2147483647, %v1250_v58  ;;  %vm1256_vm13 = vweird.f32 %v1250_v58 }
 0xcb3   :  { %v1263_v29 = vor.u32 1.1754944e-38, %v1262_v25  ;;  %vm1261_vm15 = vcmp.eq.f32.partialorder %v1260_v1, 8.507059e+37 }
 0xcb7   :  { %v2815_v60 = vpop.eup %2814 }
 0xcb8   :  { %v1252_v24 = vmul.f32 %v2815_v60, %v1250_v58  ;;  %vm1257_vm12 = vweird.f32 %v2815_v60 }
 0xcb9   :  { %vm1258_vm14 = vmor %vm1256_vm13, %vm1257_vm12 }
 0xcba   :  { %v1253_v28 = vsub.f32 1.0, %v1252_v24 }
 0xcbc   :  { %v1254_v26 = vmul.f32 %v2815_v60, %v1253_v28 }
 0xcbe   :  { %v1255_v63 = vadd.f32 %v2815_v60, %v1254_v26 }
 0xcc0   :  { %v1259_v4 = vsel %vm1258_vm14, %v2815_v60, %v1255_v63 }
 0xcc1   :  { %v1264_v37 = vsel %vm1261_vm15, %v1263_v29, %v1259_v4 }
 0xcc2   :  { %v1265_v30 = vmul.f32 %v2813_v46, %v1264_v37 }
 0xcc4   :  { %v1266_v31 = vpack.c.bf16 %v1265_v30, %v1265_v30 }
 0xcc6   :  { %2639 = vmatmul.msk.bf16.vlgmr.msra.gmra.mxu2 %vm114_vm1, %v1266_v31 }
 0xcc7   :  { %1490 = vmatpush.bf16.msra.mxu2 %v3063_v10 }
 0xcd6   :  { %2646 = vmatmul.msk.bf16.vlgmr.msrb.gmra.mxu2 %vm79_vm0, %v1229_v0 }
 0xcd7   :  { %1557 = vmatpush.bf16.msrb.mxu2 %v3361_v53 }
 0xcdb   :  { %1558 = vmatpush.bf16.msrb.mxu2 %v3367_v12 }
 0xd49   :  { %v1279_v61 = vpop.f32.mrf.mxu2 }
 0xd4a   :  { %v1283_v36 = vpack.c.bf16 %v1279_v61, %v1279_v61 }
 0xd4c   :  { %2641 = vmatmul.msk.bf16.vlgmr.msra.gmra.mxu3 %vm163_vm7, %v1283_v36  ;;  %2643 = vmatmul.msk.bf16.vlgmr.msra.gmra.mxu0 %vm163_vm7, %v1283_v36 }
 0xd4d   :  { %2645 = vmatmul.msk.bf16.vlgmr.msrb.gmra.mxu1 %vm163_vm7, %v1283_v36  ;;  %1509 = vmatpush.bf16.msra.mxu3 %v3376_v15 }
 0xd4e   :  { %1526 = vmatpush.bf16.msra.mxu0 %v3382_v16  ;;  %1543 = vmatpush.bf16.msrb.mxu1 %v3388_v17 }
 0xd51   :  { %v1281_v5 = vpop.f32.mrf.mxu2 }
 0xd59   :  { %v1347_v6 = vpop.f32.mrf.mxu2 }
 0xd5c   :  { %2647 = vmatmul.msk.bf16.vlgmr.msrb.gmra.mxu3 %vm79_vm0, %v1229_v0  ;;  %2648 = vmatmul.msk.bf16.vlgmr.msrb.gmra.mxu0 %vm79_vm0, %v1229_v0 }
 0xd5d   :  { %1570 = vmatpush.bf16.msrb.mxu3 %v3396_v20  ;;  %1583 = vmatpush.bf16.msrb.mxu0 %v3402_v54 }
 0xd61   :  { %v1349_v7 = vpop.f32.mrf.mxu2  ;;  %1571 = vmatpush.bf16.msrb.mxu3 %v3408_v23  ;;  %1584 = vmatpush.bf16.msrb.mxu0 %v3414_v32 }
 0xdc9   :  { %v1315_v8 = vpop.f32.mrf.mxu0 }
 0xdca   :  { %v1332_v3 = vpop.f32.mrf.mxu1  ;;  %v1319_v41 = vadd.f32 %v2642_v38, %v1315_v8 }
 0xdcb   :  { %v1336_v28 = vadd.f32 %v2644_v56, %v1332_v3 }
 0xdcc   :  { %v1320_v43 = vadd.f32 %v3432_v2, %v1319_v41 }
 0xdcd   :  { %v1337_v4 = vadd.f32 %v3441_v9, %v1336_v28 }
 0xdcf   :  { %v1298_v13 = vpop.f32.mrf.mxu3 }
 0xdd0   :  { %v1302_v14 = vadd.f32 %v2640_v11, %v1298_v13 }
 0xdd1   :  { %v1317_v18 = vpop.f32.mrf.mxu0 }
 0xdd2   :  { %v1303_v19 = vadd.f32 %v3423_v42, %v1302_v14  ;;  %v1334_v21 = vpop.f32.mrf.mxu1 }
 0xdd4   :  { %v1377_v33 = vadd.f32 %v1347_v6, %v1303_v19  ;;  %v1434_v19 = vpop.permute.xlu0 %1433 }
 0xdd6   :  { %v2649_v34 = vmul.f32 -1.442695, %v1377_v33  ;;  %v1427_v33 = vpop.permute.xlu1 %1426 }
 0xdd7   :  { %v1300_v39 = vpop.f32.mrf.mxu3 }
 0xdd8   :  { %2816 = vpow2.f32 %v2649_v34  ;;  %v1436_v34 = vmul.f32 %v1434_v19, %v3446_v51 }
 0xdd9   :  { %v1373_v40 = vpop.f32.mrf.mxu0 }
 0xdde   :  { %v2817_v50 = vpop.eup %2816 }
 0xddf   :  { %v1381_v44 = vadd.f32 1.0, %v2817_v50  ;;  %v1360_v45 = vpop.f32.mrf.mxu3 }
 0xde0   :  { %v1397_v47 = vadd.f32 %v1360_v45, %v1320_v43  ;;  %v1856_v45 = vsub.f32 1.0, %v3352_v62 }
 0xde1   :  { %2818 = vrcp.f32 %v1381_v44  ;;  %v1375_v48 = vpop.f32.mrf.mxu0  ;;  %v1393_v59 = vand.u32 2147483648, %v1381_v44  ;;  %v1391_v60 = vand.u32 2147483647, %v1381_v44  ;;  %vm1387_vm3 = vweird.f32 %v1381_v44 }
 0xde2   :  { %v2650_v49 = vmul.f32 -1.442695, %v1397_v47  ;;  %v3503_v47 = vld [vmem:[%s3781_s3 + $0x48] sm:$0xff] }
 0xde3   :  { %v1394_v25 = vor.u32 1.1754944e-38, %v1393_v59  ;;  %vm1392_vm5 = vcmp.eq.f32.partialorder %v1391_v60, 8.507059e+37 }
 0xde4   :  { %2820 = vpow2.f32 %v2650_v49 }
 0xde7   :  { %v2819_v0 = vpop.eup %2818  ;;  %v1362_v52 = vpop.f32.mrf.mxu3 }
 0xde8   :  { %v1383_v22 = vmul.f32 %v2819_v0, %v1381_v44  ;;  %vm1388_vm2 = vweird.f32 %v2819_v0 }
 0xde9   :  { %vm1389_vm4 = vmor %vm1387_vm3, %vm1388_vm2 }
 0xdea   :  { %v2821_v55 = vpop.eup %2820  ;;  %v1384_v46 = vsub.f32 1.0, %v1383_v22 }
 0xdeb   :  { %v1401_v57 = vadd.f32 1.0, %v2821_v55 }
 0xdec   :  { %v1385_v58 = vmul.f32 %v2819_v0, %v1384_v46 }
 0xded   :  { %2822 = vrcp.f32 %v1401_v57  ;;  %v1413_v61 = vand.u32 2147483648, %v1401_v57  ;;  %v1411_v5 = vand.u32 2147483647, %v1401_v57  ;;  %vm1407_vm8 = vweird.f32 %v1401_v57 }
 0xdee   :  { %v1386_v24 = vadd.f32 %v2819_v0, %v1385_v58 }
 0xdef   :  { %v1414_v7 = vor.u32 1.1754944e-38, %v1413_v61  ;;  %vm1412_vm10 = vcmp.eq.f32.partialorder %v1411_v5, 8.507059e+37 }
 0xdf0   :  { %v1390_v26 = vsel %vm1389_vm4, %v2819_v0, %v1386_v24 }
 0xdf1   :  { %v1395_v1 = vsel %vm1392_vm5, %v1394_v25, %v1390_v26 }
 0xdf2   :  { %v1417_v63 = vmul.f32 %v1395_v1, %v1373_v40 }
 0xdf3   :  { %v2823_v29 = vpop.eup %2822 }
 0xdf4   :  { %v1403_v37 = vmul.f32 %v2823_v29, %v1401_v57  ;;  %v1418_v30 = vadd.f32 %v1417_v63, %v1337_v4  ;;  %vm1408_vm6 = vweird.f32 %v2823_v29  ;;  %v2654_v4 = vld [vmem:[%s3778_s0 + $0x38] sm:$0xff] }
 0xdf5   :  { %vm1409_vm9 = vmor %vm1407_vm8, %vm1408_vm6 }
 0xdf6   :  { %v1404_v31 = vsub.f32 1.0, %v1403_v37  ;;  %2824 = vtanh.f32 %v1418_v30 }
 0xdf8   :  { %v1405_v36 = vmul.f32 %v2823_v29, %v1404_v31 }
 0xdfa   :  { %v1406_v6 = vadd.f32 %v2823_v29, %v1405_v36 }
 0xdfc   :  { %v1410_v8 = vsel %vm1409_vm9, %v2823_v29, %v1406_v6  ;;  %v2825_v13 = vpop.eup %2824 }
 0xdfd   :  { %v1415_v3 = vsel %vm1412_vm10, %v1414_v7, %v1410_v8  ;;  %v2656_v7 = vld [vmem:[%s3779_s1 + $0x38] sm:$0xff] }
 0xdfe   :  { %v1420_v11 = vsub.f32 1.0, %v1415_v3  ;;  %v1422_v18 = vmul.f32 %v1415_v3, %v3446_v51 }
 0xe00   :  { %v1421_v14 = vmul.f32 %v2825_v13, %v1420_v11 }
 0xe02   :  { %v1423_v21 = vadd.f32 %v1422_v18, %v1421_v14 }
 0xe04   :  { %v1429_v38 = vmul.f32 %v1427_v33, %v1423_v21 }
 0xe06   :  { %v3489_v39 = vadd.f32 %v1436_v34, %v1429_v38 }
 0xe08   :  { %1439 = vst.msk [vmem:[#allocation2 + $0x30] sm:$0xff] %vm79_vm0, %v3489_v39  ;;  %v1442_v40 = vpack.c.bf16 %v3489_v39, %v3489_v39 }
 0xe0a   :  { %2652 = vmatmul.msk.bf16.vlgmr.msra.gmra.mxu1 %vm79_vm0, %v1442_v40 }
 0xe0b   :  { %1665 = vmatpush.bf16.msra.mxu1 %v3333_v27 }
 0xe0f   :  { %1666 = vmatpush.bf16.msra.mxu1 %v3339_v35 }
 0xe87   :  { %v1455_v41 = vpop.f32.mrf.mxu1 }
 0xe88   :  { %v1459_v50 = vmul.f32 1.442695, %v1455_v41 }
 0xe8a   :  { %2826 = vpow2.f32 %v1459_v50 }
 0xe8f   :  { %v1457_v43 = vpop.f32.mrf.mxu1 }
 0xe90   :  { %v2827_v51 = vpop.eup %2826 }
 0xe91   :  { %v1461_v44 = vsel %vm114_vm1, %v2827_v51, 0.0 }
 0xe92   :  { %1462 = vadd.xlane.f32.xlu1 %v1461_v44 }
 0xeab   :  { %1859 = vperm.xlu1 %2737, %v1856_v45   ;;  %v2658_v45 = vld [vmem:[%s3780_s2 + $0x38] sm:$0xff] }
 0xeb3   :  { %2065 = vperm.xlu1 %2737, %v3503_v47  }
 0xf05   :  { %v1463_v48 = vpop.xlane.xlu1 %1462 }
 0xf06   :  { %2828 = vrcp.f32 %v1463_v48  ;;  %v1475_v22 = vand.u32 2147483648, %v1463_v48  ;;  %v1473_v46 = vand.u32 2147483647, %v1463_v48  ;;  %vm1469_vm12 = vweird.f32 %v1463_v48 }
 0xf08   :  { %v1476_v62 = vor.u32 1.1754944e-38, %v1475_v22  ;;  %vm1474_vm14 = vcmp.eq.f32.partialorder %v1473_v46, 8.507059e+37 }
 0xf0c   :  { %v2829_v49 = vpop.eup %2828 }
 0xf0d   :  { %v1465_v0 = vmul.f32 %v2829_v49, %v1463_v48  ;;  %vm1470_vm11 = vweird.f32 %v2829_v49 }
 0xf0e   :  { %vm1471_vm13 = vmor %vm1469_vm12, %vm1470_vm11 }
 0xf0f   :  { %v1466_v52 = vsub.f32 1.0, %v1465_v0 }
 0xf11   :  { %v1467_v55 = vmul.f32 %v2829_v49, %v1466_v52 }
 0xf13   :  { %v1468_v59 = vadd.f32 %v2829_v49, %v1467_v55 }
 0xf15   :  { %v1472_v57 = vsel %vm1471_vm13, %v2829_v49, %v1468_v59 }
 0xf16   :  { %v1477_v56 = vsel %vm1474_vm14, %v1476_v62, %v1472_v57 }
 0xf17   :  { %v1478_v58 = vmul.f32 %v2827_v51, %v1477_v56 }
 0xf19   :  { %v1479_v60 = vpack.c.bf16 %v1478_v58, %v1478_v58 }
 0xf1b   :  { %2653 = vmatmul.msk.bf16.vlgmr.msra.gmra.mxu2 %vm114_vm1, %v1479_v60 }
 0xf1c   :  { %1703 = vmatpush.bf16.msra.mxu2 %v3063_v10 }
 0xf2b   :  { %2660 = vmatmul.msk.bf16.vlgmr.msrb.gmra.mxu2 %vm79_vm0, %v1442_v40 }
 0xf2c   :  { %1770 = vmatpush.bf16.msrb.mxu2 %v3361_v53 }
 0xf30   :  { %1771 = vmatpush.bf16.msrb.mxu2 %v3367_v12 }
 0xf9e   :  { %v1492_v24 = vpop.f32.mrf.mxu2 }
 0xf9f   :  { %v1496_v28 = vpack.c.bf16 %v1492_v24, %v1492_v24 }
 0xfa1   :  { %2655 = vmatmul.msk.bf16.vlgmr.msra.gmra.mxu3 %vm163_vm7, %v1496_v28  ;;  %2657 = vmatmul.msk.bf16.vlgmr.msra.gmra.mxu0 %vm163_vm7, %v1496_v28 }
 0xfa2   :  { %2659 = vmatmul.msk.bf16.vlgmr.msrb.gmra.mxu1 %vm163_vm7, %v1496_v28  ;;  %1722 = vmatpush.bf16.msra.mxu3 %v3376_v15 }
 0xfa3   :  { %1739 = vmatpush.bf16.msra.mxu0 %v3382_v16  ;;  %1756 = vmatpush.bf16.msrb.mxu1 %v3388_v17 }
 0xfa6   :  { %v1494_v25 = vpop.f32.mrf.mxu2 }
 0xfae   :  { %v1560_v26 = vpop.f32.mrf.mxu2 }
 0xfb1   :  { %2661 = vmatmul.msk.bf16.vlgmr.msrb.gmra.mxu3 %vm79_vm0, %v1442_v40  ;;  %2662 = vmatmul.msk.bf16.vlgmr.msrb.gmra.mxu0 %vm79_vm0, %v1442_v40 }
 0xfb2   :  { %1783 = vmatpush.bf16.msrb.mxu3 %v3396_v20  ;;  %1796 = vmatpush.bf16.msrb.mxu0 %v3402_v54 }
 0xfb6   :  { %v1562_v1 = vpop.f32.mrf.mxu2  ;;  %1784 = vmatpush.bf16.msrb.mxu3 %v3408_v23  ;;  %1797 = vmatpush.bf16.msrb.mxu0 %v3414_v32 }
0x101e   :  { %v1528_v63 = vpop.f32.mrf.mxu0 }
0x101f   :  { %v1545_v29 = vpop.f32.mrf.mxu1  ;;  %v1532_v11 = vadd.f32 %v2656_v7, %v1528_v63 }
0x1020   :  { %v1549_v52 = vadd.f32 %v2658_v45, %v1545_v29 }
0x1021   :  { %v1533_v14 = vadd.f32 %v3432_v2, %v1532_v11 }
0x1022   :  { %v1550_v57 = vadd.f32 %v3441_v9, %v1549_v52 }
0x1024   :  { %v1511_v37 = vpop.f32.mrf.mxu3 }
0x1025   :  { %v1515_v30 = vadd.f32 %v2654_v4, %v1511_v37 }
0x1026   :  { %v1530_v31 = vpop.f32.mrf.mxu0 }
0x1027   :  { %v1516_v61 = vadd.f32 %v3423_v42, %v1515_v30  ;;  %v1547_v36 = vpop.f32.mrf.mxu1 }
0x1028   :  { %v1640_v36 = vpop.permute.xlu2 %1639 }
0x1029   :  { %v1590_v5 = vadd.f32 %v1560_v26, %v1516_v61 }
0x102b   :  { %v2663_v6 = vmul.f32 -1.442695, %v1590_v5  ;;  %v1647_v5 = vpop.permute.xlu0 %1646 }
0x102c   :  { %v1513_v8 = vpop.f32.mrf.mxu3  ;;  %v1649_v7 = vmul.f32 %v1647_v5, %v3489_v39 }
0x102d   :  { %2830 = vpow2.f32 %v2663_v6 }
0x102e   :  { %v1586_v3 = vpop.f32.mrf.mxu0 }
0x1033   :  { %v2831_v13 = vpop.eup %2830 }
0x1034   :  { %v1594_v18 = vadd.f32 1.0, %v2831_v13  ;;  %v1573_v19 = vpop.f32.mrf.mxu3 }
0x1035   :  { %v1610_v21 = vadd.f32 %v1573_v19, %v1533_v14  ;;  %v2069_v19 = vsub.f32 1.0, %v3503_v47 }
0x1036   :  { %2832 = vrcp.f32 %v1594_v18  ;;  %v1588_v33 = vpop.f32.mrf.mxu0  ;;  %v1606_v51 = vand.u32 2147483648, %v1594_v18  ;;  %v1604_v49 = vand.u32 2147483647, %v1594_v18  ;;  %vm1600_vm2 = vweird.f32 %v1594_v18 }
0x1037   :  { %v2664_v34 = vmul.f32 -1.442695, %v1610_v21  ;;  %v3551_v21 = vld [vmem:[%s3781_s3 + $0x50] sm:$0xff] }
0x1038   :  { %v1607_v22 = vor.u32 1.1754944e-38, %v1606_v51  ;;  %vm1605_vm4 = vcmp.eq.f32.partialorder %v1604_v49, 8.507059e+37 }
0x1039   :  { %2834 = vpow2.f32 %v2664_v34 }
0x103c   :  { %v2833_v38 = vpop.eup %2832  ;;  %v1575_v40 = vpop.f32.mrf.mxu3 }
0x103d   :  { %v1596_v41 = vmul.f32 %v2833_v38, %v1594_v18  ;;  %vm1601_vm15 = vweird.f32 %v2833_v38 }
0x103e   :  { %vm1602_vm3 = vmor %vm1600_vm2, %vm1601_vm15 }
0x103f   :  { %v2835_v50 = vpop.eup %2834  ;;  %v1597_v43 = vsub.f32 1.0, %v1596_v41 }
0x1040   :  { %v1614_v44 = vadd.f32 1.0, %v2835_v50 }
0x1041   :  { %v1598_v48 = vmul.f32 %v2833_v38, %v1597_v43 }
0x1042   :  { %2836 = vrcp.f32 %v1614_v44  ;;  %v1626_v24 = vand.u32 2147483648, %v1614_v44  ;;  %v1624_v25 = vand.u32 2147483647, %v1614_v44  ;;  %vm1620_vm6 = vweird.f32 %v1614_v44 }
0x1043   :  { %v1599_v0 = vadd.f32 %v2833_v38, %v1598_v48 }
0x1044   :  { %v1627_v1 = vor.u32 1.1754944e-38, %v1626_v24  ;;  %vm1625_vm9 = vcmp.eq.f32.partialorder %v1624_v25, 8.507059e+37 }
0x1045   :  { %v1603_v55 = vsel %vm1602_vm3, %v2833_v38, %v1599_v0 }
0x1046   :  { %v1608_v46 = vsel %vm1605_vm4, %v1607_v22, %v1603_v55 }
0x1047   :  { %v1630_v59 = vmul.f32 %v1608_v46, %v1586_v3 }
0x1048   :  { %v2837_v62 = vpop.eup %2836 }
0x1049   :  { %v1616_v56 = vmul.f32 %v2837_v62, %v1614_v44  ;;  %v1631_v58 = vadd.f32 %v1630_v59, %v1550_v57  ;;  %vm1621_vm5 = vweird.f32 %v2837_v62 }
0x104a   :  { %vm1622_vm8 = vmor %vm1620_vm6, %vm1621_vm5 }
0x104b   :  { %v1617_v60 = vsub.f32 1.0, %v1616_v56  ;;  %2838 = vtanh.f32 %v1631_v58 }
0x104d   :  { %v1618_v28 = vmul.f32 %v2837_v62, %v1617_v60 }
0x104f   :  { %v1619_v26 = vadd.f32 %v2837_v62, %v1618_v28 }
0x1051   :  { %v1623_v63 = vsel %vm1622_vm8, %v2837_v62, %v1619_v26  ;;  %v2839_v37 = vpop.eup %2838 }
0x1052   :  { %v1628_v29 = vsel %vm1625_vm9, %v1627_v1, %v1623_v63 }
0x1053   :  { %v1633_v4 = vsub.f32 1.0, %v1628_v29  ;;  %v1635_v31 = vmul.f32 %v1628_v29, %v3489_v39 }
0x1055   :  { %v1634_v30 = vmul.f32 %v2839_v37, %v1633_v4 }
0x1057   :  { %v1636_v61 = vadd.f32 %v1635_v31, %v1634_v30 }
0x1059   :  { %v1642_v6 = vmul.f32 %v1640_v36, %v1636_v61  ;;  %v2672_v61 = vld [vmem:[%s3780_s2 + $0x40] sm:$0xff] }
0x105b   :  { %v3537_v8 = vadd.f32 %v1649_v7, %v1642_v6 }
0x105d   :  { %1652 = vst.msk [vmem:[#allocation2 + $0x38] sm:$0xff] %vm79_vm0, %v3537_v8  ;;  %v1655_v3 = vpack.c.bf16 %v3537_v8, %v3537_v8 }
0x105f   :  { %2666 = vmatmul.msk.bf16.vlgmr.msra.gmra.mxu1 %vm79_vm0, %v1655_v3 }
0x1060   :  { %1878 = vmatpush.bf16.msra.mxu1 %v3333_v27  ;;  %v2282_v27 = vsub.f32 1.0, %v3551_v21 }
0x1064   :  { %1879 = vmatpush.bf16.msra.mxu1 %v3339_v35 }
0x10dc   :  { %v1668_v11 = vpop.f32.mrf.mxu1 }
0x10dd   :  { %v1672_v13 = vmul.f32 1.442695, %v1668_v11 }
0x10df   :  { %2840 = vpow2.f32 %v1672_v13 }
0x10e4   :  { %v1670_v14 = vpop.f32.mrf.mxu1 }
0x10e5   :  { %v2841_v18 = vpop.eup %2840 }
0x10e6   :  { %v1674_v39 = vsel %vm114_vm1, %v2841_v18, 0.0 }
0x10e7   :  { %1675 = vadd.xlane.f32.xlu0 %v1674_v39 }
0x10fb   :  { %2072 = vperm.xlu0 %2736, %v2069_v19  }
0x1103   :  { %2285 = vperm.xlu0 %2736, %v2282_v27  }
0x115a   :  { %v1676_v35 = vpop.xlane.xlu0 %1675 }
0x115b   :  { %2842 = vrcp.f32 %v1676_v35  ;;  %v1688_v40 = vand.u32 2147483648, %v1676_v35  ;;  %v1686_v50 = vand.u32 2147483647, %v1676_v35  ;;  %vm1682_vm11 = vweird.f32 %v1676_v35 }
0x115d   :  { %v1689_v47 = vor.u32 1.1754944e-38, %v1688_v40  ;;  %vm1687_vm13 = vcmp.eq.f32.partialorder %v1686_v50, 8.507059e+37 }
0x1161   :  { %v2843_v33 = vpop.eup %2842 }
0x1162   :  { %v1678_v34 = vmul.f32 %v2843_v33, %v1676_v35  ;;  %vm1683_vm10 = vweird.f32 %v2843_v33 }
0x1163   :  { %vm1684_vm12 = vmor %vm1682_vm11, %vm1683_vm10 }
0x1164   :  { %v1679_v38 = vsub.f32 1.0, %v1678_v34 }
0x1166   :  { %v1680_v41 = vmul.f32 %v2843_v33, %v1679_v38 }
0x1168   :  { %v1681_v43 = vadd.f32 %v2843_v33, %v1680_v41 }
0x116a   :  { %v1685_v51 = vsel %vm1684_vm12, %v2843_v33, %v1681_v43 }
0x116b   :  { %v1690_v44 = vsel %vm1687_vm13, %v1689_v47, %v1685_v51 }
0x116c   :  { %v1691_v45 = vmul.f32 %v2841_v18, %v1690_v44 }
0x116e   :  { %v1692_v48 = vpack.c.bf16 %v1691_v45, %v1691_v45  ;;  %v1853_v45 = vpop.permute.xlu2 %1852 }
0x1170   :  { %2667 = vmatmul.msk.bf16.vlgmr.msra.gmra.mxu2 %vm114_vm1, %v1692_v48  ;;  %v1860_v48 = vpop.permute.xlu1 %1859 }
0x1171   :  { %1916 = vmatpush.bf16.msra.mxu2 %v3063_v10 }
0x1180   :  { %2674 = vmatmul.msk.bf16.vlgmr.msrb.gmra.mxu2 %vm79_vm0, %v1655_v3 }
0x1181   :  { %1983 = vmatpush.bf16.msrb.mxu2 %v3361_v53 }
0x1185   :  { %1984 = vmatpush.bf16.msrb.mxu2 %v3367_v12 }
0x11f3   :  { %v1705_v49 = vpop.f32.mrf.mxu2 }
0x11f4   :  { %v1709_v0 = vpack.c.bf16 %v1705_v49, %v1705_v49 }
0x11f6   :  { %2669 = vmatmul.msk.bf16.vlgmr.msra.gmra.mxu3 %vm163_vm7, %v1709_v0  ;;  %2671 = vmatmul.msk.bf16.vlgmr.msra.gmra.mxu0 %vm163_vm7, %v1709_v0 }
0x11f7   :  { %2673 = vmatmul.msk.bf16.vlgmr.msrb.gmra.mxu1 %vm163_vm7, %v1709_v0  ;;  %1935 = vmatpush.bf16.msra.mxu3 %v3376_v15  ;;  %v1862_v0 = vmul.f32 %v1860_v48, %v3537_v8 }
0x11f8   :  { %1952 = vmatpush.bf16.msra.mxu0 %v3382_v16  ;;  %1969 = vmatpush.bf16.msrb.mxu1 %v3388_v17  ;;  %v2668_v16 = vld [vmem:[%s3778_s0 + $0x40] sm:$0xff] }
0x11fb   :  { %v1707_v52 = vpop.f32.mrf.mxu2 }
0x1203   :  { %v1773_v22 = vpop.f32.mrf.mxu2 }
0x1206   :  { %2675 = vmatmul.msk.bf16.vlgmr.msrb.gmra.mxu3 %vm79_vm0, %v1655_v3  ;;  %2676 = vmatmul.msk.bf16.vlgmr.msrb.gmra.mxu0 %vm79_vm0, %v1655_v3 }
0x1207   :  { %1996 = vmatpush.bf16.msrb.mxu3 %v3396_v20  ;;  %2009 = vmatpush.bf16.msrb.mxu0 %v3402_v54  ;;  %v2670_v54 = vld [vmem:[%s3779_s1 + $0x40] sm:$0xff] }
0x120b   :  { %v1775_v53 = vpop.f32.mrf.mxu2  ;;  %1997 = vmatpush.bf16.msrb.mxu3 %v3408_v23  ;;  %2010 = vmatpush.bf16.msrb.mxu0 %v3414_v32 }
0x120c   :  { %v3595_v53 = vld [vmem:[%s3791_s13 + $0x8] sm:$0xff] }
0x1273   :  { %v1741_v12 = vpop.f32.mrf.mxu0 }
0x1274   :  { %v1758_v15 = vpop.f32.mrf.mxu1  ;;  %v1745_v56 = vadd.f32 %v2670_v54, %v1741_v12 }
0x1275   :  { %v1762_v6 = vadd.f32 %v2672_v61, %v1758_v15  ;;  %v3659_v61 = vld [vmem:[%s3787_s9 + $0x8] sm:$0xff] }
0x1276   :  { %v1746_v60 = vadd.f32 %v3432_v2, %v1745_v56 }
0x1277   :  { %v1763_v18 = vadd.f32 %v3441_v9, %v1762_v6 }
0x1279   :  { %v1724_v17 = vpop.f32.mrf.mxu3 }
0x127a   :  { %v1728_v55 = vadd.f32 %v2668_v16, %v1724_v17 }
0x127b   :  { %v1743_v46 = vpop.f32.mrf.mxu0 }
0x127c   :  { %v1729_v59 = vadd.f32 %v3423_v42, %v1728_v55  ;;  %v1760_v62 = vpop.f32.mrf.mxu1  ;;  %v3609_v46 = vld [vmem:[%s3781_s3 + $0x58] sm:$0xff] }
0x127e   :  { %v1803_v20 = vadd.f32 %v1773_v22, %v1729_v59 }
0x1280   :  { %v2677_v57 = vmul.f32 -1.442695, %v1803_v20 }
0x1281   :  { %v1726_v23 = vpop.f32.mrf.mxu3 }
0x1282   :  { %2844 = vpow2.f32 %v2677_v57 }
0x1283   :  { %v1799_v32 = vpop.f32.mrf.mxu0 }
0x1288   :  { %v2845_v58 = vpop.eup %2844 }
0x1289   :  { %v1807_v24 = vadd.f32 1.0, %v2845_v58  ;;  %v1786_v28 = vpop.f32.mrf.mxu3 }
0x128a   :  { %v1823_v25 = vadd.f32 %v1786_v28, %v1746_v60 }
0x128b   :  { %2846 = vrcp.f32 %v1807_v24  ;;  %v1801_v26 = vpop.f32.mrf.mxu0  ;;  %v1819_v30 = vand.u32 2147483648, %v1807_v24  ;;  %v1817_v2 = vand.u32 2147483647, %v1807_v24  ;;  %vm1813_vm15 = vweird.f32 %v1807_v24 }
0x128c   :  { %v2678_v42 = vmul.f32 -1.442695, %v1823_v25  ;;  %v3618_v25 = vld [vmem:[%s3785_s7 + $0x8] sm:$0xff]  ;;  %v3624_v26 = vld [vmem:[%s3785_s7] sm:$0xff] }
0x128d   :  { %v1820_v7 = vor.u32 1.1754944e-38, %v1819_v30  ;;  %vm1818_vm3 = vcmp.eq.f32.partialorder %v1817_v2, 8.507059e+37  ;;  %v3665_v2 = vld [vmem:[%s3786_s8] sm:$0xff] }
0x128e   :  { %2848 = vpow2.f32 %v2678_v42 }
0x1291   :  { %v2847_v1 = vpop.eup %2846  ;;  %v1788_v63 = vpop.f32.mrf.mxu3 }
0x1292   :  { %v1809_v29 = vmul.f32 %v2847_v1, %v1807_v24  ;;  %vm1814_vm14 = vweird.f32 %v2847_v1  ;;  %v3633_v63 = vld [vmem:[%s3782_s4] sm:$0xff] }
0x1293   :  { %vm1815_vm2 = vmor %vm1813_vm15, %vm1814_vm14 }
0x1294   :  { %v2849_v4 = vpop.eup %2848  ;;  %v1810_v37 = vsub.f32 1.0, %v1809_v29  ;;  %v3639_v29 = vld [vmem:[%s3783_s5] sm:$0xff] }
0x1295   :  { %v1827_v31 = vadd.f32 1.0, %v2849_v4  ;;  %v3645_v4 = vld [vmem:[%s3784_s6] sm:$0xff] }
0x1296   :  { %v1811_v36 = vmul.f32 %v2847_v1, %v1810_v37 }
0x1297   :  { %2850 = vrcp.f32 %v1827_v31  ;;  %v1839_v35 = vand.u32 2147483648, %v1827_v31  ;;  %v1837_v34 = vand.u32 2147483647, %v1827_v31  ;;  %vm1833_vm5 = vweird.f32 %v1827_v31 }
0x1298   :  { %v1812_v5 = vadd.f32 %v2847_v1, %v1811_v36 }
0x1299   :  { %v1840_v40 = vor.u32 1.1754944e-38, %v1839_v35  ;;  %vm1838_vm8 = vcmp.eq.f32.partialorder %v1837_v34, 8.507059e+37 }
0x129a   :  { %v1816_v3 = vsel %vm1815_vm2, %v2847_v1, %v1812_v5  ;;  %v3671_v5 = vld [vmem:[%s3787_s9] sm:$0xff] }
0x129b   :  { %v1821_v11 = vsel %vm1818_vm3, %v1820_v7, %v1816_v3  ;;  %v2682_v3 = vld [vmem:[%s3778_s0 + $0x48] sm:$0xff] }
0x129c   :  { %v1843_v13 = vmul.f32 %v1821_v11, %v1799_v32 }
0x129d   :  { %v2851_v14 = vpop.eup %2850 }
0x129e   :  { %v1829_v39 = vmul.f32 %v2851_v14, %v1827_v31  ;;  %v1844_v19 = vadd.f32 %v1843_v13, %v1763_v18  ;;  %vm1834_vm4 = vweird.f32 %v2851_v14  ;;  %v3653_v31 = vld [vmem:[%s3786_s8 + $0x8] sm:$0xff]  ;;  %v3680_v18 = vld [vmem:[%s3788_s10] ss:$0 sm:$0xff] }
0x129f   :  { %vm1835_vm6 = vmor %vm1833_vm5, %vm1834_vm4 }
0x12a0   :  { %v1830_v27 = vsub.f32 1.0, %v1829_v39  ;;  %2852 = vtanh.f32 %v1844_v19 }
0x12a2   :  { %v1831_v33 = vmul.f32 %v2851_v14, %v1830_v27 }
0x12a4   :  { %v1832_v38 = vadd.f32 %v2851_v14, %v1831_v33  ;;  %v2684_v33 = vld [vmem:[%s3779_s1 + $0x48] sm:$0xff] }
0x12a6   :  { %v1836_v41 = vsel %vm1835_vm6, %v2851_v14, %v1832_v38  ;;  %v2853_v47 = vpop.eup %2852 }
0x12a7   :  { %v1841_v50 = vsel %vm1838_vm8, %v1840_v40, %v1836_v41 }
0x12a8   :  { %v1846_v43 = vsub.f32 1.0, %v1841_v50  ;;  %v1848_v9 = vmul.f32 %v1841_v50, %v3537_v8  ;;  %v3601_v8 = vld [vmem:[%s3791_s13] sm:$0xff] }
0x12a9   :  { %v3689_v50 = vld [vmem:[%s3789_s11] ss:$0 sm:$0xff] }
0x12aa   :  { %v1847_v51 = vmul.f32 %v2853_v47, %v1846_v43 }
0x12ac   :  { %v1849_v44 = vadd.f32 %v1848_v9, %v1847_v51 }
0x12ae   :  { %v1855_v49 = vmul.f32 %v1853_v45, %v1849_v44 }
0x12b0   :  { %v3585_v52 = vadd.f32 %v1862_v0, %v1855_v49 }
0x12b2   :  { %1865 = vst.msk [vmem:[#allocation2 + $0x40] sm:$0xff] %vm79_vm0, %v3585_v52  ;;  %v1868_v22 = vpack.c.bf16 %v3585_v52, %v3585_v52 }
0x12b4   :  { %2680 = vmatmul.msk.bf16.vlgmr.msra.gmra.mxu1 %vm79_vm0, %v1868_v22 }
0x12b5   :  { %2091 = vmatpush.bf16.msra.mxu1 %v3595_v53 }
0x12b9   :  { %2092 = vmatpush.bf16.msra.mxu1 %v3601_v8 }
0x1331   :  { %v1881_v12 = vpop.f32.mrf.mxu1 }
0x1332   :  { %v1885_v15 = vmul.f32 1.442695, %v1881_v12 }
0x1334   :  { %2854 = vpow2.f32 %v1885_v15 }
0x1339   :  { %v1883_v16 = vpop.f32.mrf.mxu1 }
0x133a   :  { %v2855_v17 = vpop.eup %2854 }
0x133b   :  { %v1887_v55 = vsel %vm114_vm1, %v2855_v17, 0.0 }
0x133c   :  { %1888 = vadd.xlane.f32.xlu2 %v1887_v55 }
0x1354   :  { %2278 = vperm.xlu2 %2738, %v3551_v21  }
0x135c   :  { %2491 = vperm.xlu2 %2738, %v3609_v46  }
0x13af   :  { %v1889_v59 = vpop.xlane.xlu2 %1888 }
0x13b0   :  { %2856 = vrcp.f32 %v1889_v59  ;;  %v1901_v54 = vand.u32 2147483648, %v1889_v59  ;;  %v1899_v32 = vand.u32 2147483647, %v1889_v59  ;;  %vm1895_vm10 = vweird.f32 %v1889_v59 }
0x13b2   :  { %v1902_v21 = vor.u32 1.1754944e-38, %v1901_v54  ;;  %vm1900_vm12 = vcmp.eq.f32.partialorder %v1899_v32, 8.507059e+37 }
0x13b6   :  { %v2857_v62 = vpop.eup %2856 }
0x13b7   :  { %v1891_v20 = vmul.f32 %v2857_v62, %v1889_v59  ;;  %vm1896_vm9 = vweird.f32 %v2857_v62 }
0x13b8   :  { %vm1897_vm11 = vmor %vm1895_vm10, %vm1896_vm9 }
0x13b9   :  { %v1892_v57 = vsub.f32 1.0, %v1891_v20 }
0x13bb   :  { %v1893_v23 = vmul.f32 %v2857_v62, %v1892_v57 }
0x13bd   :  { %v1894_v56 = vadd.f32 %v2857_v62, %v1893_v23 }
0x13bf   :  { %v1898_v58 = vsel %vm1897_vm11, %v2857_v62, %v1894_v56 }
0x13c0   :  { %v1903_v60 = vsel %vm1900_vm12, %v1902_v21, %v1898_v58  ;;  %v3698_v21 = vld [vmem:[%s3790_s12] ss:$0 sm:$0xff] }
0x13c1   :  { %v1904_v24 = vmul.f32 %v2855_v17, %v1903_v60  ;;  %v2686_v17 = vld [vmem:[%s3780_s2 + $0x48] sm:$0xff] }
0x13c3   :  { %v1905_v28 = vpack.c.bf16 %v1904_v24, %v1904_v24 }
0x13c5   :  { %2681 = vmatmul.msk.bf16.vlgmr.msra.gmra.mxu2 %vm114_vm1, %v1905_v28 }
0x13c6   :  { %2129 = vmatpush.bf16.msra.mxu2 %v3063_v10 }
0x13d5   :  { %2688 = vmatmul.msk.bf16.vlgmr.msrb.gmra.mxu2 %vm79_vm0, %v1868_v22 }
0x13d6   :  { %2196 = vmatpush.bf16.msrb.mxu2 %v3618_v25 }
0x13da   :  { %2197 = vmatpush.bf16.msrb.mxu2 %v3624_v26 }
0x1448   :  { %v1918_v42 = vpop.f32.mrf.mxu2 }
0x1449   :  { %v1922_v1 = vpack.c.bf16 %v1918_v42, %v1918_v42 }
0x144b   :  { %2683 = vmatmul.msk.bf16.vlgmr.msra.gmra.mxu3 %vm163_vm7, %v1922_v1  ;;  %2685 = vmatmul.msk.bf16.vlgmr.msra.gmra.mxu0 %vm163_vm7, %v1922_v1 }
0x144c   :  { %2687 = vmatmul.msk.bf16.vlgmr.msrb.gmra.mxu1 %vm163_vm7, %v1922_v1  ;;  %2148 = vmatpush.bf16.msra.mxu3 %v3633_v63 }
0x144d   :  { %2165 = vmatpush.bf16.msra.mxu0 %v3639_v29  ;;  %2182 = vmatpush.bf16.msrb.mxu1 %v3645_v4 }
0x1450   :  { %v1920_v37 = vpop.f32.mrf.mxu2 }
0x1458   :  { %v1986_v30 = vpop.f32.mrf.mxu2 }
0x145b   :  { %2689 = vmatmul.msk.bf16.vlgmr.msrb.gmra.mxu3 %vm79_vm0, %v1868_v22  ;;  %2690 = vmatmul.msk.bf16.vlgmr.msrb.gmra.mxu0 %vm79_vm0, %v1868_v22 }
0x145c   :  { %2209 = vmatpush.bf16.msrb.mxu3 %v3653_v31  ;;  %2222 = vmatpush.bf16.msrb.mxu0 %v3659_v61 }
0x1460   :  { %v1988_v36 = vpop.f32.mrf.mxu2  ;;  %2210 = vmatpush.bf16.msrb.mxu3 %v3665_v2  ;;  %2223 = vmatpush.bf16.msrb.mxu0 %v3671_v5 }
0x14c8   :  { %v1954_v6 = vpop.f32.mrf.mxu0 }
0x14c9   :  { %v1971_v7 = vpop.f32.mrf.mxu1  ;;  %v1958_v40 = vadd.f32 %v2684_v33, %v1954_v6 }
0x14ca   :  { %v1975_v20 = vadd.f32 %v2686_v17, %v1971_v7 }
0x14cb   :  { %v1959_v43 = vadd.f32 %v3689_v50, %v1958_v40 }
0x14cc   :  { %v1976_v58 = vadd.f32 %v3698_v21, %v1975_v20 }
0x14ce   :  { %v1937_v11 = vpop.f32.mrf.mxu3 }
0x14cf   :  { %v1941_v13 = vadd.f32 %v2682_v3, %v1937_v11 }
0x14d0   :  { %v1956_v14 = vpop.f32.mrf.mxu0 }
0x14d1   :  { %v1942_v39 = vadd.f32 %v3680_v18, %v1941_v13  ;;  %v1973_v19 = vpop.f32.mrf.mxu1 }
0x14d2   :  { %v2066_v19 = vpop.permute.xlu1 %2065 }
0x14d3   :  { %v2016_v27 = vadd.f32 %v1986_v30, %v1942_v39 }
0x14d5   :  { %v2691_v35 = vmul.f32 -1.442695, %v2016_v27  ;;  %v2073_v27 = vpop.permute.xlu0 %2072 }
0x14d6   :  { %v1939_v34 = vpop.f32.mrf.mxu3  ;;  %v2075_v33 = vmul.f32 %v2073_v27, %v3585_v52 }
0x14d7   :  { %2858 = vpow2.f32 %v2691_v35 }
0x14d8   :  { %v2012_v38 = vpop.f32.mrf.mxu0 }
0x14dd   :  { %v2859_v41 = vpop.eup %2858 }
0x14de   :  { %v2020_v47 = vadd.f32 1.0, %v2859_v41  ;;  %v1999_v51 = vpop.f32.mrf.mxu3 }
0x14df   :  { %v2036_v9 = vadd.f32 %v1999_v51, %v1959_v43  ;;  %v2495_v51 = vsub.f32 1.0, %v3609_v46 }
0x14e0   :  { %2860 = vrcp.f32 %v2020_v47  ;;  %v2014_v44 = vpop.f32.mrf.mxu0  ;;  %v2032_v15 = vand.u32 2147483648, %v2020_v47  ;;  %v2030_v59 = vand.u32 2147483647, %v2020_v47  ;;  %vm2026_vm14 = vweird.f32 %v2020_v47 }
0x14e1   :  { %v2692_v45 = vmul.f32 -1.442695, %v2036_v9 }
0x14e2   :  { %v2033_v57 = vor.u32 1.1754944e-38, %v2032_v15  ;;  %vm2031_vm2 = vcmp.eq.f32.partialorder %v2030_v59, 8.507059e+37 }
0x14e3   :  { %2862 = vpow2.f32 %v2692_v45 }
0x14e6   :  { %v2861_v48 = vpop.eup %2860  ;;  %v2001_v49 = vpop.f32.mrf.mxu3 }
0x14e7   :  { %v2022_v0 = vmul.f32 %v2861_v48, %v2020_v47  ;;  %vm2027_vm13 = vweird.f32 %v2861_v48 }
0x14e8   :  { %vm2028_vm15 = vmor %vm2026_vm14, %vm2027_vm13 }
0x14e9   :  { %v2863_v22 = vpop.eup %2862  ;;  %v2023_v12 = vsub.f32 1.0, %v2022_v0 }
0x14ea   :  { %v2040_v16 = vadd.f32 1.0, %v2863_v22 }
0x14eb   :  { %v2024_v55 = vmul.f32 %v2861_v48, %v2023_v12 }
0x14ec   :  { %2864 = vrcp.f32 %v2040_v16  ;;  %v2052_v42 = vand.u32 2147483648, %v2040_v16  ;;  %v2050_v37 = vand.u32 2147483647, %v2040_v16  ;;  %vm2046_vm4 = vweird.f32 %v2040_v16 }
0x14ed   :  { %v2025_v62 = vadd.f32 %v2861_v48, %v2024_v55 }
0x14ee   :  { %v2053_v36 = vor.u32 1.1754944e-38, %v2052_v42  ;;  %vm2051_vm6 = vcmp.eq.f32.partialorder %v2050_v37, 8.507059e+37 }
0x14ef   :  { %v2029_v54 = vsel %vm2028_vm15, %v2861_v48, %v2025_v62 }
0x14f0   :  { %v2034_v23 = vsel %vm2031_vm2, %v2033_v57, %v2029_v54 }
0x14f1   :  { %v2056_v32 = vmul.f32 %v2034_v23, %v2012_v38 }
0x14f2   :  { %v2865_v56 = vpop.eup %2864 }
0x14f3   :  { %v2042_v60 = vmul.f32 %v2865_v56, %v2040_v16  ;;  %v2057_v24 = vadd.f32 %v2056_v32, %v1976_v58  ;;  %vm2047_vm3 = vweird.f32 %v2865_v56 }
0x14f4   :  { %vm2048_vm5 = vmor %vm2046_vm4, %vm2047_vm3 }
0x14f5   :  { %v2043_v28 = vsub.f32 1.0, %v2042_v60  ;;  %2866 = vtanh.f32 %v2057_v24 }
0x14f7   :  { %v2044_v1 = vmul.f32 %v2865_v56, %v2043_v28 }
0x14f9   :  { %v2045_v30 = vadd.f32 %v2865_v56, %v2044_v1 }
0x14fb   :  { %v2049_v6 = vsel %vm2048_vm5, %v2865_v56, %v2045_v30  ;;  %v2867_v11 = vpop.eup %2866 }
0x14fc   :  { %v2054_v7 = vsel %vm2051_vm6, %v2053_v36, %v2049_v6 }
0x14fd   :  { %v2059_v3 = vsub.f32 1.0, %v2054_v7  ;;  %v2061_v14 = vmul.f32 %v2054_v7, %v3585_v52 }
0x14ff   :  { %v2060_v13 = vmul.f32 %v2867_v11, %v2059_v3 }
0x1501   :  { %v2062_v39 = vadd.f32 %v2061_v14, %v2060_v13  ;;  %v2700_v13 = vld [vmem:[%s3780_s2 + $0x50] sm:$0xff] }
0x1503   :  { %v2068_v35 = vmul.f32 %v2066_v19, %v2062_v39 }
0x1505   :  { %v3703_v34 = vadd.f32 %v2075_v33, %v2068_v35 }
0x1507   :  { %2078 = vst.msk [vmem:[#allocation2 + $0x48] sm:$0xff] %vm79_vm0, %v3703_v34  ;;  %v2081_v38 = vpack.c.bf16 %v3703_v34, %v3703_v34 }
0x1509   :  { %2694 = vmatmul.msk.bf16.vlgmr.msra.gmra.mxu1 %vm79_vm0, %v2081_v38 }
0x150a   :  { %2304 = vmatpush.bf16.msra.mxu1 %v3595_v53 }
0x150e   :  { %2305 = vmatpush.bf16.msra.mxu1 %v3601_v8 }
0x1586   :  { %v2094_v40 = vpop.f32.mrf.mxu1 }
0x1587   :  { %v2098_v41 = vmul.f32 1.442695, %v2094_v40 }
0x1589   :  { %2868 = vpow2.f32 %v2098_v41 }
0x158e   :  { %v2096_v43 = vpop.f32.mrf.mxu1 }
0x158f   :  { %v2869_v47 = vpop.eup %2868 }
0x1590   :  { %v2100_v52 = vsel %vm114_vm1, %v2869_v47, 0.0 }
0x1591   :  { %2101 = vadd.xlane.f32.xlu1 %v2100_v52 }
0x15aa   :  { %2498 = vperm.xlu1 %2737, %v2495_v51  }
0x1604   :  { %v2102_v9 = vpop.xlane.xlu1 %2101 }
0x1605   :  { %2870 = vrcp.f32 %v2102_v9  ;;  %v2114_v49 = vand.u32 2147483648, %v2102_v9  ;;  %v2112_v8 = vand.u32 2147483647, %v2102_v9  ;;  %vm2108_vm9 = vweird.f32 %v2102_v9 }
0x1607   :  { %v2115_v22 = vor.u32 1.1754944e-38, %v2114_v49  ;;  %vm2113_vm11 = vcmp.eq.f32.partialorder %v2112_v8, 8.507059e+37 }
0x160b   :  { %v2871_v44 = vpop.eup %2870 }
0x160c   :  { %v2104_v45 = vmul.f32 %v2871_v44, %v2102_v9  ;;  %vm2109_vm8 = vweird.f32 %v2871_v44 }
0x160d   :  { %vm2110_vm10 = vmor %vm2108_vm9, %vm2109_vm8 }
0x160e   :  { %v2105_v48 = vsub.f32 1.0, %v2104_v45 }
0x1610   :  { %v2106_v53 = vmul.f32 %v2871_v44, %v2105_v48 }
0x1612   :  { %v2107_v0 = vadd.f32 %v2871_v44, %v2106_v53 }
0x1614   :  { %v2111_v12 = vsel %vm2110_vm10, %v2871_v44, %v2107_v0 }
0x1615   :  { %v2116_v15 = vsel %vm2113_vm11, %v2115_v22, %v2111_v12 }
0x1616   :  { %v2117_v16 = vmul.f32 %v2869_v47, %v2116_v15 }
0x1618   :  { %v2118_v17 = vpack.c.bf16 %v2117_v16, %v2117_v16 }
0x161a   :  { %2695 = vmatmul.msk.bf16.vlgmr.msra.gmra.mxu2 %vm114_vm1, %v2118_v17  ;;  %v2286_v17 = vpop.permute.xlu0 %2285 }
0x161b   :  { %2342 = vmatpush.bf16.msra.mxu2 %v3063_v10 }
0x162a   :  { %2702 = vmatmul.msk.bf16.vlgmr.msrb.gmra.mxu2 %vm79_vm0, %v2081_v38 }
0x162b   :  { %2409 = vmatpush.bf16.msrb.mxu2 %v3618_v25 }
0x162f   :  { %2410 = vmatpush.bf16.msrb.mxu2 %v3624_v26 }
0x169d   :  { %v2131_v46 = vpop.f32.mrf.mxu2 }
0x169e   :  { %v2135_v55 = vpack.c.bf16 %v2131_v46, %v2131_v46  ;;  %v2279_v46 = vpop.permute.xlu2 %2278 }
0x16a0   :  { %2697 = vmatmul.msk.bf16.vlgmr.msra.gmra.mxu3 %vm163_vm7, %v2135_v55  ;;  %2699 = vmatmul.msk.bf16.vlgmr.msra.gmra.mxu0 %vm163_vm7, %v2135_v55 }
0x16a1   :  { %2701 = vmatmul.msk.bf16.vlgmr.msrb.gmra.mxu1 %vm163_vm7, %v2135_v55  ;;  %2361 = vmatpush.bf16.msra.mxu3 %v3633_v63 }
0x16a2   :  { %2378 = vmatpush.bf16.msra.mxu0 %v3639_v29  ;;  %2395 = vmatpush.bf16.msrb.mxu1 %v3645_v4  ;;  %v2696_v29 = vld [vmem:[%s3778_s0 + $0x50] sm:$0xff] }
0x16a5   :  { %v2133_v10 = vpop.f32.mrf.mxu2 }
0x16a6   :  { %v2288_v10 = vmul.f32 %v2286_v17, %v3703_v34 }
0x16ad   :  { %v2199_v59 = vpop.f32.mrf.mxu2 }
0x16b0   :  { %2703 = vmatmul.msk.bf16.vlgmr.msrb.gmra.mxu3 %vm79_vm0, %v2081_v38  ;;  %2704 = vmatmul.msk.bf16.vlgmr.msrb.gmra.mxu0 %vm79_vm0, %v2081_v38 }
0x16b1   :  { %2422 = vmatpush.bf16.msrb.mxu3 %v3653_v31  ;;  %2435 = vmatpush.bf16.msrb.mxu0 %v3659_v61  ;;  %v2698_v61 = vld [vmem:[%s3779_s1 + $0x50] sm:$0xff] }
0x16b5   :  { %v2201_v25 = vpop.f32.mrf.mxu2  ;;  %2423 = vmatpush.bf16.msrb.mxu3 %v3665_v2  ;;  %2436 = vmatpush.bf16.msrb.mxu0 %v3671_v5 }
0x171d   :  { %v2167_v26 = vpop.f32.mrf.mxu0 }
0x171e   :  { %v2184_v63 = vpop.f32.mrf.mxu1  ;;  %v2171_v32 = vadd.f32 %v2698_v61, %v2167_v26 }
0x171f   :  { %v2188_v27 = vadd.f32 %v2700_v13, %v2184_v63 }
0x1720   :  { %v2172_v58 = vadd.f32 %v3689_v50, %v2171_v32 }
0x1721   :  { %v2189_v43 = vadd.f32 %v3698_v21, %v2188_v27  ;;  %v2712_v27 = vld [vmem:[%s3779_s1 + $0x58] sm:$0xff] }
0x1723   :  { %v2150_v4 = vpop.f32.mrf.mxu3 }
0x1724   :  { %v2154_v62 = vadd.f32 %v2696_v29, %v2150_v4 }
0x1725   :  { %v2169_v20 = vpop.f32.mrf.mxu0 }
0x1726   :  { %v2155_v57 = vadd.f32 %v3680_v18, %v2154_v62  ;;  %v2186_v54 = vpop.f32.mrf.mxu1 }
0x1728   :  { %v2229_v31 = vadd.f32 %v2199_v59, %v2155_v57 }
0x172a   :  { %v2705_v23 = vmul.f32 -1.442695, %v2229_v31 }
0x172b   :  { %v2152_v2 = vpop.f32.mrf.mxu3 }
0x172c   :  { %2872 = vpow2.f32 %v2705_v23 }
0x172d   :  { %v2225_v5 = vpop.f32.mrf.mxu0 }
0x1732   :  { %v2873_v56 = vpop.eup %2872 }
0x1733   :  { %v2233_v60 = vadd.f32 1.0, %v2873_v56  ;;  %v2212_v24 = vpop.f32.mrf.mxu3 }
0x1734   :  { %v2249_v28 = vadd.f32 %v2212_v24, %v2172_v58 }
0x1735   :  { %2874 = vrcp.f32 %v2233_v60  ;;  %v2227_v42 = vpop.f32.mrf.mxu0  ;;  %v2245_v3 = vand.u32 2147483648, %v2233_v60  ;;  %v2243_v39 = vand.u32 2147483647, %v2233_v60  ;;  %vm2239_vm13 = vweird.f32 %v2233_v60 }
0x1736   :  { %v2706_v1 = vmul.f32 -1.442695, %v2249_v28 }
0x1737   :  { %v2246_v35 = vor.u32 1.1754944e-38, %v2245_v3  ;;  %vm2244_vm15 = vcmp.eq.f32.partialorder %v2243_v39, 8.507059e+37 }
0x1738   :  { %2876 = vpow2.f32 %v2706_v1 }
0x173b   :  { %v2875_v37 = vpop.eup %2874  ;;  %v2214_v30 = vpop.f32.mrf.mxu3 }
0x173c   :  { %v2235_v36 = vmul.f32 %v2875_v37, %v2233_v60  ;;  %vm2240_vm12 = vweird.f32 %v2875_v37 }
0x173d   :  { %vm2241_vm14 = vmor %vm2239_vm13, %vm2240_vm12 }
0x173e   :  { %v2877_v6 = vpop.eup %2876  ;;  %v2236_v7 = vsub.f32 1.0, %v2235_v36 }
0x173f   :  { %v2253_v11 = vadd.f32 1.0, %v2877_v6  ;;  %v2710_v6 = vld [vmem:[%s3778_s0 + $0x58] sm:$0xff] }
0x1740   :  { %v2237_v14 = vmul.f32 %v2875_v37, %v2236_v7 }
0x1741   :  { %2878 = vrcp.f32 %v2253_v11  ;;  %v2265_v9 = vand.u32 2147483648, %v2253_v11  ;;  %v2263_v45 = vand.u32 2147483647, %v2253_v11  ;;  %vm2259_vm3 = vweird.f32 %v2253_v11 }
0x1742   :  { %v2238_v19 = vadd.f32 %v2875_v37, %v2237_v14 }
0x1743   :  { %v2266_v49 = vor.u32 1.1754944e-38, %v2265_v9  ;;  %vm2264_vm5 = vcmp.eq.f32.partialorder %v2263_v45, 8.507059e+37 }
0x1744   :  { %v2242_v33 = vsel %vm2241_vm14, %v2875_v37, %v2238_v19 }
0x1745   :  { %v2247_v38 = vsel %vm2244_vm15, %v2246_v35, %v2242_v33 }
0x1746   :  { %v2269_v40 = vmul.f32 %v2247_v38, %v2225_v5 }
0x1747   :  { %v2879_v41 = vpop.eup %2878 }
0x1748   :  { %v2255_v47 = vmul.f32 %v2879_v41, %v2253_v11  ;;  %v2270_v52 = vadd.f32 %v2269_v40, %v2189_v43  ;;  %vm2260_vm2 = vweird.f32 %v2879_v41 }
0x1749   :  { %vm2261_vm4 = vmor %vm2259_vm3, %vm2260_vm2 }
0x174a   :  { %v2256_v51 = vsub.f32 1.0, %v2255_v47  ;;  %2880 = vtanh.f32 %v2270_v52 }
0x174c   :  { %v2257_v44 = vmul.f32 %v2879_v41, %v2256_v51 }
0x174e   :  { %v2258_v48 = vadd.f32 %v2879_v41, %v2257_v44 }
0x1750   :  { %v2262_v53 = vsel %vm2261_vm4, %v2879_v41, %v2258_v48  ;;  %v2881_v22 = vpop.eup %2880 }
0x1751   :  { %v2267_v8 = vsel %vm2264_vm5, %v2266_v49, %v2262_v53 }
0x1752   :  { %v2272_v0 = vsub.f32 1.0, %v2267_v8  ;;  %v2274_v15 = vmul.f32 %v2267_v8, %v3703_v34 }
0x1754   :  { %v2273_v12 = vmul.f32 %v2881_v22, %v2272_v0  ;;  %v2714_v0 = vld [vmem:[%s3780_s2 + $0x58] sm:$0xff]  ;;  %s2951_s2 = smov [#allocation2]  }
0x1755   :  { %s2509_s16 = sshll.u32 %s2951_s2, 4  ;;  %s2510_s16 = int_to_ptr.vmem [resolvable:$true] %s2509_s16 }
0x1756   :  { %v2275_v16 = vadd.f32 %v2274_v15, %v2273_v12 }
0x1758   :  { %v2281_v55 = vmul.f32 %v2279_v46, %v2275_v16 }
0x175a   :  { %v3745_v59 = vadd.f32 %v2288_v10, %v2281_v55 }
0x175c   :  { %2291 = vst.msk [vmem:[#allocation2 + $0x50] sm:$0xff] %vm79_vm0, %v3745_v59  ;;  %v2294_v25 = vpack.c.bf16 %v3745_v59, %v3745_v59 }
0x175e   :  { %2708 = vmatmul.msk.bf16.vlgmr.msra.gmra.mxu1 %vm79_vm0, %v2294_v25 }
0x17db   :  { %v2307_v26 = vpop.f32.mrf.mxu1 }
0x17dc   :  { %v2311_v63 = vmul.f32 1.442695, %v2307_v26 }
0x17de   :  { %2882 = vpow2.f32 %v2311_v63 }
0x17e3   :  { %v2309_v29 = vpop.f32.mrf.mxu1 }
0x17e4   :  { %v2883_v4 = vpop.eup %2882 }
0x17e5   :  { %v2313_v62 = vsel %vm114_vm1, %v2883_v4, 0.0 }
0x17e6   :  { %2314 = vadd.xlane.f32.xlu0 %v2313_v62 }
0x1859   :  { %v2315_v20 = vpop.xlane.xlu0 %2314 }
0x185a   :  { %2884 = vrcp.f32 %v2315_v20  ;;  %v2327_v31 = vand.u32 2147483648, %v2315_v20  ;;  %v2325_v61 = vand.u32 2147483647, %v2315_v20  ;;  %vm2321_vm8 = vweird.f32 %v2315_v20 }
0x185c   :  { %v2328_v5 = vor.u32 1.1754944e-38, %v2327_v31  ;;  %vm2326_vm10 = vcmp.eq.f32.partialorder %v2325_v61, 8.507059e+37 }
0x1860   :  { %v2885_v34 = vpop.eup %2884 }
0x1861   :  { %v2317_v57 = vmul.f32 %v2885_v34, %v2315_v20  ;;  %vm2322_vm6 = vweird.f32 %v2885_v34 }
0x1862   :  { %vm2323_vm9 = vmor %vm2321_vm8, %vm2322_vm6 }
0x1863   :  { %v2318_v54 = vsub.f32 1.0, %v2317_v57 }
0x1865   :  { %v2319_v23 = vmul.f32 %v2885_v34, %v2318_v54 }
0x1867   :  { %v2320_v2 = vadd.f32 %v2885_v34, %v2319_v23 }
0x1869   :  { %v2324_v32 = vsel %vm2323_vm9, %v2885_v34, %v2320_v2 }
0x186a   :  { %v2329_v56 = vsel %vm2326_vm10, %v2328_v5, %v2324_v32  ;;  %v2492_v32 = vpop.permute.xlu2 %2491 }
0x186b   :  { %v2330_v58 = vmul.f32 %v2883_v4, %v2329_v56  ;;  %v2499_v56 = vpop.permute.xlu1 %2498 }
0x186d   :  { %v2331_v60 = vpack.c.bf16 %v2330_v58, %v2330_v58 }
0x186f   :  { %2709 = vmatmul.msk.bf16.vlgmr.msra.gmra.mxu2 %vm114_vm1, %v2331_v60  ;;  %v2501_v60 = vmul.f32 %v2499_v56, %v3745_v59 }
0x187f   :  { %2716 = vmatmul.msk.bf16.vlgmr.msrb.gmra.mxu2 %vm79_vm0, %v2294_v25 }
0x18f2   :  { %v2344_v24 = vpop.f32.mrf.mxu2 }
0x18f3   :  { %v2348_v28 = vpack.c.bf16 %v2344_v24, %v2344_v24 }
0x18f5   :  { %2711 = vmatmul.msk.bf16.vlgmr.msra.gmra.mxu3 %vm163_vm7, %v2348_v28  ;;  %2713 = vmatmul.msk.bf16.vlgmr.msra.gmra.mxu0 %vm163_vm7, %v2348_v28 }
0x18f6   :  { %2715 = vmatmul.msk.bf16.vlgmr.msrb.gmra.mxu1 %vm163_vm7, %v2348_v28 }
0x18fa   :  { %v2346_v42 = vpop.f32.mrf.mxu2 }
0x1902   :  { %v2412_v1 = vpop.f32.mrf.mxu2 }
0x1905   :  { %2717 = vmatmul.msk.bf16.vlgmr.msrb.gmra.mxu3 %vm79_vm0, %v2294_v25  ;;  %2718 = vmatmul.msk.bf16.vlgmr.msrb.gmra.mxu0 %vm79_vm0, %v2294_v25 }
0x190a   :  { %v2414_v37 = vpop.f32.mrf.mxu2 }
0x1972   :  { %v2380_v30 = vpop.f32.mrf.mxu0 }
0x1973   :  { %v2397_v36 = vpop.f32.mrf.mxu1  ;;  %v2384_v38 = vadd.f32 %v2712_v27, %v2380_v30 }
0x1974   :  { %v2401_v15 = vadd.f32 %v2714_v0, %v2397_v36 }
0x1975   :  { %v2385_v41 = vadd.f32 %v3689_v50, %v2384_v38 }
0x1976   :  { %v2402_v25 = vadd.f32 %v3698_v21, %v2401_v15 }
0x1978   :  { %v2363_v7 = vpop.f32.mrf.mxu3 }
0x1979   :  { %v2367_v3 = vadd.f32 %v2710_v6, %v2363_v7 }
0x197a   :  { %v2382_v11 = vpop.f32.mrf.mxu0 }
0x197b   :  { %v2368_v13 = vadd.f32 %v3680_v18, %v2367_v3  ;;  %v2399_v14 = vpop.f32.mrf.mxu1 }
0x197d   :  { %v2442_v39 = vadd.f32 %v2412_v1, %v2368_v13 }
0x197f   :  { %v2719_v19 = vmul.f32 -1.442695, %v2442_v39 }
0x1980   :  { %v2365_v35 = vpop.f32.mrf.mxu3 }
0x1981   :  { %2886 = vpow2.f32 %v2719_v19 }
0x1982   :  { %v2438_v33 = vpop.f32.mrf.mxu0 }
0x1987   :  { %v2887_v40 = vpop.eup %2886 }
0x1988   :  { %v2446_v43 = vadd.f32 1.0, %v2887_v40  ;;  %v2425_v47 = vpop.f32.mrf.mxu3 }
0x1989   :  { %v2462_v52 = vadd.f32 %v2425_v47, %v2385_v41 }
0x198a   :  { %2888 = vrcp.f32 %v2446_v43  ;;  %v2440_v51 = vpop.f32.mrf.mxu0  ;;  %v2458_v53 = vand.u32 2147483648, %v2446_v43  ;;  %v2456_v50 = vand.u32 2147483647, %v2446_v43  ;;  %vm2452_vm7 = vweird.f32 %v2446_v43 }
0x198b   :  { %v2720_v18 = vmul.f32 -1.442695, %v2462_v52 }
0x198c   :  { %v2459_v16 = vor.u32 1.1754944e-38, %v2458_v53  ;;  %vm2457_vm12 = vcmp.eq.f32.partialorder %v2456_v50, 8.507059e+37 }
0x198d   :  { %2890 = vpow2.f32 %v2720_v18 }
0x1990   :  { %v2889_v9 = vpop.eup %2888  ;;  %v2427_v44 = vpop.f32.mrf.mxu3 }
0x1991   :  { %v2448_v45 = vmul.f32 %v2889_v9, %v2446_v43  ;;  %vm2453_vm1 = vweird.f32 %v2889_v9 }
0x1992   :  { %vm2454_vm11 = vmor %vm2452_vm7, %vm2453_vm1 }
0x1993   :  { %v2891_v48 = vpop.eup %2890  ;;  %v2449_v49 = vsub.f32 1.0, %v2448_v45 }
0x1994   :  { %v2466_v8 = vadd.f32 1.0, %v2891_v48 }
0x1995   :  { %v2450_v22 = vmul.f32 %v2889_v9, %v2449_v49 }
0x1996   :  { %2892 = vrcp.f32 %v2466_v8  ;;  %v2478_v4 = vand.u32 2147483648, %v2466_v8  ;;  %v2476_v20 = vand.u32 2147483647, %v2466_v8  ;;  %vm2472_vm14 = vweird.f32 %v2466_v8 }
0x1997   :  { %v2451_v12 = vadd.f32 %v2889_v9, %v2450_v22 }
0x1998   :  { %v2479_v57 = vor.u32 1.1754944e-38, %v2478_v4  ;;  %vm2477_vm2 = vcmp.eq.f32.partialorder %v2476_v20, 8.507059e+37 }
0x1999   :  { %v2455_v17 = vsel %vm2454_vm11, %v2889_v9, %v2451_v12 }
0x199a   :  { %v2460_v46 = vsel %vm2457_vm12, %v2459_v16, %v2455_v17 }
0x199b   :  { %v2482_v55 = vmul.f32 %v2460_v46, %v2438_v33 }
0x199c   :  { %v2893_v10 = vpop.eup %2892 }
0x199d   :  { %v2468_v26 = vmul.f32 %v2893_v10, %v2466_v8  ;;  %v2483_v63 = vadd.f32 %v2482_v55, %v2402_v25  ;;  %vm2473_vm13 = vweird.f32 %v2893_v10 }
0x199e   :  { %vm2474_vm15 = vmor %vm2472_vm14, %vm2473_vm13 }
0x199f   :  { %v2469_v29 = vsub.f32 1.0, %v2468_v26  ;;  %2894 = vtanh.f32 %v2483_v63 }
0x19a1   :  { %v2470_v62 = vmul.f32 %v2893_v10, %v2469_v29 }
0x19a3   :  { %v2471_v34 = vadd.f32 %v2893_v10, %v2470_v62 }
0x19a5   :  { %v2475_v54 = vsel %vm2474_vm15, %v2893_v10, %v2471_v34  ;;  %v2895_v61 = vpop.eup %2894 }
0x19a6   :  { %v2480_v31 = vsel %vm2477_vm2, %v2479_v57, %v2475_v54 }
0x19a7   :  { %v2485_v23 = vsub.f32 1.0, %v2480_v31  ;;  %v2487_v21 = vmul.f32 %v2480_v31, %v3745_v59 }
0x19a9   :  { %v2486_v2 = vmul.f32 %v2895_v61, %v2485_v23 }
0x19ab   :  { %v2488_v5 = vadd.f32 %v2487_v21, %v2486_v2 }
0x19ad   :  { %v2494_v58 = vmul.f32 %v2492_v32, %v2488_v5 }
0x19af   :  { %v2502_v24 = vadd.f32 %v2501_v60, %v2494_v58 }
0x19b1   :  { %2504 = vst.msk [vmem:[#allocation2 + $0x58] sm:$0xff] %vm79_vm0, %v2502_v24 }
0x19b2   :  { %2517 = dma.vmem_to_hbm [thread:$0]  %s2510_s16, 1536, %s2512_s18, [#allocation3], %s2952_s19, %s2952_s19, %s2953_s20  }
0x19b3   :  { %2948 = dma.done.wait [#allocation3], 1536  }
0x19b4   :  { %2949 = vsyncadd [#allocation3], 4294965760 }
0x19b5   :  { %2522 = vsyncpa [#allocation3], 1 }

</bundles_post_ra>
